<compile_context>
chip_gen: v6e
topology: v6e:2x2x1
jax: 0.10.0
libtpu: 0.0.40
codegen_flags: <defaults>
</compile_context>

<pallas_src>
import math
from functools import partial

import jax
import jax.numpy as jnp
from jax import lax
from jax.experimental import pallas as pl
from jax.experimental.pallas import tpu as pltpu

# ---------------- small, TPU-friendly config (same structure as GPTConfig) ---
N_LAYER = 2          # config.n_layer  (small for the demo)
N_HEAD = 4           # config.n_head
N_EMBD = 128         # config.n_embd
BLOCK_SIZE = 16      # config.block_size
VOCAB = 256          # config.vocab_size
LN_EPS = 1e-5        # torch.nn.LayerNorm default eps
V_TILE = 128         # lm_head vocab tile (lane-dense output)
NEG_BIAS = -1e30     # finite additive causal mask


# ------------------------------ in-kernel helpers ----------------------------
def _layernorm(x, g, b):
    mu = jnp.mean(x, axis=-1, keepdims=True)
    var = jnp.mean((x - mu) ** 2, axis=-1, keepdims=True)
    return (x - mu) * lax.rsqrt(var + LN_EPS) * g + b


def _gelu_tanh(x):
    # matches torch.nn.GELU(approximate='tanh')
    c = math.sqrt(2.0 / math.pi)
    return 0.5 * x * (1.0 + jnp.tanh(c * (x + 0.044715 * x * x * x)))


# ------------------------------ fused GPT kernel -----------------------------
def gpt_kernel(x_ref,
               ln1g, ln1b, wqkv, bqkv, wpr, bpr,
               ln2g, ln2b, wfc, bfc, wpr2, bpr2,
               lnfg, lnfb, wte_t_ref,
               o_ref,
               h_sc,
               *, n_head, n_layer):
    B, T, C = x_ref.shape
    M = B * T
    hd = C // n_head
    scale = 1.0 / math.sqrt(hd)
    v_idx = pl.program_id(0)

    # Heavy transformer stack runs once (first vocab tile); the ln_f'd hidden
    # state is cached in VMEM scratch and reused for every vocab tile.
    @pl.when(v_idx == 0)
    def _():
        x = x_ref[...].reshape(M, C)                       # flatten (B,T) -> M rows

        row = lax.broadcasted_iota(jnp.int32, (T, T), 0)
        col = lax.broadcasted_iota(jnp.int32, (T, T), 1)
        mask_bias = jnp.where(row >= col, 0.0, NEG_BIAS).astype(jnp.float32)

        for l in range(n_layer):                           # static unroll, 2 layers
            # ---- ln_1 + causal self-attention ----
            h = _layernorm(x, ln1g[l], ln1b[l])
            qkv = jnp.dot(h.astype(jnp.bfloat16), wqkv[l],
                          preferred_element_type=jnp.float32) + bqkv[l]   # (M, 3C)
            q3 = qkv[:, 0 * C:1 * C].reshape(B, T, C)
            k3 = qkv[:, 1 * C:2 * C].reshape(B, T, C)
            v3 = qkv[:, 2 * C:3 * C].reshape(B, T, C)
            w_proj = wpr[l]                                # (C, C) bf16

            acc = jnp.zeros((M, C), jnp.float32)
            for hix in range(n_head):                      # static unroll over heads
                sl = slice(hix * hd, (hix + 1) * hd)
                qh = q3[:, :, sl].astype(jnp.bfloat16)
                kh = k3[:, :, sl].astype(jnp.bfloat16)
                vh = v3[:, :, sl].astype(jnp.bfloat16)
                att = jnp.einsum('bqd,bkd->bqk', qh, kh,
                                 preferred_element_type=jnp.float32) * scale
                att = att + mask_bias[None, :, :]
                att = att - jnp.max(att, axis=-1, keepdims=True)
                p = jnp.exp(att)
                p = p * pl.reciprocal(jnp.sum(p, axis=-1, keepdims=True),
                                      approx=True)
                yh = jnp.einsum('bqk,bkd->bqd', p.astype(jnp.bfloat16), vh,
                                preferred_element_type=jnp.float32)        # (B,T,hd)
                # Fold the head output straight into c_proj -> no lane concat.
                acc = acc + jnp.dot(yh.reshape(M, hd).astype(jnp.bfloat16),
                                    w_proj[sl, :],
                                    preferred_element_type=jnp.float32)
            x = x + acc + bpr[l]                                           # residual

            # ---- ln_2 + MLP ----
            h2 = _layernorm(x, ln2g[l], ln2b[l])
            f = jnp.dot(h2.astype(jnp.bfloat16), wfc[l],
                        preferred_element_type=jnp.float32) + bfc[l]
            f = _gelu_tanh(f)
            f = jnp.dot(f.astype(jnp.bfloat16), wpr2[l],
                        preferred_element_type=jnp.float32) + bpr2[l]
            x = x + f                                                      # residual

        # final layernorm; cache in bf16 for the tied lm_head matmuls
        h_sc[...] = _layernorm(x, lnfg[...], lnfb[...]).astype(jnp.bfloat16)

    # tied lm_head: one lane-dense vocab tile of logits per grid step
    logits = jnp.dot(h_sc[...], wte_t_ref[...],
                     preferred_element_type=jnp.float32)                   # (M, V_TILE)
    o_ref[...] = logits.reshape(B, T, o_ref.shape[-1])


def _full_spec(arr):
    nd = arr.ndim
    return pl.BlockSpec(arr.shape, lambda v, _nd=nd: (0,) * _nd)


# ------------------------------ full GPT forward -----------------------------
def gpt_forward(idx, params):
    B, T = idx.shape
    assert T <= BLOCK_SIZE
    C, V = N_EMBD, VOCAB
    bf16 = jnp.bfloat16

    # embedding lookup is glue (gather) in plain JAX
    tok_emb = jnp.take(params["wte"], idx, axis=0)           # (B, T, C)
    pos_emb = params["wpe"][:T]                              # (T, C)
    x = (tok_emb + pos_emb[None, :, :]).astype(jnp.float32)

    blk = params["blocks"]
    weights = [
        blk["ln1_g"], blk["ln1_b"],
        blk["w_qkv"].astype(bf16), blk["b_qkv"],
        blk["w_proj"].astype(bf16), blk["b_proj"],
        blk["ln2_g"], blk["ln2_b"],
        blk["w_fc"].astype(bf16), blk["b_fc"],
        blk["w_proj2"].astype(bf16), blk["b_proj2"],
        params["lnf_g"], params["lnf_b"],
    ]
    wte_t = params["wte"].T.astype(bf16)                     # (C, V), tied lm_head

    in_specs = [pl.BlockSpec((B, T, C), lambda v: (0, 0, 0))]
    in_specs += [_full_spec(w) for w in weights]
    in_specs += [pl.BlockSpec((C, V_TILE), lambda v: (0, v))]

    return pl.pallas_call(
        partial(gpt_kernel, n_head=N_HEAD, n_layer=N_LAYER),
        out_shape=jax.ShapeDtypeStruct((B, T, V), jnp.float32),
        grid=(V // V_TILE,),
        in_specs=in_specs,
        out_specs=pl.BlockSpec((B, T, V_TILE), lambda v: (0, 0, v)),
        scratch_shapes=[pltpu.VMEM((B * T, C), jnp.bfloat16)],
        compiler_params=pltpu.CompilerParams(
            dimension_semantics=("arbitrary",)),
    )(x, *weights, wte_t)
    # TODO(synk): cross-entropy loss path (targets) is not implemented; the
    # forward returns logits only, matching the targets=None behavior.


# ------------------------------ deterministic parameter init -----------------
def init_params(key):
    std = 0.02
    std_scaled = 0.02 * (2 * N_LAYER) ** (-0.5)   # NANOGPT_SCALE_INIT
    C, L = N_EMBD, N_LAYER
    k = jax.random.split(key, 6)
    return {
        "wte": jax.random.normal(k[0], (VOCAB, C), jnp.float32) * std,
        "wpe": jax.random.normal(k[1], (BLOCK_SIZE, C), jnp.float32) * std,
        "lnf_g": jnp.ones((1, C), jnp.float32),
        "lnf_b": jnp.zeros((1, C), jnp.float32),
        "blocks": {   # per-layer weights stacked along a leading layer axis
            "ln1_g": jnp.ones((L, 1, C), jnp.float32),
            "ln1_b": jnp.zeros((L, 1, C), jnp.float32),
            "w_qkv": jax.random.normal(k[2], (L, C, 3 * C), jnp.float32) * std,
            "b_qkv": jnp.zeros((L, 1, 3 * C), jnp.float32),
            "w_proj": jax.random.normal(k[3], (L, C, C), jnp.float32) * std_scaled,
            "b_proj": jnp.zeros((L, 1, C), jnp.float32),
            "ln2_g": jnp.ones((L, 1, C), jnp.float32),
            "ln2_b": jnp.zeros((L, 1, C), jnp.float32),
            "w_fc": jax.random.normal(k[4], (L, C, 4 * C), jnp.float32) * std,
            "b_fc": jnp.zeros((L, 1, 4 * C), jnp.float32),
            "w_proj2": jax.random.normal(k[5], (L, 4 * C, C), jnp.float32) * std_scaled,
            "b_proj2": jnp.zeros((L, 1, C), jnp.float32),
        },
    }


if __name__ == "__main__":
    key = jax.random.PRNGKey(0)
    pkey, ikey = jax.random.split(key)
    params = init_params(pkey)

    B, T = 2, 8
    idx = jax.random.randint(ikey, (B, T), 0, VOCAB, dtype=jnp.int32)

    logits = jax.jit(gpt_forward)(idx, params)
    jax.block_until_ready(logits)
    assert logits.shape == (B, T, VOCAB)
    assert bool(jnp.all(jnp.isfinite(logits)))
    print("KERNEL_OK")
</pallas_src>

<mosaic_0001>
module attributes {stable_mosaic.version = 11 : i64} {
  func.func @gpt_kernel(%arg0: i32, %arg1: memref<2x8x128xf32, #tpu.memory_space<vmem>>, %arg2: memref<2x1x128xf32, #tpu.memory_space<vmem>>, %arg3: memref<2x1x128xf32, #tpu.memory_space<vmem>>, %arg4: memref<2x128x384xbf16, #tpu.memory_space<vmem>>, %arg5: memref<2x1x384xf32, #tpu.memory_space<vmem>>, %arg6: memref<2x128x128xbf16, #tpu.memory_space<vmem>>, %arg7: memref<2x1x128xf32, #tpu.memory_space<vmem>>, %arg8: memref<2x1x128xf32, #tpu.memory_space<vmem>>, %arg9: memref<2x1x128xf32, #tpu.memory_space<vmem>>, %arg10: memref<2x128x512xbf16, #tpu.memory_space<vmem>>, %arg11: memref<2x1x512xf32, #tpu.memory_space<vmem>>, %arg12: memref<2x512x128xbf16, #tpu.memory_space<vmem>>, %arg13: memref<2x1x128xf32, #tpu.memory_space<vmem>>, %arg14: memref<1x128xf32, #tpu.memory_space<vmem>>, %arg15: memref<1x128xf32, #tpu.memory_space<vmem>>, %arg16: memref<128x128xbf16, #tpu.memory_space<vmem>>, %arg17: memref<2x8x128xf32, #tpu.memory_space<vmem>>, %arg18: memref<16x128xbf16, #tpu.memory_space<vmem>>) attributes {dimension_semantics = [#tpu.dimension_semantics<arbitrary>], iteration_bounds = array<i64: 2>, scalar_prefetch = 0 : i64, scratch_operands = 1 : i64, tpu.core_type = #tpu.core_type<tc>, window_params = [{pipeline_mode = #tpu.pipeline_mode<synchronous>, transform_indices = @transform_0, window_bounds = array<i64: 2, 8, 128>}, {pipeline_mode = #tpu.pipeline_mode<synchronous>, transform_indices = @transform_1, window_bounds = array<i64: 2, 1, 128>}, {pipeline_mode = #tpu.pipeline_mode<synchronous>, transform_indices = @transform_2, window_bounds = array<i64: 2, 1, 128>}, {pipeline_mode = #tpu.pipeline_mode<synchronous>, transform_indices = @transform_3, window_bounds = array<i64: 2, 128, 384>}, {pipeline_mode = #tpu.pipeline_mode<synchronous>, transform_indices = @transform_4, window_bounds = array<i64: 2, 1, 384>}, {pipeline_mode = #tpu.pipeline_mode<synchronous>, transform_indices = @transform_5, window_bounds = array<i64: 2, 128, 128>}, {pipeline_mode = #tpu.pipeline_mode<synchronous>, transform_indices = @transform_6, window_bounds = array<i64: 2, 1, 128>}, {pipeline_mode = #tpu.pipeline_mode<synchronous>, transform_indices = @transform_7, window_bounds = array<i64: 2, 1, 128>}, {pipeline_mode = #tpu.pipeline_mode<synchronous>, transform_indices = @transform_8, window_bounds = array<i64: 2, 1, 128>}, {pipeline_mode = #tpu.pipeline_mode<synchronous>, transform_indices = @transform_9, window_bounds = array<i64: 2, 128, 512>}, {pipeline_mode = #tpu.pipeline_mode<synchronous>, transform_indices = @transform_10, window_bounds = array<i64: 2, 1, 512>}, {pipeline_mode = #tpu.pipeline_mode<synchronous>, transform_indices = @transform_11, window_bounds = array<i64: 2, 512, 128>}, {pipeline_mode = #tpu.pipeline_mode<synchronous>, transform_indices = @transform_12, window_bounds = array<i64: 2, 1, 128>}, {pipeline_mode = #tpu.pipeline_mode<synchronous>, transform_indices = @transform_13, window_bounds = array<i64: 1, 128>}, {pipeline_mode = #tpu.pipeline_mode<synchronous>, transform_indices = @transform_14, window_bounds = array<i64: 1, 128>}, {transform_indices = @transform_15, window_bounds = array<i64: 128, 128>}, {transform_indices = @transform_16, window_bounds = array<i64: 2, 8, 128>}]} {
    %c0_i32 = arith.constant 0 : i32
    %0 = arith.cmpi eq, %arg0, %c0_i32 : i32
    %1 = arith.extui %0 : i1 to i32
    %c0_i32_0 = arith.constant 0 : i32
    %2 = arith.cmpi ne, %1, %c0_i32_0 : i32
    scf.if %2 {
      %c0_7 = arith.constant 0 : index
      %c0_8 = arith.constant 0 : index
      %c0_9 = arith.constant 0 : index
      %8 = vector.load %arg1[%c0_7, %c0_8, %c0_9] : memref<2x8x128xf32, #tpu.memory_space<vmem>>, vector<2x8x128xf32>
      %9 = vector.shape_cast %8 : vector<2x8x128xf32> to vector<16x128xf32>
      %10 = tpu.iota {dimensions = array<i32: 0>} : vector<8x8xi32>
      %11 = tpu.iota {dimensions = array<i32: 1>} : vector<8x8xi32>
      %12 = arith.cmpi sge, %10, %11 : vector<8x8xi32>
      %cst_10 = arith.constant 0.000000e+00 : f32
      %cst_11 = arith.constant -1.000000e+30 : f32
      %13 = vector.broadcast %cst_10 : f32 to vector<8x8xf32>
      %14 = vector.broadcast %cst_11 : f32 to vector<8x8xf32>
      %15 = arith.select %12, %13, %14 : vector<8x8xi1>, vector<8x8xf32>
      %c0_12 = arith.constant 0 : index
      %c0_13 = arith.constant 0 : index
      %c0_14 = arith.constant 0 : index
      %16 = vector.load %arg2[%c0_12, %c0_13, %c0_14] : memref<2x1x128xf32, #tpu.memory_space<vmem>>, vector<1x1x128xf32>
      %17 = vector.shape_cast %16 : vector<1x1x128xf32> to vector<1x128xf32>
      %c0_15 = arith.constant 0 : index
      %c0_16 = arith.constant 0 : index
      %c0_17 = arith.constant 0 : index
      %18 = vector.load %arg3[%c0_15, %c0_16, %c0_17] : memref<2x1x128xf32, #tpu.memory_space<vmem>>, vector<1x1x128xf32>
      %19 = vector.shape_cast %18 : vector<1x1x128xf32> to vector<1x128xf32>
      %cst_18 = arith.constant dense<0.000000e+00> : vector<16xf32>
      %20 = vector.multi_reduction <add>, %9, %cst_18 [1] : vector<16x128xf32> to vector<16xf32>
      %21 = vector.shape_cast %20 : vector<16xf32> to vector<16x1xf32>
      %cst_19 = arith.constant 1.280000e+02 : f32
      %22 = vector.broadcast %cst_19 : f32 to vector<16x1xf32>
      %23 = arith.divf %21, %22 : vector<16x1xf32>
      %24 = vector.broadcast %23 : vector<16x1xf32> to vector<16x128xf32>
      %25 = arith.subf %9, %24 : vector<16x128xf32>
      %26 = arith.mulf %25, %25 : vector<16x128xf32>
      %cst_20 = arith.constant dense<0.000000e+00> : vector<16xf32>
      %27 = vector.multi_reduction <add>, %26, %cst_20 [1] : vector<16x128xf32> to vector<16xf32>
      %28 = vector.shape_cast %27 : vector<16xf32> to vector<16x1xf32>
      %cst_21 = arith.constant 1.280000e+02 : f32
      %29 = vector.broadcast %cst_21 : f32 to vector<16x1xf32>
      %30 = arith.divf %28, %29 : vector<16x1xf32>
      %31 = vector.broadcast %23 : vector<16x1xf32> to vector<16x128xf32>
      %32 = arith.subf %9, %31 : vector<16x128xf32>
      %cst_22 = arith.constant 9.99999974E-6 : f32
      %33 = vector.broadcast %cst_22 : f32 to vector<16x1xf32>
      %34 = arith.addf %30, %33 : vector<16x1xf32>
      %35 = math.rsqrt %34 : vector<16x1xf32>
      %36 = vector.broadcast %35 : vector<16x1xf32> to vector<16x128xf32>
      %37 = arith.mulf %32, %36 : vector<16x128xf32>
      %38 = vector.broadcast %17 : vector<1x128xf32> to vector<16x128xf32>
      %39 = arith.mulf %37, %38 : vector<16x128xf32>
      %40 = vector.broadcast %19 : vector<1x128xf32> to vector<16x128xf32>
      %41 = arith.addf %39, %40 : vector<16x128xf32>
      %42 = arith.truncf %41 : vector<16x128xf32> to vector<16x128xbf16>
      %c0_23 = arith.constant 0 : index
      %c0_24 = arith.constant 0 : index
      %c0_25 = arith.constant 0 : index
      %43 = vector.load %arg4[%c0_23, %c0_24, %c0_25] : memref<2x128x384xbf16, #tpu.memory_space<vmem>>, vector<1x128x384xbf16>
      %44 = vector.shape_cast %43 : vector<1x128x384xbf16> to vector<128x384xbf16>
      %cst_26 = arith.constant dense<0.000000e+00> : vector<16x384xf32>
      %45 = tpu.matmul %42, %44, %cst_26 {dimension_numbers = #tpu.dot_dimension_numbers<[1], [0], [0], [1], [0, 0, 1, 1], [], []>} : vector<16x128xbf16>, vector<128x384xbf16>, vector<16x384xf32> -> vector<16x384xf32>
      %c0_27 = arith.constant 0 : index
      %c0_28 = arith.constant 0 : index
      %c0_29 = arith.constant 0 : index
      %46 = vector.load %arg5[%c0_27, %c0_28, %c0_29] : memref<2x1x384xf32, #tpu.memory_space<vmem>>, vector<1x1x384xf32>
      %47 = vector.shape_cast %46 : vector<1x1x384xf32> to vector<1x384xf32>
      %48 = vector.broadcast %47 : vector<1x384xf32> to vector<16x384xf32>
      %49 = arith.addf %45, %48 : vector<16x384xf32>
      %50 = vector.extract_strided_slice %49 {offsets = [0, 0], sizes = [16, 128], strides = [1, 1]} : vector<16x384xf32> to vector<16x128xf32>
      %51 = vector.shape_cast %50 : vector<16x128xf32> to vector<2x8x128xf32>
      %52 = vector.extract_strided_slice %49 {offsets = [0, 128], sizes = [16, 128], strides = [1, 1]} : vector<16x384xf32> to vector<16x128xf32>
      %53 = vector.shape_cast %52 : vector<16x128xf32> to vector<2x8x128xf32>
      %54 = vector.extract_strided_slice %49 {offsets = [0, 256], sizes = [16, 128], strides = [1, 1]} : vector<16x384xf32> to vector<16x128xf32>
      %55 = vector.shape_cast %54 : vector<16x128xf32> to vector<2x8x128xf32>
      %c0_30 = arith.constant 0 : index
      %c0_31 = arith.constant 0 : index
      %c0_32 = arith.constant 0 : index
      %56 = vector.load %arg6[%c0_30, %c0_31, %c0_32] : memref<2x128x128xbf16, #tpu.memory_space<vmem>>, vector<1x128x128xbf16>
      %57 = vector.shape_cast %56 : vector<1x128x128xbf16> to vector<128x128xbf16>
      %cst_33 = arith.constant 0.000000e+00 : f32
      %58 = vector.broadcast %cst_33 : f32 to vector<16x128xf32>
      %59 = vector.extract_strided_slice %51 {offsets = [0, 0, 0], sizes = [2, 8, 32], strides = [1, 1, 1]} : vector<2x8x128xf32> to vector<2x8x32xf32>
      %60 = arith.truncf %59 : vector<2x8x32xf32> to vector<2x8x32xbf16>
      %61 = vector.extract_strided_slice %53 {offsets = [0, 0, 0], sizes = [2, 8, 32], strides = [1, 1, 1]} : vector<2x8x128xf32> to vector<2x8x32xf32>
      %62 = arith.truncf %61 : vector<2x8x32xf32> to vector<2x8x32xbf16>
      %63 = vector.extract_strided_slice %55 {offsets = [0, 0, 0], sizes = [2, 8, 32], strides = [1, 1, 1]} : vector<2x8x128xf32> to vector<2x8x32xf32>
      %64 = arith.truncf %63 : vector<2x8x32xf32> to vector<2x8x32xbf16>
      "tpu.trace_start"() <{level = 10 : i32, message = "bqd,bkd->bqk"}> : () -> ()
      %cst_34 = arith.constant dense<0.000000e+00> : vector<2x8x8xf32>
      %65 = tpu.matmul %60, %62, %cst_34 {dimension_numbers = #tpu.dot_dimension_numbers<[2], [2], [1], [1], [0, 0, 0, 1, 1, 1], [0], [0]>} : vector<2x8x32xbf16>, vector<2x8x32xbf16>, vector<2x8x8xf32> -> vector<2x8x8xf32>
      "tpu.trace_stop"() : () -> ()
      %cst_35 = arith.constant 0.176776692 : f32
      %66 = vector.broadcast %cst_35 : f32 to vector<2x8x8xf32>
      %67 = arith.mulf %65, %66 : vector<2x8x8xf32>
      %68 = vector.shape_cast %15 : vector<8x8xf32> to vector<1x8x8xf32>
      %69 = vector.broadcast %68 : vector<1x8x8xf32> to vector<2x8x8xf32>
      %70 = arith.addf %67, %69 : vector<2x8x8xf32>
      %cst_36 = arith.constant dense<0xFF800000> : vector<2x8xf32>
      %71 = vector.multi_reduction <maximumf>, %70, %cst_36 [2] : vector<2x8x8xf32> to vector<2x8xf32>
      %72 = vector.shape_cast %71 : vector<2x8xf32> to vector<2x8x1xf32>
      %73 = vector.broadcast %72 : vector<2x8x1xf32> to vector<2x8x8xf32>
      %74 = arith.subf %70, %73 : vector<2x8x8xf32>
      %75 = math.exp %74 : vector<2x8x8xf32>
      %cst_37 = arith.constant dense<0.000000e+00> : vector<2x8xf32>
      %76 = vector.multi_reduction <add>, %75, %cst_37 [2] : vector<2x8x8xf32> to vector<2x8xf32>
      %77 = vector.shape_cast %76 : vector<2x8xf32> to vector<2x8x1xf32>
      %78 = tpu.reciprocal %77 {approx = true} : vector<2x8x1xf32> -> vector<2x8x1xf32>
      %79 = vector.broadcast %78 : vector<2x8x1xf32> to vector<2x8x8xf32>
      %80 = arith.mulf %75, %79 : vector<2x8x8xf32>
      %81 = arith.truncf %80 : vector<2x8x8xf32> to vector<2x8x8xbf16>
      "tpu.trace_start"() <{level = 10 : i32, message = "bqk,bkd->bqd"}> : () -> ()
      %cst_38 = arith.constant dense<0.000000e+00> : vector<2x8x32xf32>
      %82 = tpu.matmul %81, %64, %cst_38 {dimension_numbers = #tpu.dot_dimension_numbers<[2], [1], [1], [2], [0, 0, 0, 1, 1, 2], [0], [0]>} : vector<2x8x8xbf16>, vector<2x8x32xbf16>, vector<2x8x32xf32> -> vector<2x8x32xf32>
      "tpu.trace_stop"() : () -> ()
      %83 = vector.shape_cast %82 : vector<2x8x32xf32> to vector<16x32xf32>
      %84 = arith.truncf %83 : vector<16x32xf32> to vector<16x32xbf16>
      %85 = vector.extract_strided_slice %57 {offsets = [0, 0], sizes = [32, 128], strides = [1, 1]} : vector<128x128xbf16> to vector<32x128xbf16>
      %cst_39 = arith.constant dense<0.000000e+00> : vector<16x128xf32>
      %86 = tpu.matmul %84, %85, %cst_39 {dimension_numbers = #tpu.dot_dimension_numbers<[1], [0], [0], [1], [0, 0, 1, 1], [], []>} : vector<16x32xbf16>, vector<32x128xbf16>, vector<16x128xf32> -> vector<16x128xf32>
      %87 = arith.addf %58, %86 : vector<16x128xf32>
      %88 = vector.extract_strided_slice %51 {offsets = [0, 0, 32], sizes = [2, 8, 32], strides = [1, 1, 1]} : vector<2x8x128xf32> to vector<2x8x32xf32>
      %89 = arith.truncf %88 : vector<2x8x32xf32> to vector<2x8x32xbf16>
      %90 = vector.extract_strided_slice %53 {offsets = [0, 0, 32], sizes = [2, 8, 32], strides = [1, 1, 1]} : vector<2x8x128xf32> to vector<2x8x32xf32>
      %91 = arith.truncf %90 : vector<2x8x32xf32> to vector<2x8x32xbf16>
      %92 = vector.extract_strided_slice %55 {offsets = [0, 0, 32], sizes = [2, 8, 32], strides = [1, 1, 1]} : vector<2x8x128xf32> to vector<2x8x32xf32>
      %93 = arith.truncf %92 : vector<2x8x32xf32> to vector<2x8x32xbf16>
      "tpu.trace_start"() <{level = 10 : i32, message = "bqd,bkd->bqk"}> : () -> ()
      %cst_40 = arith.constant dense<0.000000e+00> : vector<2x8x8xf32>
      %94 = tpu.matmul %89, %91, %cst_40 {dimension_numbers = #tpu.dot_dimension_numbers<[2], [2], [1], [1], [0, 0, 0, 1, 1, 1], [0], [0]>} : vector<2x8x32xbf16>, vector<2x8x32xbf16>, vector<2x8x8xf32> -> vector<2x8x8xf32>
      "tpu.trace_stop"() : () -> ()
      %cst_41 = arith.constant 0.176776692 : f32
      %95 = vector.broadcast %cst_41 : f32 to vector<2x8x8xf32>
      %96 = arith.mulf %94, %95 : vector<2x8x8xf32>
      %97 = vector.shape_cast %15 : vector<8x8xf32> to vector<1x8x8xf32>
      %98 = vector.broadcast %97 : vector<1x8x8xf32> to vector<2x8x8xf32>
      %99 = arith.addf %96, %98 : vector<2x8x8xf32>
      %cst_42 = arith.constant dense<0xFF800000> : vector<2x8xf32>
      %100 = vector.multi_reduction <maximumf>, %99, %cst_42 [2] : vector<2x8x8xf32> to vector<2x8xf32>
      %101 = vector.shape_cast %100 : vector<2x8xf32> to vector<2x8x1xf32>
      %102 = vector.broadcast %101 : vector<2x8x1xf32> to vector<2x8x8xf32>
      %103 = arith.subf %99, %102 : vector<2x8x8xf32>
      %104 = math.exp %103 : vector<2x8x8xf32>
      %cst_43 = arith.constant dense<0.000000e+00> : vector<2x8xf32>
      %105 = vector.multi_reduction <add>, %104, %cst_43 [2] : vector<2x8x8xf32> to vector<2x8xf32>
      %106 = vector.shape_cast %105 : vector<2x8xf32> to vector<2x8x1xf32>
      %107 = tpu.reciprocal %106 {approx = true} : vector<2x8x1xf32> -> vector<2x8x1xf32>
      %108 = vector.broadcast %107 : vector<2x8x1xf32> to vector<2x8x8xf32>
      %109 = arith.mulf %104, %108 : vector<2x8x8xf32>
      %110 = arith.truncf %109 : vector<2x8x8xf32> to vector<2x8x8xbf16>
      "tpu.trace_start"() <{level = 10 : i32, message = "bqk,bkd->bqd"}> : () -> ()
      %cst_44 = arith.constant dense<0.000000e+00> : vector<2x8x32xf32>
      %111 = tpu.matmul %110, %93, %cst_44 {dimension_numbers = #tpu.dot_dimension_numbers<[2], [1], [1], [2], [0, 0, 0, 1, 1, 2], [0], [0]>} : vector<2x8x8xbf16>, vector<2x8x32xbf16>, vector<2x8x32xf32> -> vector<2x8x32xf32>
      "tpu.trace_stop"() : () -> ()
      %112 = vector.shape_cast %111 : vector<2x8x32xf32> to vector<16x32xf32>
      %113 = arith.truncf %112 : vector<16x32xf32> to vector<16x32xbf16>
      %114 = vector.extract_strided_slice %57 {offsets = [32, 0], sizes = [32, 128], strides = [1, 1]} : vector<128x128xbf16> to vector<32x128xbf16>
      %cst_45 = arith.constant dense<0.000000e+00> : vector<16x128xf32>
      %115 = tpu.matmul %113, %114, %cst_45 {dimension_numbers = #tpu.dot_dimension_numbers<[1], [0], [0], [1], [0, 0, 1, 1], [], []>} : vector<16x32xbf16>, vector<32x128xbf16>, vector<16x128xf32> -> vector<16x128xf32>
      %116 = arith.addf %87, %115 : vector<16x128xf32>
      %117 = vector.extract_strided_slice %51 {offsets = [0, 0, 64], sizes = [2, 8, 32], strides = [1, 1, 1]} : vector<2x8x128xf32> to vector<2x8x32xf32>
      %118 = arith.truncf %117 : vector<2x8x32xf32> to vector<2x8x32xbf16>
      %119 = vector.extract_strided_slice %53 {offsets = [0, 0, 64], sizes = [2, 8, 32], strides = [1, 1, 1]} : vector<2x8x128xf32> to vector<2x8x32xf32>
      %120 = arith.truncf %119 : vector<2x8x32xf32> to vector<2x8x32xbf16>
      %121 = vector.extract_strided_slice %55 {offsets = [0, 0, 64], sizes = [2, 8, 32], strides = [1, 1, 1]} : vector<2x8x128xf32> to vector<2x8x32xf32>
      %122 = arith.truncf %121 : vector<2x8x32xf32> to vector<2x8x32xbf16>
      "tpu.trace_start"() <{level = 10 : i32, message = "bqd,bkd->bqk"}> : () -> ()
      %cst_46 = arith.constant dense<0.000000e+00> : vector<2x8x8xf32>
      %123 = tpu.matmul %118, %120, %cst_46 {dimension_numbers = #tpu.dot_dimension_numbers<[2], [2], [1], [1], [0, 0, 0, 1, 1, 1], [0], [0]>} : vector<2x8x32xbf16>, vector<2x8x32xbf16>, vector<2x8x8xf32> -> vector<2x8x8xf32>
      "tpu.trace_stop"() : () -> ()
      %cst_47 = arith.constant 0.176776692 : f32
      %124 = vector.broadcast %cst_47 : f32 to vector<2x8x8xf32>
      %125 = arith.mulf %123, %124 : vector<2x8x8xf32>
      %126 = vector.shape_cast %15 : vector<8x8xf32> to vector<1x8x8xf32>
      %127 = vector.broadcast %126 : vector<1x8x8xf32> to vector<2x8x8xf32>
      %128 = arith.addf %125, %127 : vector<2x8x8xf32>
      %cst_48 = arith.constant dense<0xFF800000> : vector<2x8xf32>
      %129 = vector.multi_reduction <maximumf>, %128, %cst_48 [2] : vector<2x8x8xf32> to vector<2x8xf32>
      %130 = vector.shape_cast %129 : vector<2x8xf32> to vector<2x8x1xf32>
      %131 = vector.broadcast %130 : vector<2x8x1xf32> to vector<2x8x8xf32>
      %132 = arith.subf %128, %131 : vector<2x8x8xf32>
      %133 = math.exp %132 : vector<2x8x8xf32>
      %cst_49 = arith.constant dense<0.000000e+00> : vector<2x8xf32>
      %134 = vector.multi_reduction <add>, %133, %cst_49 [2] : vector<2x8x8xf32> to vector<2x8xf32>
      %135 = vector.shape_cast %134 : vector<2x8xf32> to vector<2x8x1xf32>
      %136 = tpu.reciprocal %135 {approx = true} : vector<2x8x1xf32> -> vector<2x8x1xf32>
      %137 = vector.broadcast %136 : vector<2x8x1xf32> to vector<2x8x8xf32>
      %138 = arith.mulf %133, %137 : vector<2x8x8xf32>
      %139 = arith.truncf %138 : vector<2x8x8xf32> to vector<2x8x8xbf16>
      "tpu.trace_start"() <{level = 10 : i32, message = "bqk,bkd->bqd"}> : () -> ()
      %cst_50 = arith.constant dense<0.000000e+00> : vector<2x8x32xf32>
      %140 = tpu.matmul %139, %122, %cst_50 {dimension_numbers = #tpu.dot_dimension_numbers<[2], [1], [1], [2], [0, 0, 0, 1, 1, 2], [0], [0]>} : vector<2x8x8xbf16>, vector<2x8x32xbf16>, vector<2x8x32xf32> -> vector<2x8x32xf32>
      "tpu.trace_stop"() : () -> ()
      %141 = vector.shape_cast %140 : vector<2x8x32xf32> to vector<16x32xf32>
      %142 = arith.truncf %141 : vector<16x32xf32> to vector<16x32xbf16>
      %143 = vector.extract_strided_slice %57 {offsets = [64, 0], sizes = [32, 128], strides = [1, 1]} : vector<128x128xbf16> to vector<32x128xbf16>
      %cst_51 = arith.constant dense<0.000000e+00> : vector<16x128xf32>
      %144 = tpu.matmul %142, %143, %cst_51 {dimension_numbers = #tpu.dot_dimension_numbers<[1], [0], [0], [1], [0, 0, 1, 1], [], []>} : vector<16x32xbf16>, vector<32x128xbf16>, vector<16x128xf32> -> vector<16x128xf32>
      %145 = arith.addf %116, %144 : vector<16x128xf32>
      %146 = vector.extract_strided_slice %51 {offsets = [0, 0, 96], sizes = [2, 8, 32], strides = [1, 1, 1]} : vector<2x8x128xf32> to vector<2x8x32xf32>
      %147 = arith.truncf %146 : vector<2x8x32xf32> to vector<2x8x32xbf16>
      %148 = vector.extract_strided_slice %53 {offsets = [0, 0, 96], sizes = [2, 8, 32], strides = [1, 1, 1]} : vector<2x8x128xf32> to vector<2x8x32xf32>
      %149 = arith.truncf %148 : vector<2x8x32xf32> to vector<2x8x32xbf16>
      %150 = vector.extract_strided_slice %55 {offsets = [0, 0, 96], sizes = [2, 8, 32], strides = [1, 1, 1]} : vector<2x8x128xf32> to vector<2x8x32xf32>
      %151 = arith.truncf %150 : vector<2x8x32xf32> to vector<2x8x32xbf16>
      "tpu.trace_start"() <{level = 10 : i32, message = "bqd,bkd->bqk"}> : () -> ()
      %cst_52 = arith.constant dense<0.000000e+00> : vector<2x8x8xf32>
      %152 = tpu.matmul %147, %149, %cst_52 {dimension_numbers = #tpu.dot_dimension_numbers<[2], [2], [1], [1], [0, 0, 0, 1, 1, 1], [0], [0]>} : vector<2x8x32xbf16>, vector<2x8x32xbf16>, vector<2x8x8xf32> -> vector<2x8x8xf32>
      "tpu.trace_stop"() : () -> ()
      %cst_53 = arith.constant 0.176776692 : f32
      %153 = vector.broadcast %cst_53 : f32 to vector<2x8x8xf32>
      %154 = arith.mulf %152, %153 : vector<2x8x8xf32>
      %155 = vector.shape_cast %15 : vector<8x8xf32> to vector<1x8x8xf32>
      %156 = vector.broadcast %155 : vector<1x8x8xf32> to vector<2x8x8xf32>
      %157 = arith.addf %154, %156 : vector<2x8x8xf32>
      %cst_54 = arith.constant dense<0xFF800000> : vector<2x8xf32>
      %158 = vector.multi_reduction <maximumf>, %157, %cst_54 [2] : vector<2x8x8xf32> to vector<2x8xf32>
      %159 = vector.shape_cast %158 : vector<2x8xf32> to vector<2x8x1xf32>
      %160 = vector.broadcast %159 : vector<2x8x1xf32> to vector<2x8x8xf32>
      %161 = arith.subf %157, %160 : vector<2x8x8xf32>
      %162 = math.exp %161 : vector<2x8x8xf32>
      %cst_55 = arith.constant dense<0.000000e+00> : vector<2x8xf32>
      %163 = vector.multi_reduction <add>, %162, %cst_55 [2] : vector<2x8x8xf32> to vector<2x8xf32>
      %164 = vector.shape_cast %163 : vector<2x8xf32> to vector<2x8x1xf32>
      %165 = tpu.reciprocal %164 {approx = true} : vector<2x8x1xf32> -> vector<2x8x1xf32>
      %166 = vector.broadcast %165 : vector<2x8x1xf32> to vector<2x8x8xf32>
      %167 = arith.mulf %162, %166 : vector<2x8x8xf32>
      %168 = arith.truncf %167 : vector<2x8x8xf32> to vector<2x8x8xbf16>
      "tpu.trace_start"() <{level = 10 : i32, message = "bqk,bkd->bqd"}> : () -> ()
      %cst_56 = arith.constant dense<0.000000e+00> : vector<2x8x32xf32>
      %169 = tpu.matmul %168, %151, %cst_56 {dimension_numbers = #tpu.dot_dimension_numbers<[2], [1], [1], [2], [0, 0, 0, 1, 1, 2], [0], [0]>} : vector<2x8x8xbf16>, vector<2x8x32xbf16>, vector<2x8x32xf32> -> vector<2x8x32xf32>
      "tpu.trace_stop"() : () -> ()
      %170 = vector.shape_cast %169 : vector<2x8x32xf32> to vector<16x32xf32>
      %171 = arith.truncf %170 : vector<16x32xf32> to vector<16x32xbf16>
      %172 = vector.extract_strided_slice %57 {offsets = [96, 0], sizes = [32, 128], strides = [1, 1]} : vector<128x128xbf16> to vector<32x128xbf16>
      %cst_57 = arith.constant dense<0.000000e+00> : vector<16x128xf32>
      %173 = tpu.matmul %171, %172, %cst_57 {dimension_numbers = #tpu.dot_dimension_numbers<[1], [0], [0], [1], [0, 0, 1, 1], [], []>} : vector<16x32xbf16>, vector<32x128xbf16>, vector<16x128xf32> -> vector<16x128xf32>
      %174 = arith.addf %145, %173 : vector<16x128xf32>
      %175 = arith.addf %9, %174 : vector<16x128xf32>
      %c0_58 = arith.constant 0 : index
      %c0_59 = arith.constant 0 : index
      %c0_60 = arith.constant 0 : index
      %176 = vector.load %arg7[%c0_58, %c0_59, %c0_60] : memref<2x1x128xf32, #tpu.memory_space<vmem>>, vector<1x1x128xf32>
      %177 = vector.shape_cast %176 : vector<1x1x128xf32> to vector<1x128xf32>
      %178 = vector.broadcast %177 : vector<1x128xf32> to vector<16x128xf32>
      %179 = arith.addf %175, %178 : vector<16x128xf32>
      %c0_61 = arith.constant 0 : index
      %c0_62 = arith.constant 0 : index
      %c0_63 = arith.constant 0 : index
      %180 = vector.load %arg8[%c0_61, %c0_62, %c0_63] : memref<2x1x128xf32, #tpu.memory_space<vmem>>, vector<1x1x128xf32>
      %181 = vector.shape_cast %180 : vector<1x1x128xf32> to vector<1x128xf32>
      %c0_64 = arith.constant 0 : index
      %c0_65 = arith.constant 0 : index
      %c0_66 = arith.constant 0 : index
      %182 = vector.load %arg9[%c0_64, %c0_65, %c0_66] : memref<2x1x128xf32, #tpu.memory_space<vmem>>, vector<1x1x128xf32>
      %183 = vector.shape_cast %182 : vector<1x1x128xf32> to vector<1x128xf32>
      %cst_67 = arith.constant dense<0.000000e+00> : vector<16xf32>
      %184 = vector.multi_reduction <add>, %179, %cst_67 [1] : vector<16x128xf32> to vector<16xf32>
      %185 = vector.shape_cast %184 : vector<16xf32> to vector<16x1xf32>
      %cst_68 = arith.constant 1.280000e+02 : f32
      %186 = vector.broadcast %cst_68 : f32 to vector<16x1xf32>
      %187 = arith.divf %185, %186 : vector<16x1xf32>
      %188 = vector.broadcast %187 : vector<16x1xf32> to vector<16x128xf32>
      %189 = arith.subf %179, %188 : vector<16x128xf32>
      %190 = arith.mulf %189, %189 : vector<16x128xf32>
      %cst_69 = arith.constant dense<0.000000e+00> : vector<16xf32>
      %191 = vector.multi_reduction <add>, %190, %cst_69 [1] : vector<16x128xf32> to vector<16xf32>
      %192 = vector.shape_cast %191 : vector<16xf32> to vector<16x1xf32>
      %cst_70 = arith.constant 1.280000e+02 : f32
      %193 = vector.broadcast %cst_70 : f32 to vector<16x1xf32>
      %194 = arith.divf %192, %193 : vector<16x1xf32>
      %195 = vector.broadcast %187 : vector<16x1xf32> to vector<16x128xf32>
      %196 = arith.subf %179, %195 : vector<16x128xf32>
      %cst_71 = arith.constant 9.99999974E-6 : f32
      %197 = vector.broadcast %cst_71 : f32 to vector<16x1xf32>
      %198 = arith.addf %194, %197 : vector<16x1xf32>
      %199 = math.rsqrt %198 : vector<16x1xf32>
      %200 = vector.broadcast %199 : vector<16x1xf32> to vector<16x128xf32>
      %201 = arith.mulf %196, %200 : vector<16x128xf32>
      %202 = vector.broadcast %181 : vector<1x128xf32> to vector<16x128xf32>
      %203 = arith.mulf %201, %202 : vector<16x128xf32>
      %204 = vector.broadcast %183 : vector<1x128xf32> to vector<16x128xf32>
      %205 = arith.addf %203, %204 : vector<16x128xf32>
      %206 = arith.truncf %205 : vector<16x128xf32> to vector<16x128xbf16>
      %c0_72 = arith.constant 0 : index
      %c0_73 = arith.constant 0 : index
      %c0_74 = arith.constant 0 : index
      %207 = vector.load %arg10[%c0_72, %c0_73, %c0_74] : memref<2x128x512xbf16, #tpu.memory_space<vmem>>, vector<1x128x512xbf16>
      %208 = vector.shape_cast %207 : vector<1x128x512xbf16> to vector<128x512xbf16>
      %cst_75 = arith.constant dense<0.000000e+00> : vector<16x512xf32>
      %209 = tpu.matmul %206, %208, %cst_75 {dimension_numbers = #tpu.dot_dimension_numbers<[1], [0], [0], [1], [0, 0, 1, 1], [], []>} : vector<16x128xbf16>, vector<128x512xbf16>, vector<16x512xf32> -> vector<16x512xf32>
      %c0_76 = arith.constant 0 : index
      %c0_77 = arith.constant 0 : index
      %c0_78 = arith.constant 0 : index
      %210 = vector.load %arg11[%c0_76, %c0_77, %c0_78] : memref<2x1x512xf32, #tpu.memory_space<vmem>>, vector<1x1x512xf32>
      %211 = vector.shape_cast %210 : vector<1x1x512xf32> to vector<1x512xf32>
      %212 = vector.broadcast %211 : vector<1x512xf32> to vector<16x512xf32>
      %213 = arith.addf %209, %212 : vector<16x512xf32>
      %cst_79 = arith.constant 5.000000e-01 : f32
      %214 = vector.broadcast %cst_79 : f32 to vector<16x512xf32>
      %215 = arith.mulf %214, %213 : vector<16x512xf32>
      %cst_80 = arith.constant 4.471500e-02 : f32
      %216 = vector.broadcast %cst_80 : f32 to vector<16x512xf32>
      %217 = arith.mulf %216, %213 : vector<16x512xf32>
      %218 = arith.mulf %217, %213 : vector<16x512xf32>
      %219 = arith.mulf %218, %213 : vector<16x512xf32>
      %220 = arith.addf %213, %219 : vector<16x512xf32>
      %cst_81 = arith.constant 0.797884583 : f32
      %221 = vector.broadcast %cst_81 : f32 to vector<16x512xf32>
      %222 = arith.mulf %221, %220 : vector<16x512xf32>
      %223 = math.tanh %222 : vector<16x512xf32>
      %cst_82 = arith.constant 1.000000e+00 : f32
      %224 = vector.broadcast %cst_82 : f32 to vector<16x512xf32>
      %225 = arith.addf %224, %223 : vector<16x512xf32>
      %226 = arith.mulf %215, %225 : vector<16x512xf32>
      %227 = arith.truncf %226 : vector<16x512xf32> to vector<16x512xbf16>
      %c0_83 = arith.constant 0 : index
      %c0_84 = arith.constant 0 : index
      %c0_85 = arith.constant 0 : index
      %228 = vector.load %arg12[%c0_83, %c0_84, %c0_85] : memref<2x512x128xbf16, #tpu.memory_space<vmem>>, vector<1x512x128xbf16>
      %229 = vector.shape_cast %228 : vector<1x512x128xbf16> to vector<512x128xbf16>
      %cst_86 = arith.constant dense<0.000000e+00> : vector<16x128xf32>
      %230 = tpu.matmul %227, %229, %cst_86 {dimension_numbers = #tpu.dot_dimension_numbers<[1], [0], [0], [1], [0, 0, 1, 1], [], []>} : vector<16x512xbf16>, vector<512x128xbf16>, vector<16x128xf32> -> vector<16x128xf32>
      %c0_87 = arith.constant 0 : index
      %c0_88 = arith.constant 0 : index
      %c0_89 = arith.constant 0 : index
      %231 = vector.load %arg13[%c0_87, %c0_88, %c0_89] : memref<2x1x128xf32, #tpu.memory_space<vmem>>, vector<1x1x128xf32>
      %232 = vector.shape_cast %231 : vector<1x1x128xf32> to vector<1x128xf32>
      %233 = vector.broadcast %232 : vector<1x128xf32> to vector<16x128xf32>
      %234 = arith.addf %230, %233 : vector<16x128xf32>
      %235 = arith.addf %179, %234 : vector<16x128xf32>
      %c1 = arith.constant 1 : index
      %c0_90 = arith.constant 0 : index
      %c0_91 = arith.constant 0 : index
      %236 = vector.load %arg2[%c1, %c0_90, %c0_91] : memref<2x1x128xf32, #tpu.memory_space<vmem>>, vector<1x1x128xf32>
      %237 = vector.shape_cast %236 : vector<1x1x128xf32> to vector<1x128xf32>
      %c1_92 = arith.constant 1 : index
      %c0_93 = arith.constant 0 : index
      %c0_94 = arith.constant 0 : index
      %238 = vector.load %arg3[%c1_92, %c0_93, %c0_94] : memref<2x1x128xf32, #tpu.memory_space<vmem>>, vector<1x1x128xf32>
      %239 = vector.shape_cast %238 : vector<1x1x128xf32> to vector<1x128xf32>
      %cst_95 = arith.constant dense<0.000000e+00> : vector<16xf32>
      %240 = vector.multi_reduction <add>, %235, %cst_95 [1] : vector<16x128xf32> to vector<16xf32>
      %241 = vector.shape_cast %240 : vector<16xf32> to vector<16x1xf32>
      %cst_96 = arith.constant 1.280000e+02 : f32
      %242 = vector.broadcast %cst_96 : f32 to vector<16x1xf32>
      %243 = arith.divf %241, %242 : vector<16x1xf32>
      %244 = vector.broadcast %243 : vector<16x1xf32> to vector<16x128xf32>
      %245 = arith.subf %235, %244 : vector<16x128xf32>
      %246 = arith.mulf %245, %245 : vector<16x128xf32>
      %cst_97 = arith.constant dense<0.000000e+00> : vector<16xf32>
      %247 = vector.multi_reduction <add>, %246, %cst_97 [1] : vector<16x128xf32> to vector<16xf32>
      %248 = vector.shape_cast %247 : vector<16xf32> to vector<16x1xf32>
      %cst_98 = arith.constant 1.280000e+02 : f32
      %249 = vector.broadcast %cst_98 : f32 to vector<16x1xf32>
      %250 = arith.divf %248, %249 : vector<16x1xf32>
      %251 = vector.broadcast %243 : vector<16x1xf32> to vector<16x128xf32>
      %252 = arith.subf %235, %251 : vector<16x128xf32>
      %cst_99 = arith.constant 9.99999974E-6 : f32
      %253 = vector.broadcast %cst_99 : f32 to vector<16x1xf32>
      %254 = arith.addf %250, %253 : vector<16x1xf32>
      %255 = math.rsqrt %254 : vector<16x1xf32>
      %256 = vector.broadcast %255 : vector<16x1xf32> to vector<16x128xf32>
      %257 = arith.mulf %252, %256 : vector<16x128xf32>
      %258 = vector.broadcast %237 : vector<1x128xf32> to vector<16x128xf32>
      %259 = arith.mulf %257, %258 : vector<16x128xf32>
      %260 = vector.broadcast %239 : vector<1x128xf32> to vector<16x128xf32>
      %261 = arith.addf %259, %260 : vector<16x128xf32>
      %262 = arith.truncf %261 : vector<16x128xf32> to vector<16x128xbf16>
      %c1_100 = arith.constant 1 : index
      %c0_101 = arith.constant 0 : index
      %c0_102 = arith.constant 0 : index
      %263 = vector.load %arg4[%c1_100, %c0_101, %c0_102] : memref<2x128x384xbf16, #tpu.memory_space<vmem>>, vector<1x128x384xbf16>
      %264 = vector.shape_cast %263 : vector<1x128x384xbf16> to vector<128x384xbf16>
      %cst_103 = arith.constant dense<0.000000e+00> : vector<16x384xf32>
      %265 = tpu.matmul %262, %264, %cst_103 {dimension_numbers = #tpu.dot_dimension_numbers<[1], [0], [0], [1], [0, 0, 1, 1], [], []>} : vector<16x128xbf16>, vector<128x384xbf16>, vector<16x384xf32> -> vector<16x384xf32>
      %c1_104 = arith.constant 1 : index
      %c0_105 = arith.constant 0 : index
      %c0_106 = arith.constant 0 : index
      %266 = vector.load %arg5[%c1_104, %c0_105, %c0_106] : memref<2x1x384xf32, #tpu.memory_space<vmem>>, vector<1x1x384xf32>
      %267 = vector.shape_cast %266 : vector<1x1x384xf32> to vector<1x384xf32>
      %268 = vector.broadcast %267 : vector<1x384xf32> to vector<16x384xf32>
      %269 = arith.addf %265, %268 : vector<16x384xf32>
      %270 = vector.extract_strided_slice %269 {offsets = [0, 0], sizes = [16, 128], strides = [1, 1]} : vector<16x384xf32> to vector<16x128xf32>
      %271 = vector.shape_cast %270 : vector<16x128xf32> to vector<2x8x128xf32>
      %272 = vector.extract_strided_slice %269 {offsets = [0, 128], sizes = [16, 128], strides = [1, 1]} : vector<16x384xf32> to vector<16x128xf32>
      %273 = vector.shape_cast %272 : vector<16x128xf32> to vector<2x8x128xf32>
      %274 = vector.extract_strided_slice %269 {offsets = [0, 256], sizes = [16, 128], strides = [1, 1]} : vector<16x384xf32> to vector<16x128xf32>
      %275 = vector.shape_cast %274 : vector<16x128xf32> to vector<2x8x128xf32>
      %c1_107 = arith.constant 1 : index
      %c0_108 = arith.constant 0 : index
      %c0_109 = arith.constant 0 : index
      %276 = vector.load %arg6[%c1_107, %c0_108, %c0_109] : memref<2x128x128xbf16, #tpu.memory_space<vmem>>, vector<1x128x128xbf16>
      %277 = vector.shape_cast %276 : vector<1x128x128xbf16> to vector<128x128xbf16>
      %cst_110 = arith.constant 0.000000e+00 : f32
      %278 = vector.broadcast %cst_110 : f32 to vector<16x128xf32>
      %279 = vector.extract_strided_slice %271 {offsets = [0, 0, 0], sizes = [2, 8, 32], strides = [1, 1, 1]} : vector<2x8x128xf32> to vector<2x8x32xf32>
      %280 = arith.truncf %279 : vector<2x8x32xf32> to vector<2x8x32xbf16>
      %281 = vector.extract_strided_slice %273 {offsets = [0, 0, 0], sizes = [2, 8, 32], strides = [1, 1, 1]} : vector<2x8x128xf32> to vector<2x8x32xf32>
      %282 = arith.truncf %281 : vector<2x8x32xf32> to vector<2x8x32xbf16>
      %283 = vector.extract_strided_slice %275 {offsets = [0, 0, 0], sizes = [2, 8, 32], strides = [1, 1, 1]} : vector<2x8x128xf32> to vector<2x8x32xf32>
      %284 = arith.truncf %283 : vector<2x8x32xf32> to vector<2x8x32xbf16>
      "tpu.trace_start"() <{level = 10 : i32, message = "bqd,bkd->bqk"}> : () -> ()
      %cst_111 = arith.constant dense<0.000000e+00> : vector<2x8x8xf32>
      %285 = tpu.matmul %280, %282, %cst_111 {dimension_numbers = #tpu.dot_dimension_numbers<[2], [2], [1], [1], [0, 0, 0, 1, 1, 1], [0], [0]>} : vector<2x8x32xbf16>, vector<2x8x32xbf16>, vector<2x8x8xf32> -> vector<2x8x8xf32>
      "tpu.trace_stop"() : () -> ()
      %cst_112 = arith.constant 0.176776692 : f32
      %286 = vector.broadcast %cst_112 : f32 to vector<2x8x8xf32>
      %287 = arith.mulf %285, %286 : vector<2x8x8xf32>
      %288 = vector.shape_cast %15 : vector<8x8xf32> to vector<1x8x8xf32>
      %289 = vector.broadcast %288 : vector<1x8x8xf32> to vector<2x8x8xf32>
      %290 = arith.addf %287, %289 : vector<2x8x8xf32>
      %cst_113 = arith.constant dense<0xFF800000> : vector<2x8xf32>
      %291 = vector.multi_reduction <maximumf>, %290, %cst_113 [2] : vector<2x8x8xf32> to vector<2x8xf32>
      %292 = vector.shape_cast %291 : vector<2x8xf32> to vector<2x8x1xf32>
      %293 = vector.broadcast %292 : vector<2x8x1xf32> to vector<2x8x8xf32>
      %294 = arith.subf %290, %293 : vector<2x8x8xf32>
      %295 = math.exp %294 : vector<2x8x8xf32>
      %cst_114 = arith.constant dense<0.000000e+00> : vector<2x8xf32>
      %296 = vector.multi_reduction <add>, %295, %cst_114 [2] : vector<2x8x8xf32> to vector<2x8xf32>
      %297 = vector.shape_cast %296 : vector<2x8xf32> to vector<2x8x1xf32>
      %298 = tpu.reciprocal %297 {approx = true} : vector<2x8x1xf32> -> vector<2x8x1xf32>
      %299 = vector.broadcast %298 : vector<2x8x1xf32> to vector<2x8x8xf32>
      %300 = arith.mulf %295, %299 : vector<2x8x8xf32>
      %301 = arith.truncf %300 : vector<2x8x8xf32> to vector<2x8x8xbf16>
      "tpu.trace_start"() <{level = 10 : i32, message = "bqk,bkd->bqd"}> : () -> ()
      %cst_115 = arith.constant dense<0.000000e+00> : vector<2x8x32xf32>
      %302 = tpu.matmul %301, %284, %cst_115 {dimension_numbers = #tpu.dot_dimension_numbers<[2], [1], [1], [2], [0, 0, 0, 1, 1, 2], [0], [0]>} : vector<2x8x8xbf16>, vector<2x8x32xbf16>, vector<2x8x32xf32> -> vector<2x8x32xf32>
      "tpu.trace_stop"() : () -> ()
      %303 = vector.shape_cast %302 : vector<2x8x32xf32> to vector<16x32xf32>
      %304 = arith.truncf %303 : vector<16x32xf32> to vector<16x32xbf16>
      %305 = vector.extract_strided_slice %277 {offsets = [0, 0], sizes = [32, 128], strides = [1, 1]} : vector<128x128xbf16> to vector<32x128xbf16>
      %cst_116 = arith.constant dense<0.000000e+00> : vector<16x128xf32>
      %306 = tpu.matmul %304, %305, %cst_116 {dimension_numbers = #tpu.dot_dimension_numbers<[1], [0], [0], [1], [0, 0, 1, 1], [], []>} : vector<16x32xbf16>, vector<32x128xbf16>, vector<16x128xf32> -> vector<16x128xf32>
      %307 = arith.addf %278, %306 : vector<16x128xf32>
      %308 = vector.extract_strided_slice %271 {offsets = [0, 0, 32], sizes = [2, 8, 32], strides = [1, 1, 1]} : vector<2x8x128xf32> to vector<2x8x32xf32>
      %309 = arith.truncf %308 : vector<2x8x32xf32> to vector<2x8x32xbf16>
      %310 = vector.extract_strided_slice %273 {offsets = [0, 0, 32], sizes = [2, 8, 32], strides = [1, 1, 1]} : vector<2x8x128xf32> to vector<2x8x32xf32>
      %311 = arith.truncf %310 : vector<2x8x32xf32> to vector<2x8x32xbf16>
      %312 = vector.extract_strided_slice %275 {offsets = [0, 0, 32], sizes = [2, 8, 32], strides = [1, 1, 1]} : vector<2x8x128xf32> to vector<2x8x32xf32>
      %313 = arith.truncf %312 : vector<2x8x32xf32> to vector<2x8x32xbf16>
      "tpu.trace_start"() <{level = 10 : i32, message = "bqd,bkd->bqk"}> : () -> ()
      %cst_117 = arith.constant dense<0.000000e+00> : vector<2x8x8xf32>
      %314 = tpu.matmul %309, %311, %cst_117 {dimension_numbers = #tpu.dot_dimension_numbers<[2], [2], [1], [1], [0, 0, 0, 1, 1, 1], [0], [0]>} : vector<2x8x32xbf16>, vector<2x8x32xbf16>, vector<2x8x8xf32> -> vector<2x8x8xf32>
      "tpu.trace_stop"() : () -> ()
      %cst_118 = arith.constant 0.176776692 : f32
      %315 = vector.broadcast %cst_118 : f32 to vector<2x8x8xf32>
      %316 = arith.mulf %314, %315 : vector<2x8x8xf32>
      %317 = vector.shape_cast %15 : vector<8x8xf32> to vector<1x8x8xf32>
      %318 = vector.broadcast %317 : vector<1x8x8xf32> to vector<2x8x8xf32>
      %319 = arith.addf %316, %318 : vector<2x8x8xf32>
      %cst_119 = arith.constant dense<0xFF800000> : vector<2x8xf32>
      %320 = vector.multi_reduction <maximumf>, %319, %cst_119 [2] : vector<2x8x8xf32> to vector<2x8xf32>
      %321 = vector.shape_cast %320 : vector<2x8xf32> to vector<2x8x1xf32>
      %322 = vector.broadcast %321 : vector<2x8x1xf32> to vector<2x8x8xf32>
      %323 = arith.subf %319, %322 : vector<2x8x8xf32>
      %324 = math.exp %323 : vector<2x8x8xf32>
      %cst_120 = arith.constant dense<0.000000e+00> : vector<2x8xf32>
      %325 = vector.multi_reduction <add>, %324, %cst_120 [2] : vector<2x8x8xf32> to vector<2x8xf32>
      %326 = vector.shape_cast %325 : vector<2x8xf32> to vector<2x8x1xf32>
      %327 = tpu.reciprocal %326 {approx = true} : vector<2x8x1xf32> -> vector<2x8x1xf32>
      %328 = vector.broadcast %327 : vector<2x8x1xf32> to vector<2x8x8xf32>
      %329 = arith.mulf %324, %328 : vector<2x8x8xf32>
      %330 = arith.truncf %329 : vector<2x8x8xf32> to vector<2x8x8xbf16>
      "tpu.trace_start"() <{level = 10 : i32, message = "bqk,bkd->bqd"}> : () -> ()
      %cst_121 = arith.constant dense<0.000000e+00> : vector<2x8x32xf32>
      %331 = tpu.matmul %330, %313, %cst_121 {dimension_numbers = #tpu.dot_dimension_numbers<[2], [1], [1], [2], [0, 0, 0, 1, 1, 2], [0], [0]>} : vector<2x8x8xbf16>, vector<2x8x32xbf16>, vector<2x8x32xf32> -> vector<2x8x32xf32>
      "tpu.trace_stop"() : () -> ()
      %332 = vector.shape_cast %331 : vector<2x8x32xf32> to vector<16x32xf32>
      %333 = arith.truncf %332 : vector<16x32xf32> to vector<16x32xbf16>
      %334 = vector.extract_strided_slice %277 {offsets = [32, 0], sizes = [32, 128], strides = [1, 1]} : vector<128x128xbf16> to vector<32x128xbf16>
      %cst_122 = arith.constant dense<0.000000e+00> : vector<16x128xf32>
      %335 = tpu.matmul %333, %334, %cst_122 {dimension_numbers = #tpu.dot_dimension_numbers<[1], [0], [0], [1], [0, 0, 1, 1], [], []>} : vector<16x32xbf16>, vector<32x128xbf16>, vector<16x128xf32> -> vector<16x128xf32>
      %336 = arith.addf %307, %335 : vector<16x128xf32>
      %337 = vector.extract_strided_slice %271 {offsets = [0, 0, 64], sizes = [2, 8, 32], strides = [1, 1, 1]} : vector<2x8x128xf32> to vector<2x8x32xf32>
      %338 = arith.truncf %337 : vector<2x8x32xf32> to vector<2x8x32xbf16>
      %339 = vector.extract_strided_slice %273 {offsets = [0, 0, 64], sizes = [2, 8, 32], strides = [1, 1, 1]} : vector<2x8x128xf32> to vector<2x8x32xf32>
      %340 = arith.truncf %339 : vector<2x8x32xf32> to vector<2x8x32xbf16>
      %341 = vector.extract_strided_slice %275 {offsets = [0, 0, 64], sizes = [2, 8, 32], strides = [1, 1, 1]} : vector<2x8x128xf32> to vector<2x8x32xf32>
      %342 = arith.truncf %341 : vector<2x8x32xf32> to vector<2x8x32xbf16>
      "tpu.trace_start"() <{level = 10 : i32, message = "bqd,bkd->bqk"}> : () -> ()
      %cst_123 = arith.constant dense<0.000000e+00> : vector<2x8x8xf32>
      %343 = tpu.matmul %338, %340, %cst_123 {dimension_numbers = #tpu.dot_dimension_numbers<[2], [2], [1], [1], [0, 0, 0, 1, 1, 1], [0], [0]>} : vector<2x8x32xbf16>, vector<2x8x32xbf16>, vector<2x8x8xf32> -> vector<2x8x8xf32>
      "tpu.trace_stop"() : () -> ()
      %cst_124 = arith.constant 0.176776692 : f32
      %344 = vector.broadcast %cst_124 : f32 to vector<2x8x8xf32>
      %345 = arith.mulf %343, %344 : vector<2x8x8xf32>
      %346 = vector.shape_cast %15 : vector<8x8xf32> to vector<1x8x8xf32>
      %347 = vector.broadcast %346 : vector<1x8x8xf32> to vector<2x8x8xf32>
      %348 = arith.addf %345, %347 : vector<2x8x8xf32>
      %cst_125 = arith.constant dense<0xFF800000> : vector<2x8xf32>
      %349 = vector.multi_reduction <maximumf>, %348, %cst_125 [2] : vector<2x8x8xf32> to vector<2x8xf32>
      %350 = vector.shape_cast %349 : vector<2x8xf32> to vector<2x8x1xf32>
      %351 = vector.broadcast %350 : vector<2x8x1xf32> to vector<2x8x8xf32>
      %352 = arith.subf %348, %351 : vector<2x8x8xf32>
      %353 = math.exp %352 : vector<2x8x8xf32>
      %cst_126 = arith.constant dense<0.000000e+00> : vector<2x8xf32>
      %354 = vector.multi_reduction <add>, %353, %cst_126 [2] : vector<2x8x8xf32> to vector<2x8xf32>
      %355 = vector.shape_cast %354 : vector<2x8xf32> to vector<2x8x1xf32>
      %356 = tpu.reciprocal %355 {approx = true} : vector<2x8x1xf32> -> vector<2x8x1xf32>
      %357 = vector.broadcast %356 : vector<2x8x1xf32> to vector<2x8x8xf32>
      %358 = arith.mulf %353, %357 : vector<2x8x8xf32>
      %359 = arith.truncf %358 : vector<2x8x8xf32> to vector<2x8x8xbf16>
      "tpu.trace_start"() <{level = 10 : i32, message = "bqk,bkd->bqd"}> : () -> ()
      %cst_127 = arith.constant dense<0.000000e+00> : vector<2x8x32xf32>
      %360 = tpu.matmul %359, %342, %cst_127 {dimension_numbers = #tpu.dot_dimension_numbers<[2], [1], [1], [2], [0, 0, 0, 1, 1, 2], [0], [0]>} : vector<2x8x8xbf16>, vector<2x8x32xbf16>, vector<2x8x32xf32> -> vector<2x8x32xf32>
      "tpu.trace_stop"() : () -> ()
      %361 = vector.shape_cast %360 : vector<2x8x32xf32> to vector<16x32xf32>
      %362 = arith.truncf %361 : vector<16x32xf32> to vector<16x32xbf16>
      %363 = vector.extract_strided_slice %277 {offsets = [64, 0], sizes = [32, 128], strides = [1, 1]} : vector<128x128xbf16> to vector<32x128xbf16>
      %cst_128 = arith.constant dense<0.000000e+00> : vector<16x128xf32>
      %364 = tpu.matmul %362, %363, %cst_128 {dimension_numbers = #tpu.dot_dimension_numbers<[1], [0], [0], [1], [0, 0, 1, 1], [], []>} : vector<16x32xbf16>, vector<32x128xbf16>, vector<16x128xf32> -> vector<16x128xf32>
      %365 = arith.addf %336, %364 : vector<16x128xf32>
      %366 = vector.extract_strided_slice %271 {offsets = [0, 0, 96], sizes = [2, 8, 32], strides = [1, 1, 1]} : vector<2x8x128xf32> to vector<2x8x32xf32>
      %367 = arith.truncf %366 : vector<2x8x32xf32> to vector<2x8x32xbf16>
      %368 = vector.extract_strided_slice %273 {offsets = [0, 0, 96], sizes = [2, 8, 32], strides = [1, 1, 1]} : vector<2x8x128xf32> to vector<2x8x32xf32>
      %369 = arith.truncf %368 : vector<2x8x32xf32> to vector<2x8x32xbf16>
      %370 = vector.extract_strided_slice %275 {offsets = [0, 0, 96], sizes = [2, 8, 32], strides = [1, 1, 1]} : vector<2x8x128xf32> to vector<2x8x32xf32>
      %371 = arith.truncf %370 : vector<2x8x32xf32> to vector<2x8x32xbf16>
      "tpu.trace_start"() <{level = 10 : i32, message = "bqd,bkd->bqk"}> : () -> ()
      %cst_129 = arith.constant dense<0.000000e+00> : vector<2x8x8xf32>
      %372 = tpu.matmul %367, %369, %cst_129 {dimension_numbers = #tpu.dot_dimension_numbers<[2], [2], [1], [1], [0, 0, 0, 1, 1, 1], [0], [0]>} : vector<2x8x32xbf16>, vector<2x8x32xbf16>, vector<2x8x8xf32> -> vector<2x8x8xf32>
      "tpu.trace_stop"() : () -> ()
      %cst_130 = arith.constant 0.176776692 : f32
      %373 = vector.broadcast %cst_130 : f32 to vector<2x8x8xf32>
      %374 = arith.mulf %372, %373 : vector<2x8x8xf32>
      %375 = vector.shape_cast %15 : vector<8x8xf32> to vector<1x8x8xf32>
      %376 = vector.broadcast %375 : vector<1x8x8xf32> to vector<2x8x8xf32>
      %377 = arith.addf %374, %376 : vector<2x8x8xf32>
      %cst_131 = arith.constant dense<0xFF800000> : vector<2x8xf32>
      %378 = vector.multi_reduction <maximumf>, %377, %cst_131 [2] : vector<2x8x8xf32> to vector<2x8xf32>
      %379 = vector.shape_cast %378 : vector<2x8xf32> to vector<2x8x1xf32>
      %380 = vector.broadcast %379 : vector<2x8x1xf32> to vector<2x8x8xf32>
      %381 = arith.subf %377, %380 : vector<2x8x8xf32>
      %382 = math.exp %381 : vector<2x8x8xf32>
      %cst_132 = arith.constant dense<0.000000e+00> : vector<2x8xf32>
      %383 = vector.multi_reduction <add>, %382, %cst_132 [2] : vector<2x8x8xf32> to vector<2x8xf32>
      %384 = vector.shape_cast %383 : vector<2x8xf32> to vector<2x8x1xf32>
      %385 = tpu.reciprocal %384 {approx = true} : vector<2x8x1xf32> -> vector<2x8x1xf32>
      %386 = vector.broadcast %385 : vector<2x8x1xf32> to vector<2x8x8xf32>
      %387 = arith.mulf %382, %386 : vector<2x8x8xf32>
      %388 = arith.truncf %387 : vector<2x8x8xf32> to vector<2x8x8xbf16>
      "tpu.trace_start"() <{level = 10 : i32, message = "bqk,bkd->bqd"}> : () -> ()
      %cst_133 = arith.constant dense<0.000000e+00> : vector<2x8x32xf32>
      %389 = tpu.matmul %388, %371, %cst_133 {dimension_numbers = #tpu.dot_dimension_numbers<[2], [1], [1], [2], [0, 0, 0, 1, 1, 2], [0], [0]>} : vector<2x8x8xbf16>, vector<2x8x32xbf16>, vector<2x8x32xf32> -> vector<2x8x32xf32>
      "tpu.trace_stop"() : () -> ()
      %390 = vector.shape_cast %389 : vector<2x8x32xf32> to vector<16x32xf32>
      %391 = arith.truncf %390 : vector<16x32xf32> to vector<16x32xbf16>
      %392 = vector.extract_strided_slice %277 {offsets = [96, 0], sizes = [32, 128], strides = [1, 1]} : vector<128x128xbf16> to vector<32x128xbf16>
      %cst_134 = arith.constant dense<0.000000e+00> : vector<16x128xf32>
      %393 = tpu.matmul %391, %392, %cst_134 {dimension_numbers = #tpu.dot_dimension_numbers<[1], [0], [0], [1], [0, 0, 1, 1], [], []>} : vector<16x32xbf16>, vector<32x128xbf16>, vector<16x128xf32> -> vector<16x128xf32>
      %394 = arith.addf %365, %393 : vector<16x128xf32>
      %395 = arith.addf %235, %394 : vector<16x128xf32>
      %c1_135 = arith.constant 1 : index
      %c0_136 = arith.constant 0 : index
      %c0_137 = arith.constant 0 : index
      %396 = vector.load %arg7[%c1_135, %c0_136, %c0_137] : memref<2x1x128xf32, #tpu.memory_space<vmem>>, vector<1x1x128xf32>
      %397 = vector.shape_cast %396 : vector<1x1x128xf32> to vector<1x128xf32>
      %398 = vector.broadcast %397 : vector<1x128xf32> to vector<16x128xf32>
      %399 = arith.addf %395, %398 : vector<16x128xf32>
      %c1_138 = arith.constant 1 : index
      %c0_139 = arith.constant 0 : index
      %c0_140 = arith.constant 0 : index
      %400 = vector.load %arg8[%c1_138, %c0_139, %c0_140] : memref<2x1x128xf32, #tpu.memory_space<vmem>>, vector<1x1x128xf32>
      %401 = vector.shape_cast %400 : vector<1x1x128xf32> to vector<1x128xf32>
      %c1_141 = arith.constant 1 : index
      %c0_142 = arith.constant 0 : index
      %c0_143 = arith.constant 0 : index
      %402 = vector.load %arg9[%c1_141, %c0_142, %c0_143] : memref<2x1x128xf32, #tpu.memory_space<vmem>>, vector<1x1x128xf32>
      %403 = vector.shape_cast %402 : vector<1x1x128xf32> to vector<1x128xf32>
      %cst_144 = arith.constant dense<0.000000e+00> : vector<16xf32>
      %404 = vector.multi_reduction <add>, %399, %cst_144 [1] : vector<16x128xf32> to vector<16xf32>
      %405 = vector.shape_cast %404 : vector<16xf32> to vector<16x1xf32>
      %cst_145 = arith.constant 1.280000e+02 : f32
      %406 = vector.broadcast %cst_145 : f32 to vector<16x1xf32>
      %407 = arith.divf %405, %406 : vector<16x1xf32>
      %408 = vector.broadcast %407 : vector<16x1xf32> to vector<16x128xf32>
      %409 = arith.subf %399, %408 : vector<16x128xf32>
      %410 = arith.mulf %409, %409 : vector<16x128xf32>
      %cst_146 = arith.constant dense<0.000000e+00> : vector<16xf32>
      %411 = vector.multi_reduction <add>, %410, %cst_146 [1] : vector<16x128xf32> to vector<16xf32>
      %412 = vector.shape_cast %411 : vector<16xf32> to vector<16x1xf32>
      %cst_147 = arith.constant 1.280000e+02 : f32
      %413 = vector.broadcast %cst_147 : f32 to vector<16x1xf32>
      %414 = arith.divf %412, %413 : vector<16x1xf32>
      %415 = vector.broadcast %407 : vector<16x1xf32> to vector<16x128xf32>
      %416 = arith.subf %399, %415 : vector<16x128xf32>
      %cst_148 = arith.constant 9.99999974E-6 : f32
      %417 = vector.broadcast %cst_148 : f32 to vector<16x1xf32>
      %418 = arith.addf %414, %417 : vector<16x1xf32>
      %419 = math.rsqrt %418 : vector<16x1xf32>
      %420 = vector.broadcast %419 : vector<16x1xf32> to vector<16x128xf32>
      %421 = arith.mulf %416, %420 : vector<16x128xf32>
      %422 = vector.broadcast %401 : vector<1x128xf32> to vector<16x128xf32>
      %423 = arith.mulf %421, %422 : vector<16x128xf32>
      %424 = vector.broadcast %403 : vector<1x128xf32> to vector<16x128xf32>
      %425 = arith.addf %423, %424 : vector<16x128xf32>
      %426 = arith.truncf %425 : vector<16x128xf32> to vector<16x128xbf16>
      %c1_149 = arith.constant 1 : index
      %c0_150 = arith.constant 0 : index
      %c0_151 = arith.constant 0 : index
      %427 = vector.load %arg10[%c1_149, %c0_150, %c0_151] : memref<2x128x512xbf16, #tpu.memory_space<vmem>>, vector<1x128x512xbf16>
      %428 = vector.shape_cast %427 : vector<1x128x512xbf16> to vector<128x512xbf16>
      %cst_152 = arith.constant dense<0.000000e+00> : vector<16x512xf32>
      %429 = tpu.matmul %426, %428, %cst_152 {dimension_numbers = #tpu.dot_dimension_numbers<[1], [0], [0], [1], [0, 0, 1, 1], [], []>} : vector<16x128xbf16>, vector<128x512xbf16>, vector<16x512xf32> -> vector<16x512xf32>
      %c1_153 = arith.constant 1 : index
      %c0_154 = arith.constant 0 : index
      %c0_155 = arith.constant 0 : index
      %430 = vector.load %arg11[%c1_153, %c0_154, %c0_155] : memref<2x1x512xf32, #tpu.memory_space<vmem>>, vector<1x1x512xf32>
      %431 = vector.shape_cast %430 : vector<1x1x512xf32> to vector<1x512xf32>
      %432 = vector.broadcast %431 : vector<1x512xf32> to vector<16x512xf32>
      %433 = arith.addf %429, %432 : vector<16x512xf32>
      %cst_156 = arith.constant 5.000000e-01 : f32
      %434 = vector.broadcast %cst_156 : f32 to vector<16x512xf32>
      %435 = arith.mulf %434, %433 : vector<16x512xf32>
      %cst_157 = arith.constant 4.471500e-02 : f32
      %436 = vector.broadcast %cst_157 : f32 to vector<16x512xf32>
      %437 = arith.mulf %436, %433 : vector<16x512xf32>
      %438 = arith.mulf %437, %433 : vector<16x512xf32>
      %439 = arith.mulf %438, %433 : vector<16x512xf32>
      %440 = arith.addf %433, %439 : vector<16x512xf32>
      %cst_158 = arith.constant 0.797884583 : f32
      %441 = vector.broadcast %cst_158 : f32 to vector<16x512xf32>
      %442 = arith.mulf %441, %440 : vector<16x512xf32>
      %443 = math.tanh %442 : vector<16x512xf32>
      %cst_159 = arith.constant 1.000000e+00 : f32
      %444 = vector.broadcast %cst_159 : f32 to vector<16x512xf32>
      %445 = arith.addf %444, %443 : vector<16x512xf32>
      %446 = arith.mulf %435, %445 : vector<16x512xf32>
      %447 = arith.truncf %446 : vector<16x512xf32> to vector<16x512xbf16>
      %c1_160 = arith.constant 1 : index
      %c0_161 = arith.constant 0 : index
      %c0_162 = arith.constant 0 : index
      %448 = vector.load %arg12[%c1_160, %c0_161, %c0_162] : memref<2x512x128xbf16, #tpu.memory_space<vmem>>, vector<1x512x128xbf16>
      %449 = vector.shape_cast %448 : vector<1x512x128xbf16> to vector<512x128xbf16>
      %cst_163 = arith.constant dense<0.000000e+00> : vector<16x128xf32>
      %450 = tpu.matmul %447, %449, %cst_163 {dimension_numbers = #tpu.dot_dimension_numbers<[1], [0], [0], [1], [0, 0, 1, 1], [], []>} : vector<16x512xbf16>, vector<512x128xbf16>, vector<16x128xf32> -> vector<16x128xf32>
      %c1_164 = arith.constant 1 : index
      %c0_165 = arith.constant 0 : index
      %c0_166 = arith.constant 0 : index
      %451 = vector.load %arg13[%c1_164, %c0_165, %c0_166] : memref<2x1x128xf32, #tpu.memory_space<vmem>>, vector<1x1x128xf32>
      %452 = vector.shape_cast %451 : vector<1x1x128xf32> to vector<1x128xf32>
      %453 = vector.broadcast %452 : vector<1x128xf32> to vector<16x128xf32>
      %454 = arith.addf %450, %453 : vector<16x128xf32>
      %455 = arith.addf %399, %454 : vector<16x128xf32>
      %c0_167 = arith.constant 0 : index
      %c0_168 = arith.constant 0 : index
      %456 = vector.load %arg14[%c0_167, %c0_168] : memref<1x128xf32, #tpu.memory_space<vmem>>, vector<1x128xf32>
      %c0_169 = arith.constant 0 : index
      %c0_170 = arith.constant 0 : index
      %457 = vector.load %arg15[%c0_169, %c0_170] : memref<1x128xf32, #tpu.memory_space<vmem>>, vector<1x128xf32>
      %cst_171 = arith.constant dense<0.000000e+00> : vector<16xf32>
      %458 = vector.multi_reduction <add>, %455, %cst_171 [1] : vector<16x128xf32> to vector<16xf32>
      %459 = vector.shape_cast %458 : vector<16xf32> to vector<16x1xf32>
      %cst_172 = arith.constant 1.280000e+02 : f32
      %460 = vector.broadcast %cst_172 : f32 to vector<16x1xf32>
      %461 = arith.divf %459, %460 : vector<16x1xf32>
      %462 = vector.broadcast %461 : vector<16x1xf32> to vector<16x128xf32>
      %463 = arith.subf %455, %462 : vector<16x128xf32>
      %464 = arith.mulf %463, %463 : vector<16x128xf32>
      %cst_173 = arith.constant dense<0.000000e+00> : vector<16xf32>
      %465 = vector.multi_reduction <add>, %464, %cst_173 [1] : vector<16x128xf32> to vector<16xf32>
      %466 = vector.shape_cast %465 : vector<16xf32> to vector<16x1xf32>
      %cst_174 = arith.constant 1.280000e+02 : f32
      %467 = vector.broadcast %cst_174 : f32 to vector<16x1xf32>
      %468 = arith.divf %466, %467 : vector<16x1xf32>
      %469 = vector.broadcast %461 : vector<16x1xf32> to vector<16x128xf32>
      %470 = arith.subf %455, %469 : vector<16x128xf32>
      %cst_175 = arith.constant 9.99999974E-6 : f32
      %471 = vector.broadcast %cst_175 : f32 to vector<16x1xf32>
      %472 = arith.addf %468, %471 : vector<16x1xf32>
      %473 = math.rsqrt %472 : vector<16x1xf32>
      %474 = vector.broadcast %473 : vector<16x1xf32> to vector<16x128xf32>
      %475 = arith.mulf %470, %474 : vector<16x128xf32>
      %476 = vector.broadcast %456 : vector<1x128xf32> to vector<16x128xf32>
      %477 = arith.mulf %475, %476 : vector<16x128xf32>
      %478 = vector.broadcast %457 : vector<1x128xf32> to vector<16x128xf32>
      %479 = arith.addf %477, %478 : vector<16x128xf32>
      %480 = arith.truncf %479 : vector<16x128xf32> to vector<16x128xbf16>
      %c0_176 = arith.constant 0 : index
      %c0_177 = arith.constant 0 : index
      %481 = vector.load %arg18[%c0_176, %c0_177] : memref<16x128xbf16, #tpu.memory_space<vmem>>, vector<16x128xbf16>
      tpu.vector_store %arg18[%c0_176, %c0_177], %480 {strides = array<i32>} : memref<16x128xbf16, #tpu.memory_space<vmem>>, vector<16x128xbf16>,
    } else {
    }
    %c0 = arith.constant 0 : index
    %c0_1 = arith.constant 0 : index
    %3 = vector.load %arg18[%c0, %c0_1] : memref<16x128xbf16, #tpu.memory_space<vmem>>, vector<16x128xbf16>
    %c0_2 = arith.constant 0 : index
    %c0_3 = arith.constant 0 : index
    %4 = vector.load %arg16[%c0_2, %c0_3] : memref<128x128xbf16, #tpu.memory_space<vmem>>, vector<128x128xbf16>
    %cst = arith.constant dense<0.000000e+00> : vector<16x128xf32>
    %5 = tpu.matmul %3, %4, %cst {dimension_numbers = #tpu.dot_dimension_numbers<[1], [0], [0], [1], [0, 0, 1, 1], [], []>} : vector<16x128xbf16>, vector<128x128xbf16>, vector<16x128xf32> -> vector<16x128xf32>
    %6 = vector.shape_cast %5 : vector<16x128xf32> to vector<2x8x128xf32>
    %c0_4 = arith.constant 0 : index
    %c0_5 = arith.constant 0 : index
    %c0_6 = arith.constant 0 : index
    %7 = vector.load %arg17[%c0_4, %c0_5, %c0_6] : memref<2x8x128xf32, #tpu.memory_space<vmem>>, vector<2x8x128xf32>
    tpu.vector_store %arg17[%c0_4, %c0_5, %c0_6], %6 {strides = array<i32>} : memref<2x8x128xf32, #tpu.memory_space<vmem>>, vector<2x8x128xf32>,
    return
  }
  func.func @transform_0(%arg0: i32) -> (i32, i32, i32) {
    %c0_i32 = arith.constant 0 : i32
    %c0_i32_0 = arith.constant 0 : i32
    %c0_i32_1 = arith.constant 0 : i32
    %c0_i32_2 = arith.constant 0 : i32
    return %c0_i32, %c0_i32_0, %c0_i32_1 : i32, i32, i32
  }
  func.func @transform_1(%arg0: i32) -> (i32, i32, i32) {
    %c0_i32 = arith.constant 0 : i32
    %c0_i32_0 = arith.constant 0 : i32
    %c0_i32_1 = arith.constant 0 : i32
    %c0_i32_2 = arith.constant 0 : i32
    return %c0_i32, %c0_i32_0, %c0_i32_1 : i32, i32, i32
  }
  func.func @transform_2(%arg0: i32) -> (i32, i32, i32) {
    %c0_i32 = arith.constant 0 : i32
    %c0_i32_0 = arith.constant 0 : i32
    %c0_i32_1 = arith.constant 0 : i32
    %c0_i32_2 = arith.constant 0 : i32
    return %c0_i32, %c0_i32_0, %c0_i32_1 : i32, i32, i32
  }
  func.func @transform_3(%arg0: i32) -> (i32, i32, i32) {
    %c0_i32 = arith.constant 0 : i32
    %c0_i32_0 = arith.constant 0 : i32
    %c0_i32_1 = arith.constant 0 : i32
    %c0_i32_2 = arith.constant 0 : i32
    return %c0_i32, %c0_i32_0, %c0_i32_1 : i32, i32, i32
  }
  func.func @transform_4(%arg0: i32) -> (i32, i32, i32) {
    %c0_i32 = arith.constant 0 : i32
    %c0_i32_0 = arith.constant 0 : i32
    %c0_i32_1 = arith.constant 0 : i32
    %c0_i32_2 = arith.constant 0 : i32
    return %c0_i32, %c0_i32_0, %c0_i32_1 : i32, i32, i32
  }
  func.func @transform_5(%arg0: i32) -> (i32, i32, i32) {
    %c0_i32 = arith.constant 0 : i32
    %c0_i32_0 = arith.constant 0 : i32
    %c0_i32_1 = arith.constant 0 : i32
    %c0_i32_2 = arith.constant 0 : i32
    return %c0_i32, %c0_i32_0, %c0_i32_1 : i32, i32, i32
  }
  func.func @transform_6(%arg0: i32) -> (i32, i32, i32) {
    %c0_i32 = arith.constant 0 : i32
    %c0_i32_0 = arith.constant 0 : i32
    %c0_i32_1 = arith.constant 0 : i32
    %c0_i32_2 = arith.constant 0 : i32
    return %c0_i32, %c0_i32_0, %c0_i32_1 : i32, i32, i32
  }
  func.func @transform_7(%arg0: i32) -> (i32, i32, i32) {
    %c0_i32 = arith.constant 0 : i32
    %c0_i32_0 = arith.constant 0 : i32
    %c0_i32_1 = arith.constant 0 : i32
    %c0_i32_2 = arith.constant 0 : i32
    return %c0_i32, %c0_i32_0, %c0_i32_1 : i32, i32, i32
  }
  func.func @transform_8(%arg0: i32) -> (i32, i32, i32) {
    %c0_i32 = arith.constant 0 : i32
    %c0_i32_0 = arith.constant 0 : i32
    %c0_i32_1 = arith.constant 0 : i32
    %c0_i32_2 = arith.constant 0 : i32
    return %c0_i32, %c0_i32_0, %c0_i32_1 : i32, i32, i32
  }
  func.func @transform_9(%arg0: i32) -> (i32, i32, i32) {
    %c0_i32 = arith.constant 0 : i32
    %c0_i32_0 = arith.constant 0 : i32
    %c0_i32_1 = arith.constant 0 : i32
    %c0_i32_2 = arith.constant 0 : i32
    return %c0_i32, %c0_i32_0, %c0_i32_1 : i32, i32, i32
  }
  func.func @transform_10(%arg0: i32) -> (i32, i32, i32) {
    %c0_i32 = arith.constant 0 : i32
    %c0_i32_0 = arith.constant 0 : i32
    %c0_i32_1 = arith.constant 0 : i32
    %c0_i32_2 = arith.constant 0 : i32
    return %c0_i32, %c0_i32_0, %c0_i32_1 : i32, i32, i32
  }
  func.func @transform_11(%arg0: i32) -> (i32, i32, i32) {
    %c0_i32 = arith.constant 0 : i32
    %c0_i32_0 = arith.constant 0 : i32
    %c0_i32_1 = arith.constant 0 : i32
    %c0_i32_2 = arith.constant 0 : i32
    return %c0_i32, %c0_i32_0, %c0_i32_1 : i32, i32, i32
  }
  func.func @transform_12(%arg0: i32) -> (i32, i32, i32) {
    %c0_i32 = arith.constant 0 : i32
    %c0_i32_0 = arith.constant 0 : i32
    %c0_i32_1 = arith.constant 0 : i32
    %c0_i32_2 = arith.constant 0 : i32
    return %c0_i32, %c0_i32_0, %c0_i32_1 : i32, i32, i32
  }
  func.func @transform_13(%arg0: i32) -> (i32, i32) {
    %c0_i32 = arith.constant 0 : i32
    %c0_i32_0 = arith.constant 0 : i32
    %c0_i32_1 = arith.constant 0 : i32
    return %c0_i32, %c0_i32_0 : i32, i32
  }
  func.func @transform_14(%arg0: i32) -> (i32, i32) {
    %c0_i32 = arith.constant 0 : i32
    %c0_i32_0 = arith.constant 0 : i32
    %c0_i32_1 = arith.constant 0 : i32
    return %c0_i32, %c0_i32_0 : i32, i32
  }
  func.func @transform_15(%arg0: i32) -> (i32, i32) {
    %c0_i32 = arith.constant 0 : i32
    %c0_i32_0 = arith.constant 0 : i32
    return %c0_i32, %arg0 : i32, i32
  }
  func.func @transform_16(%arg0: i32) -> (i32, i32, i32) {
    %c0_i32 = arith.constant 0 : i32
    %c0_i32_0 = arith.constant 0 : i32
    %c0_i32_1 = arith.constant 0 : i32
    return %c0_i32, %c0_i32_0, %arg0 : i32, i32, i32
  }
}

</mosaic_0001>

<bundles_post_ra>
// kernel: gpt_forward.1
= control target key start
LH: loop header
LB: loop body
LE: loop exit
PB: predicated region body
PF: predicated region fallthrough
CT: control target
= control target key end

     0   :  { %s8237_s0 = inlined_call_operand.vmem [shape: f32[2,8,128], index: 0, kind: input, shape index: {}]   ;;  %s8238_s1 = inlined_call_operand.vmem [shape: f32[2,1,128], index: 1, kind: input, shape index: {}]   ;;  %s8239_s2 = inlined_call_operand.vmem [shape: f32[2,1,128], index: 2, kind: input, shape index: {}]   ;;  %s8240_s3 = inlined_call_operand.vmem [shape: bf16[2,128,384], index: 3, kind: input, shape index: {}]   ;;  %s8241_s4 = inlined_call_operand.vmem [shape: f32[2,1,384], index: 4, kind: input, shape index: {}]   ;;  %s8242_s5 = inlined_call_operand.vmem [shape: bf16[2,128,128], index: 5, kind: input, shape index: {}]   ;;  %s8243_s6 = inlined_call_operand.vmem [shape: f32[2,1,128], index: 6, kind: input, shape index: {}]   ;;  %s8244_s7 = inlined_call_operand.vmem [shape: f32[2,1,128], index: 7, kind: input, shape index: {}]   ;;  %s8245_s8 = inlined_call_operand.vmem [shape: f32[2,1,128], index: 8, kind: input, shape index: {}]   ;;  %s8246_s9 = inlined_call_operand.vmem [shape: bf16[2,128,512], index: 9, kind: input, shape index: {}]   ;;  %s8247_s10 = inlined_call_operand.vmem [shape: f32[2,1,512], index: 10, kind: input, shape index: {}]   ;;  %s8248_s11 = inlined_call_operand.vmem [shape: bf16[2,512,128], index: 11, kind: input, shape index: {}]   ;;  %s8249_s12 = inlined_call_operand.vmem [shape: f32[2,1,128], index: 12, kind: input, shape index: {}]   ;;  %s8250_s13 = inlined_call_operand.vmem [shape: f32[1,128], index: 13, kind: input, shape index: {}]   ;;  %s8251_s14 = inlined_call_operand.vmem [shape: f32[1,128], index: 14, kind: input, shape index: {}]   ;;  %s8252_s15 = inlined_call_operand.vmem [shape: bf16[128,256], index: 15, kind: input, shape index: {}]   ;;  %s8253_s16 = inlined_call_operand.hbm [shape: f32[2,8,256], index: 16, kind: output, shape index: {}]  }
   0x1   :  { %8270 = sst [smem:[#allocation14_spill]] %s8237_s0 }
   0x2   :  { %8271 = sst [smem:[#allocation15_spill]] %s8252_s15 }
   0x3   :  { %8272 = sst [smem:[#allocation16_spill]] %s8253_s16 }
   0x4   :  { %21 = vsyncpa [#allocation5], 0 }
   0x5   :  { %23 = vsyncpa [#allocation5 + $0x1], 0  ;;  %s6866_s21 = smov 0   ;;  %s6868_s22 = smov 0  }
   0x6   :  { %s6870_s23 = smov 0   ;;  %s6872_s24 = smov 0  }
   0x7 LB: > { %8273 = sst [smem:[#allocation7_spill]] %s6754_s21  ;;  %s6887_s25 = sadd.s32 4294967295, %s6766_s24   ;;  %s6766_s24 = sphi %s6872_s24, %s8291_s24   ;;  %s6762_s23 = sphi %s6870_s23, %s8294_s23   ;;  %s6758_s22 = sphi %s6868_s22, %s8293_s22   ;;  %s6754_s21 = sphi %s6866_s21, %s8292_s21  }
   0x8   : > { %8274 = sst [smem:[#allocation8_spill]] %s6758_s22  ;;  %s5340_s26 = sadd.s32 4294967294, %s6766_s24  }
   0x9   : > { %8275 = sst [smem:[#allocation9_spill]] %s6762_s23  ;;  %s6891_s27 = sadd.s32 1, %s6766_s24  }
   0xa   : > { %8276 = sst [smem:[#allocation10_spill]] %s6766_s24  ;;  %s351_s28 = sadd.s32 1, %s6762_s23 }
   0xb   : > { %8277 = sst [smem:[#allocation11_spill]] %s6891_s27  ;;  %s348_s29 = ssub.s32 %s6766_s24, %s6891_s27 }
   0xc   : > { %p358_p0 = scmp.ne.s32.totalorder %s6762_s23, %s6758_s22  ;;  %p349_p1 = scmp.eq.s32.totalorder %s348_s29, 0 }
   0xd   : > { %p359_p2 = scmp.eq.s32.totalorder %s6766_s24, 0  ;;  %p388_p3 = scmp.eq.s32.totalorder %s6887_s25, 1 }
   0xe   : > { %p393_p4 = scmp.ne.s32.totalorder %s6758_s22, %s6754_s21  ;;  %p394_p7 = scmp.eq.s32.totalorder %s5340_s26, 1 }
   0xf   : > { %s6903_s30 = scalar_select %p349_p1, %s6762_s23, %s351_s28  }
  0x10   : > { %p360_p5 = por %p359_p2, %p358_p0  ;;  %p6905_p6 = por %p388_p3, %p358_p0 }
  0x11   : > { %8278 = sst [smem:[#allocation12_spill]] %s6903_s30  ;;  %p6909_p8 = por %p394_p7, %p393_p4 }
  0x12   : > { %p5342_p9 = scmp.ge.s32.totalorder %s6766_s24, 2 }
  0x13   : > { %s8280_s17 = scalar_select %p6909_p8, 1, 0 }
  0x14   : > { %455 = sbr.rel (%p5342_p9) target bundleno = 45 (0x2d), region = 76 }
  0x15   : > { %8281 = sst [smem:[#allocation13_spill]] %s8280_s17 }
  0x19   : > { %458 = sbr.rel (!%p360_p5) target bundleno = 45 (0x2d), region = 80  ;;  %s460_s18 = sand.u32 (%p360_p5), 1, %s6762_s23  }
  0x1a   : > { %s5344_s19 = sshll.u32 (%p360_p5), %s6766_s24, 2  ;;  %s5343_s20 = sshll.u32 (%p360_p5), %s460_s18, 6 }
  0x1b   : > { %s8282_s15 = sld [smem:[#allocation15_spill]] (%p360_p5)  ;;  %s462_s26 = scalar_lea.vmem (%p360_p5), [#allocation3], %s5343_s20 }
  0x21   : > { %s6921_s30 = scalar_lea.vmem %s8282_s15, %s5344_s19 }
  0x22   : > { %v481_v0 = vld [vmem:[%s6921_s30] sm:$0xf]  ;;  %v483_v1 = vld [vmem:[%s6921_s30 + $0x8] sm:$0xf]  ;;  %v485_v2 = vld [vmem:[%s6921_s30 + $0x10] sm:$0xf] }
  0x23   : > { %482 = vst [vmem:[%s462_s26] sm:$0xf] %v481_v0  ;;  %484 = vst [vmem:[%s462_s26 + $0x4] sm:$0xf] %v483_v1  ;;  %v487_v3 = vld [vmem:[%s6921_s30 + $0x18] sm:$0xf] }
  0x24   : > { %v489_v4 = vld [vmem:[%s6921_s30 + $0x20] sm:$0xf]  ;;  %486 = vst [vmem:[%s462_s26 + $0x8] sm:$0xf] %v485_v2  ;;  %488 = vst [vmem:[%s462_s26 + $0xc] sm:$0xf] %v487_v3 }
  0x25   : > { %490 = vst [vmem:[%s462_s26 + $0x10] sm:$0xf] %v489_v4  ;;  %v491_v5 = vld [vmem:[%s6921_s30 + $0x28] sm:$0xf]  ;;  %v493_v6 = vld [vmem:[%s6921_s30 + $0x30] sm:$0xf] }
  0x26   : > { %v495_v7 = vld [vmem:[%s6921_s30 + $0x38] sm:$0xf]  ;;  %492 = vst [vmem:[%s462_s26 + $0x14] sm:$0xf] %v491_v5  ;;  %494 = vst [vmem:[%s462_s26 + $0x18] sm:$0xf] %v493_v6 }
  0x27   : > { %496 = vst [vmem:[%s462_s26 + $0x1c] sm:$0xf] %v495_v7  ;;  %v497_v8 = vld [vmem:[%s6921_s30 + $0x40] sm:$0xf]  ;;  %v499_v9 = vld [vmem:[%s6921_s30 + $0x48] sm:$0xf] }
  0x28   : > { %v501_v10 = vld [vmem:[%s6921_s30 + $0x50] sm:$0xf]  ;;  %498 = vst [vmem:[%s462_s26 + $0x20] sm:$0xf] %v497_v8  ;;  %500 = vst [vmem:[%s462_s26 + $0x24] sm:$0xf] %v499_v9 }
  0x29   : > { %502 = vst [vmem:[%s462_s26 + $0x28] sm:$0xf] %v501_v10  ;;  %v503_v11 = vld [vmem:[%s6921_s30 + $0x58] sm:$0xf]  ;;  %v505_v12 = vld [vmem:[%s6921_s30 + $0x60] sm:$0xf] }
  0x2a   : > { %v507_v13 = vld [vmem:[%s6921_s30 + $0x68] sm:$0xf]  ;;  %504 = vst [vmem:[%s462_s26 + $0x2c] sm:$0xf] %v503_v11  ;;  %506 = vst [vmem:[%s462_s26 + $0x30] sm:$0xf] %v505_v12 }
  0x2b   : > { %508 = vst [vmem:[%s462_s26 + $0x34] sm:$0xf] %v507_v13  ;;  %v509_v14 = vld [vmem:[%s6921_s30 + $0x70] sm:$0xf]  ;;  %v511_v15 = vld [vmem:[%s6921_s30 + $0x78] sm:$0xf] }
  0x2c   : > { %510 = vst [vmem:[%s462_s26 + $0x38] sm:$0xf] %v509_v14  ;;  %512 = vst [vmem:[%s462_s26 + $0x3c] sm:$0xf] %v511_v15 }
  0x2d PF: > { %p5345_p10 = scmp.ge.s32.totalorder %s6766_s24, 1  ;;  %p567_p11 = scmp.lt.s32.totalorder %s6766_s24, 3 }
  0x2f   : > { %p568_p12 = pnand %p5345_p10, %p567_p11 }
  0x30   : > { %s6942_s18 = sand.u32 (!%p568_p12), 1, %s6758_s22   ;;  %p5348_p13 = scmp.ne.s32.totalorder (!%p568_p12), %s6887_s25, 0 }
  0x31   : > { %571 = sbr.rel (%p568_p12) target bundleno = 8866 (0x22a2), region = 121  ;;  %s5346_s19 = sshll.u32 (!%p568_p12), %s6942_s18, 6 }
  0x32   : > { %s5347_s20 = sshll.u32 (!%p568_p12), %s6942_s18, 4  ;;  %s6946_s28 = scalar_lea.vmem (!%p568_p12), [#allocation3], %s5346_s19 }
  0x33   : > { %s6948_s30 = scalar_lea.vmem (!%p568_p12), [#allocation4], %s5347_s20 }
  0x36   : > { %627 = sbr.rel (%p5348_p13) target bundleno = 8620 (0x21ac), region = 129  ;;  %s8283_s15 = sld [smem:[#allocation14_spill]] (!%p5348_p13) }
  0x37   : > { %s8266_s21 = smov (!%p5348_p13), 96   ;;  %s8264_s22 = smov (!%p5348_p13), 64  }
  0x38   : > { %s8262_s23 = smov (!%p5348_p13), 32   ;;  %s8284_s20 = smov (!%p5348_p13), 96  }
  0x39   : > { %s8285_s29 = smov (!%p5348_p13), 64   ;;  %s8286_s26 = smov (!%p5348_p13), 32  }
  0x3b   : > { %v6339_v18 = vld [vmem:[%s8240_s3 + $0xac] ss:$12 sps:$4 sm:$0xff]   ;;  %v6341_v19 = vld [vmem:[%s8240_s3 + $0xa8] ss:$12 sps:$4 sm:$0xff]   ;;  %v6768_v20 = vmov 0.0   ;;  %v6769_v43 = vmov 0   ;;  %v630_v5 = vlaneseq }
  0x3c   : > { %v628_v16 = vld [vmem:[%s8283_s15] sm:$0xff]  ;;  %v629_v17 = vld [vmem:[%s8283_s15 + $0x8] sm:$0xff]  ;;  %5972 = vmatprep.subr.bf16.mxu1 %v6768_v20  ;;  %v6342_v21 = vld [vmem:[%s8240_s3 + $0xb0] ss:$12 sps:$4 sm:$0xff]   ;;  %855 = vmatprep.subr.bf16.mxu0 %v6339_v18  ;;  %vm6770_vm0 = vmmov 0   ;;  %vm961_vm1 = vcmask 261120  }
  0x3d   : > { %638 = vadd.xlane.f32.xlu0 %v628_v16  ;;  %856 = vmatpush1.bf16.msra.mxu0 %v6341_v19  ;;  %v6343_v30 = vld [vmem:[%s8240_s3 + $0x94] ss:$12 sps:$4 sm:$0xff]   ;;  %v6345_v31 = vld [vmem:[%s8240_s3 + $0x90] ss:$12 sps:$4 sm:$0xff]   ;;  %v6346_v32 = vld [vmem:[%s8240_s3 + $0x98] ss:$12 sps:$4 sm:$0xff]  }
  0x3e   : > { %5973 = vmatpush3.bf16.msra.mxu1 %v6342_v21  ;;  %857 = vmatprep.subr.bf16.mxu0 %v6343_v30  ;;  %v6347_v33 = vld [vmem:[%s8240_s3 + $0x7c] ss:$12 sps:$4 sm:$0xff]   ;;  %v6349_v34 = vld [vmem:[%s8240_s3 + $0x78] ss:$12 sps:$4 sm:$0xff]   ;;  %v6350_v35 = vld [vmem:[%s8240_s3 + $0x80] ss:$12 sps:$4 sm:$0xff]  }
  0x3f   : > { %5974 = vmatprep.subr.bf16.mxu1 %v6768_v20  ;;  %v6351_v36 = vld [vmem:[%s8240_s3 + $0x64] ss:$12 sps:$4 sm:$0xff]   ;;  %v6353_v37 = vld [vmem:[%s8240_s3 + $0x60] ss:$12 sps:$4 sm:$0xff]   ;;  %v6354_v38 = vld [vmem:[%s8240_s3 + $0x68] ss:$12 sps:$4 sm:$0xff]   ;;  %887 = vmatprep.mubr.bf16.mxu0 %v6769_v43 }
  0x40   : > { %v6355_v39 = vld [vmem:[%s8240_s3 + $0x4c] ss:$12 sps:$4 sm:$0xff]   ;;  %v6357_v40 = vld [vmem:[%s8240_s3 + $0x48] ss:$12 sps:$4 sm:$0xff]   ;;  %v6358_v41 = vld [vmem:[%s8240_s3 + $0x50] ss:$12 sps:$4 sm:$0xff]   ;;  %5988 = vmatprep.mubr.msk.bf16.mxu1 %vm6770_vm0, %v6768_v20 }
  0x41   : > { %640 = vadd.xlane.f32.xlu0 %v629_v17  ;;  %858 = vmatpush1.bf16.msra.mxu0 %v6345_v31  ;;  %v6359_v42 = vld [vmem:[%s8240_s3 + $0x34] ss:$12 sps:$4 sm:$0xff]   ;;  %v6361_v44 = vld [vmem:[%s8240_s3 + $0x30] ss:$12 sps:$4 sm:$0xff]   ;;  %v6362_v45 = vld [vmem:[%s8240_s3 + $0x38] ss:$12 sps:$4 sm:$0xff]  }
  0x42   : > { %5975 = vmatpush3.bf16.msra.mxu1 %v6346_v32  ;;  %859 = vmatprep.subr.bf16.mxu0 %v6347_v33  ;;  %v6363_v46 = vld [vmem:[%s8240_s3 + $0x1c] ss:$12 sps:$4 sm:$0xff]   ;;  %v6365_v47 = vld [vmem:[%s8240_s3 + $0x18] ss:$12 sps:$4 sm:$0xff]   ;;  %v6366_v48 = vld [vmem:[%s8240_s3 + $0x20] ss:$12 sps:$4 sm:$0xff]  }
  0x43   : > { %5976 = vmatprep.subr.bf16.mxu1 %v6768_v20  ;;  %v6367_v49 = vld [vmem:[%s8240_s3 + $0x4] ss:$12 sps:$4 sm:$0xff]   ;;  %v6369_v50 = vld [vmem:[%s8240_s3] ss:$12 sps:$4 sm:$0xff]   ;;  %v6370_v51 = vld [vmem:[%s8240_s3 + $0x8] ss:$12 sps:$4 sm:$0xff]  }
  0x44   : > { %v5349_v60 = vld [vmem:[%s8238_s1] ss:$0 sm:$0xff]  ;;  %v7062_v6 = vshrl.u32 %v630_v5, 7  ;;  %vm1086_vm2 = vcmask 1043456   ;;  %vm1058_vm4 = vcmask 64512  }
  0x45   : > { %860 = vmatpush1.bf16.msra.mxu0 %v6349_v34  ;;  %v5350_v0 = vld [vmem:[%s8239_s2] ss:$0 sm:$0xff] }
  0x46   : > { %5977 = vmatpush3.bf16.msra.mxu1 %v6350_v35  ;;  %861 = vmatprep.subr.bf16.mxu0 %v6351_v36  ;;  %v7065_v7 = vsub.s32 1, %v7062_v6  ;;  %v710_v8 = vld [vmem:[%s8241_s4] sm:$0x7]  ;;  %v7071_v9 = vsub.s32 2, %v7062_v6  ;;  %v7075_v13 = vsub.s32 0, %v7062_v6 }
  0x47   : > { %5978 = vmatprep.subr.bf16.mxu1 %v6768_v20 }
  0x48   : > { %v719_v10 = vrot.slane %v710_v8, %v7065_v7  ;;  %v715_v21 = vrot.slane %v710_v8, %v7075_v13 }
  0x49   : > { %862 = vmatpush1.bf16.msra.mxu0 %v6353_v37 }
  0x4a   : > { %5979 = vmatpush3.bf16.msra.mxu1 %v6354_v38  ;;  %863 = vmatprep.subr.bf16.mxu0 %v6355_v39  ;;  %v633_v39 = vand.u32 127, %v630_v5 }
  0x4b   : > { %5980 = vmatprep.subr.bf16.mxu1 %v6768_v20 }
  0x4c   : > { %vm634_vm3 = vcmp.ge.s32.totalorder %v7062_v6, %v633_v39 }
  0x4d   : > { %864 = vmatpush1.bf16.msra.mxu0 %v6357_v40  ;;  %v6771_v40 = vmov -1e+30  }
  0x4e   : > { %5981 = vmatpush3.bf16.msra.mxu1 %v6358_v41  ;;  %865 = vmatprep.subr.bf16.mxu0 %v6359_v42  ;;  %v7112_v41 = vsel %vm634_vm3, 0.0, %v6771_v40 }
  0x4f   : > { %5982 = vmatprep.subr.bf16.mxu1 %v6768_v20 }
  0x51   : > { %866 = vmatpush1.bf16.msra.mxu0 %v6361_v44 }
  0x52   : > { %5983 = vmatpush3.bf16.msra.mxu1 %v6362_v45  ;;  %867 = vmatprep.subr.bf16.mxu0 %v6363_v46 }
  0x53   : > { %5984 = vmatprep.subr.bf16.mxu1 %v6768_v20 }
  0x55   : > { %868 = vmatpush1.bf16.msra.mxu0 %v6365_v47 }
  0x56   : > { %5985 = vmatpush3.bf16.msra.mxu1 %v6366_v48  ;;  %869 = vmatprep.subr.bf16.mxu0 %v6367_v49 }
  0x57   : > { %5986 = vmatprep.subr.bf16.mxu1 %v6768_v20 }
  0x59   : > { %870 = vmatpush1.bf16.msra.mxu0 %v6369_v50 }
  0x5a   : > { %5987 = vmatpush3.bf16.msra.mxu1 %v6370_v51  ;;  %5992 = vmatprep.subr.bf16.mxu0 %v6768_v20 }
  0x5b   : > { %5998 = vmatprep.subr.bf16.mxu1 %v6768_v20 }
  0xc6   : > { %v639_v22 = vpop.xlane.xlu0 %638 }
  0xc7   : > { %v643_v23 = vmul.f32 0.0078125, %v639_v22 }
  0xc9   : > { %v6968_v24 = vsub.f32 %v628_v16, %v643_v23  ;;  %v723_v16 = vrot.slane %v710_v8, %v7071_v9 }
  0xca   : > { %v641_v25 = vpop.xlane.xlu0 %640 }
  0xcb   : > { %v644_v26 = vmul.f32 0.0078125, %v641_v25  ;;  %v647_v27 = vmul.f32 %v6968_v24, %v6968_v24 }
  0xcd   : > { %v6972_v28 = vsub.f32 %v629_v17, %v644_v26  ;;  %649 = vadd.xlane.f32.xlu1 %v647_v27 }
  0xcf   : > { %v648_v29 = vmul.f32 %v6972_v28, %v6972_v28 }
  0xd1   : > { %651 = vadd.xlane.f32.xlu1 %v648_v29 }
 0x156   : > { %v650_v52 = vpop.xlane.xlu1 %649 }
 0x157   : > { %v653_v53 = vmul.f32 0.0078125, %v650_v52 }
 0x159   : > { %v655_v54 = vadd.f32 1e-05, %v653_v53 }
 0x15a   : > { %v652_v55 = vpop.xlane.xlu1 %651 }
 0x15b   : > { %6579 = vrsqrt.f32 %v655_v54  ;;  %v654_v56 = vmul.f32 0.0078125, %v652_v55 }
 0x15d   : > { %v656_v57 = vadd.f32 1e-05, %v654_v56 }
 0x15f   : > { %6581 = vrsqrt.f32 %v656_v57 }
 0x168   : > { %v6580_v58 = vpop.eup %6579 }
 0x169   : > { %v659_v59 = vmul.f32 %v6580_v58, %v6968_v24 }
 0x16b   : > { %v667_v63 = vmul.f32 %v5349_v60, %v659_v59 }
 0x16c   : > { %v6582_v61 = vpop.eup %6581 }
 0x16d   : > { %v660_v62 = vmul.f32 %v6582_v61, %v6972_v28  ;;  %v675_v2 = vadd.f32 %v5350_v0, %v667_v63 }
 0x16f   : > { %v668_v1 = vmul.f32 %v5349_v60, %v660_v62 }
 0x171   : > { %v676_v3 = vadd.f32 %v5350_v0, %v668_v1 }
 0x173   : > { %v677_v4 = vpack.c.bf16 %v676_v3, %v675_v2 }
 0x175   : > { %888 = vmatmul.mubr.bf16.vlgmr.msra.gmra.mxu0 %v677_v4  ;;  %5989 = vmatmul.mubr.bf16.vlgmr.msra.gmra.mxu1 %v677_v4 }
 0x176   : > { %5994 = vmatprep.mubr.msk.bf16.mxu0 %vm6770_vm0, %v6768_v20  ;;  %6000 = vmatprep.mubr.msk.bf16.mxu1 %vm6770_vm0, %v6768_v20 }
 0x235   : > { %v889_v11 = vpop.f32.mrf.mxu0  ;;  %v932_v12 = vpop.f32.mrf.mxu1 }
 0x236   : > { %v933_v25 = vadd.f32 %v932_v12, %v723_v16  ;;  %v890_v28 = vadd.f32 %v889_v11, %v715_v21 }
 0x237   : > { %v891_v14 = vpop.f32.mrf.mxu0  ;;  %v5990_v15 = vpop.f32.mrf.mxu1 }
 0x238   : > { %v892_v17 = vadd.f32 %v891_v14, %v719_v10  ;;  %v7086_v30 = vpack.c.bf16 %v933_v25, %v933_v25  ;;  %v7090_v33 = vpack.c.bf16 %v890_v28, %v890_v28 }
 0x239   : > { %v893_v18 = vpop.f32.mrf.mxu0  ;;  %v935_v19 = vpop.f32.mrf.mxu1 }
 0x23a   : > { %v7079_v22 = vpack.c.bf16 %v892_v17, %v892_v17  ;;  %v936_v31 = vadd.f32 %v935_v19, %v723_v16  ;;  %v894_v34 = vadd.f32 %v893_v18, %v715_v21  ;;  %v1088_v36 = vsel %vm1086_vm2, %v7086_v30, 0 }
 0x23b   : > { %v895_v23 = vpop.f32.mrf.mxu0  ;;  %v5991_v24 = vpop.f32.mrf.mxu1 }
 0x23c   : > { %v896_v26 = vadd.f32 %v895_v23, %v719_v10  ;;  %v966_v27 = vsel %vm961_vm1, %v7079_v22, 0  ;;  %v7093_v35 = vpack.c.bf16 %v936_v31, %v936_v31  ;;  %v7101_v37 = vpack.c.bf16 %v894_v34, %v894_v34 }
 0x23d   : > { %5993 = vmatpush3.bf16.xpose.msra.mxu0 %v966_v27 }
 0x23e   : > { %v7083_v29 = vpack.c.bf16 %v896_v26, %v896_v26  ;;  %6004 = vmatprep.subr.bf16.mxu0 %v6768_v20  ;;  %v1134_v38 = vsel %vm1086_vm2, %v7093_v35, 0 }
 0x240   : > { %v1012_v32 = vsel %vm961_vm1, %v7083_v29, 0 }
 0x241   : > { %5999 = vmatpush3.bf16.xpose.msra.mxu1 %v1012_v32 }
 0x242   : > { %6010 = vmatprep.subr.bf16.mxu1 %v6768_v20 }
 0x244   : > { %5995 = vmatmul.mubr.msk.bf16.vlgmr.msra.gmra.mxu0 %vm961_vm1, %v7090_v33 }
 0x245   : > { %6005 = vmatpush3.bf16.msra.mxu0 %v1088_v36  ;;  %6006 = vmatprep.mubr.msk.bf16.mxu0 %vm6770_vm0, %v6768_v20 }
 0x246   : > { %6016 = vmatprep.subr.bf16.mxu0 %v6768_v20 }
 0x248   : > { %6001 = vmatmul.mubr.msk.bf16.vlgmr.msra.gmra.mxu1 %vm961_vm1, %v7101_v37 }
 0x249   : > { %6011 = vmatpush3.bf16.msra.mxu1 %v1134_v38  ;;  %6012 = vmatprep.mubr.msk.bf16.mxu1 %vm6770_vm0, %v6768_v20 }
 0x24a   : > { %6022 = vmatprep.subr.bf16.mxu1 %v6768_v20 }
 0x304   : > { %v1002_v42 = vpop.f32.mrf.mxu0 }
 0x305   : > { %v1054_v44 = vmul.f32 0.17677669, %v1002_v42 }
 0x306   : > { %v5996_v45 = vpop.f32.mrf.mxu0 }
 0x307   : > { %v1056_v46 = vadd.f32 %v1054_v44, %v7112_v41 }
 0x308   : > { %v1005_v47 = vpop.f32.mrf.mxu0  ;;  %v1048_v48 = vpop.f32.mrf.mxu1 }
 0x309   : > { %v1055_v49 = vmul.f32 0.17677669, %v1048_v48  ;;  %v1059_v50 = vsel %vm1058_vm4, %v1056_v46, -inf }
 0x30a   : > { %v6002_v51 = vpop.f32.mrf.mxu1  ;;  %1060 = vmax.xlane.f32.xlu0 %v1059_v50  ;;  %v5997_v52 = vpop.f32.mrf.mxu0 }
 0x30b   : > { %v1057_v53 = vadd.f32 %v1055_v49, %v7112_v41 }
 0x30c   : > { %v1051_v54 = vpop.f32.mrf.mxu1 }
 0x30d   : > { %v1062_v55 = vsel %vm1058_vm4, %v1057_v53, -inf }
 0x30e   : > { %1063 = vmax.xlane.f32.xlu1 %v1062_v55  ;;  %v6003_v56 = vpop.f32.mrf.mxu1 }
 0x31f   : > { %1233 = vrot.lane.b32.xlu1 %v7083_v29, %s8266_s21 }
 0x393   : > { %v1061_v57 = vpop.xlane.xlu0 %1060 }
 0x394   : > { %v1065_v58 = vsub.f32 %v1056_v46, %v1061_v57 }
 0x396   : > { %v1067_v59 = vmul.f32 1.442695, %v1065_v58 }
 0x397   : > { %v1064_v60 = vpop.xlane.xlu1 %1063 }
 0x398   : > { %6583 = vpow2.f32 %v1067_v59  ;;  %v1066_v61 = vsub.f32 %v1057_v53, %v1064_v60 }
 0x39a   : > { %v1069_v62 = vmul.f32 1.442695, %v1066_v61 }
 0x39b   : > { %v1234_v3 = vpop.permute.xlu1 %1233 }
 0x39c   : > { %6585 = vpow2.f32 %v1069_v62  ;;  %v1239_v18 = vsel %vm961_vm1, %v1234_v3, 0 }
 0x3a5   : > { %v6584_v63 = vpop.eup %6583 }
 0x3a6   : > { %v1071_v0 = vsel %vm1058_vm4, %v6584_v63, 0.0 }
 0x3a7   : > { %1072 = vadd.xlane.f32.xlu0 %v1071_v0 }
 0x3a9   : > { %v6586_v1 = vpop.eup %6585 }
 0x3aa   : > { %v1074_v2 = vsel %vm1058_vm4, %v6586_v1, 0.0 }
 0x3ab   : > { %1075 = vadd.xlane.f32.xlu1 %v1074_v2 }
 0x3bc   : > { %1178 = vrot.lane.b32.xlu1 %v7090_v33, %s8266_s21 }
 0x3bd   : > { %1181 = vrot.lane.b32.xlu0 %v7079_v22, %s8266_s21 }
 0x3c0   : > { %1230 = vrot.lane.b32.xlu1 %v7101_v37, %s8266_s21 }
 0x430   : > { %v1073_v4 = vpop.xlane.xlu0 %1072 }
 0x431   : > { %6587 = vrcp.f32 %v1073_v4 }
 0x434   : > { %v1076_v5 = vpop.xlane.xlu1 %1075  ;;  %v1182_v11 = vpop.permute.xlu0 %1181 }
 0x435   : > { %6589 = vrcp.f32 %v1076_v5  ;;  %v1187_v15 = vsel %vm961_vm1, %v1182_v11, 0 }
 0x438   : > { %v1179_v19 = vpop.permute.xlu1 %1178 }
 0x43c   : > { %v1231_v21 = vpop.permute.xlu1 %1230 }
 0x43e   : > { %v6588_v8 = vpop.eup %6587 }
 0x43f   : > { %v1079_v10 = vmul.f32 %v6588_v8, %v6584_v63 }
 0x441   : > { %v1081_v12 = vpack.c.bf16 %v1079_v10, %v1079_v10  ;;  %v6373_v10 = vld [vmem:[%s8242_s5 + $0x18] sm:$0xff]  }
 0x442   : > { %v6590_v14 = vpop.eup %6589 }
 0x443   : > { %6007 = vmatmul.mubr.msk.bf16.vlgmr.msra.gmra.mxu0 %vm1058_vm4, %v1081_v12  ;;  %v1080_v16 = vmul.f32 %v6590_v14, %v6586_v1 }
 0x444   : > { %6017 = vmatpush3.bf16.xpose.msra.mxu0 %v1187_v15  ;;  %6018 = vmatprep.mubr.msk.bf16.mxu0 %vm6770_vm0, %v6768_v20  ;;  %v6371_v15 = vld [vmem:[%s8242_s5 + $0x8] sm:$0xff]  }
 0x445   : > { %v1082_v17 = vpack.c.bf16 %v1080_v16, %v1080_v16  ;;  %6028 = vmatprep.subr.bf16.mxu0 %v6768_v20 }
 0x447   : > { %6013 = vmatmul.mubr.msk.bf16.vlgmr.msra.gmra.mxu1 %vm1058_vm4, %v1082_v17 }
 0x448   : > { %6023 = vmatpush3.bf16.xpose.msra.mxu1 %v1239_v18  ;;  %6024 = vmatprep.mubr.msk.bf16.mxu1 %vm6770_vm0, %v6768_v20  ;;  %v6372_v18 = vld [vmem:[%s8242_s5] sm:$0xff]  }
 0x449   : > { %6034 = vmatprep.subr.bf16.mxu1 %v6768_v20 }
 0x44b   : > { %6019 = vmatmul.mubr.msk.bf16.vlgmr.msra.gmra.mxu0 %vm961_vm1, %v1179_v19 }
 0x44c   : > { %6030 = vmatprep.mubr.msk.bf16.mxu0 %vm6770_vm0, %v6768_v20 }
 0x44f   : > { %6025 = vmatmul.mubr.msk.bf16.vlgmr.msra.gmra.mxu1 %vm961_vm1, %v1231_v21 }
 0x450   : > { %6036 = vmatprep.mubr.msk.bf16.mxu1 %vm6770_vm0, %v6768_v20 }
 0x503   : > { %v7144_v23 = vpop.f32.mrf.mxu0 }
 0x505   : > { %v6008_v24 = vpop.f32.mrf.mxu0 }
 0x507   : > { %v1127_v25 = vpop.f32.mrf.mxu0  ;;  %v7146_v26 = vpop.f32.mrf.mxu1 }
 0x508   : > { %v1176_v27 = vpack.c.bf16 %v7146_v26, %v7144_v23  ;;  %v6374_v25 = vld [vmem:[%s8242_s5 + $0x10] sm:$0xff]  }
 0x509   : > { %v6009_v28 = vpop.f32.mrf.mxu0  ;;  %v6014_v31 = vpop.f32.mrf.mxu1 }
 0x50b   : > { %v1173_v32 = vpop.f32.mrf.mxu1  ;;  %v1223_v34 = vpop.f32.mrf.mxu0 }
 0x50c   : > { %v1281_v36 = vmul.f32 0.17677669, %v1223_v34 }
 0x50d   : > { %v6015_v38 = vpop.f32.mrf.mxu1  ;;  %v6020_v39 = vpop.f32.mrf.mxu0 }
 0x50e   : > { %v1283_v40 = vadd.f32 %v1281_v36, %v7112_v41 }
 0x50f   : > { %v1226_v42 = vpop.f32.mrf.mxu0  ;;  %v1275_v44 = vpop.f32.mrf.mxu1 }
 0x510   : > { %v1282_v45 = vmul.f32 0.17677669, %v1275_v44  ;;  %v1285_v46 = vsel %vm1058_vm4, %v1283_v40, -inf }
 0x511   : > { %v6026_v47 = vpop.f32.mrf.mxu1  ;;  %1286 = vmax.xlane.f32.xlu0 %v1285_v46  ;;  %v6021_v48 = vpop.f32.mrf.mxu0 }
 0x512   : > { %v1284_v49 = vadd.f32 %v1282_v45, %v7112_v41 }
 0x513   : > { %v1278_v50 = vpop.f32.mrf.mxu1 }
 0x514   : > { %v1288_v51 = vsel %vm1058_vm4, %v1284_v49, -inf }
 0x515   : > { %1289 = vmax.xlane.f32.xlu1 %v1288_v51  ;;  %v6027_v52 = vpop.f32.mrf.mxu1 }
 0x526   : > { %1359 = vrot.lane.b32.xlu1 %v7093_v35, %s8266_s21 }
 0x52a   : > { %1522 = vrot.lane.b32.xlu1 %v7079_v22, %s8264_s22 }
 0x52e   : > { %1572 = vrot.lane.b32.xlu1 %v7083_v29, %s8264_s22 }
 0x532   : > { %1570 = vrot.lane.b32.xlu1 %v7101_v37, %s8264_s22 }
 0x59a   : > { %v1287_v53 = vpop.xlane.xlu0 %1286 }
 0x59b   : > { %v1291_v54 = vsub.f32 %v1283_v40, %v1287_v53 }
 0x59d   : > { %v1293_v55 = vmul.f32 1.442695, %v1291_v54 }
 0x59e   : > { %v1290_v56 = vpop.xlane.xlu1 %1289 }
 0x59f   : > { %6591 = vpow2.f32 %v1293_v55  ;;  %v1292_v57 = vsub.f32 %v1284_v49, %v1290_v56 }
 0x5a1   : > { %v1295_v58 = vmul.f32 1.442695, %v1292_v57 }
 0x5a2   : > { %v1360_v59 = vpop.permute.xlu1 %1359 }
 0x5a3   : > { %6593 = vpow2.f32 %v1295_v58  ;;  %v1365_v60 = vsel %vm1086_vm2, %v1360_v59, 0 }
 0x5a4   : > { %6035 = vmatpush3.bf16.msra.mxu1 %v1365_v60 }
 0x5a5   : > { %6048 = vmatprep.subr.bf16.mxu1 %v6768_v20 }
 0x5a6   : > { %v1523_v17 = vpop.permute.xlu1 %1522 }
 0x5a7   : > { %v1528_v36 = vsel %vm961_vm1, %v1523_v17, 0 }
 0x5aa   : > { %v1573_v19 = vpop.permute.xlu1 %1572 }
 0x5ab   : > { %v1578_v21 = vsel %vm961_vm1, %v1573_v19, 0 }
 0x5ac   : > { %v6592_v61 = vpop.eup %6591 }
 0x5ad   : > { %v1297_v62 = vsel %vm1058_vm4, %v6592_v61, 0.0 }
 0x5ae   : > { %1298 = vadd.xlane.f32.xlu0 %v1297_v62  ;;  %v1571_v24 = vpop.permute.xlu1 %1570 }
 0x5b0   : > { %v6594_v63 = vpop.eup %6593 }
 0x5b1   : > { %v1300_v0 = vsel %vm1058_vm4, %v6594_v63, 0.0 }
 0x5b2   : > { %1301 = vadd.xlane.f32.xlu0 %v1300_v0 }
 0x5c8   : > { %1310 = vrot.lane.b32.xlu0 %v7086_v30, %s8266_s21 }
 0x5cc   : > { %1520 = vrot.lane.b32.xlu0 %v7090_v33, %s8264_s22 }
 0x637   : > { %v1299_v1 = vpop.xlane.xlu0 %1298 }
 0x638   : > { %6595 = vrcp.f32 %v1299_v1 }
 0x63b   : > { %v1302_v2 = vpop.xlane.xlu0 %1301 }
 0x63c   : > { %6597 = vrcp.f32 %v1302_v2 }
 0x63f   : > { %v1311_v3 = vpop.permute.xlu0 %1310 }
 0x640   : > { %v1316_v4 = vsel %vm1086_vm2, %v1311_v3, 0 }
 0x641   : > { %6029 = vmatpush3.bf16.msra.mxu0 %v1316_v4 }
 0x642   : > { %6040 = vmatprep.subr.bf16.mxu0 %v6768_v20 }
 0x643   : > { %v1521_v42 = vpop.permute.xlu0 %1520 }
 0x645   : > { %v6596_v5 = vpop.eup %6595 }
 0x646   : > { %v1305_v8 = vmul.f32 %v6596_v5, %v6592_v61 }
 0x648   : > { %v1307_v11 = vpack.c.bf16 %v1305_v8, %v1305_v8 }
 0x649   : > { %v6598_v12 = vpop.eup %6597 }
 0x64a   : > { %6031 = vmatmul.mubr.msk.bf16.vlgmr.msra.gmra.mxu0 %vm1058_vm4, %v1307_v11  ;;  %v1306_v14 = vmul.f32 %v6598_v12, %v6594_v63 }
 0x64b   : > { %6041 = vmatpush3.bf16.msra.mxu0 %v6373_v10  ;;  %6044 = vmatprep.mubr.msk.bf16.mxu0 %vm6770_vm0, %v6768_v20 }
 0x64c   : > { %v1308_v16 = vpack.c.bf16 %v1306_v14, %v1306_v14  ;;  %6042 = vmatprep.subr.bf16.mxu0 %v6768_v20 }
 0x64e   : > { %6037 = vmatmul.mubr.msk.bf16.vlgmr.msra.gmra.mxu1 %vm1058_vm4, %v1308_v16 }
 0x64f   : > { %6049 = vmatpush3.bf16.msra.mxu1 %v6371_v15  ;;  %6052 = vmatprep.mubr.msk.bf16.mxu1 %vm6770_vm0, %v6768_v20 }
 0x650   : > { %6050 = vmatprep.subr.bf16.mxu1 %v6768_v20  ;;  %6043 = vmatpush3.bf16.msra.mxu0 %v6374_v25 }
 0x651   : > { %6056 = vmatprep.subr.bf16.mxu0 %v6768_v20 }
 0x653   : > { %6051 = vmatpush3.bf16.msra.mxu1 %v6372_v18 }
 0x654   : > { %6062 = vmatprep.subr.bf16.mxu1 %v6768_v20 }
 0x656   : > { %6053 = vmatmul.mubr.msk.bf16.vlgmr.msra.gmra.mxu1 %vm961_vm1, %v1176_v27 }
 0x657   : > { %6063 = vmatpush3.bf16.xpose.msra.mxu1 %v1578_v21  ;;  %6064 = vmatprep.mubr.msk.bf16.mxu1 %vm6770_vm0, %v6768_v20 }
 0x658   : > { %6074 = vmatprep.subr.bf16.mxu1 %v6768_v20 }
 0x65e   : > { %6065 = vmatmul.mubr.msk.bf16.vlgmr.msra.gmra.mxu1 %vm961_vm1, %v1571_v24 }
 0x65f   : > { %6076 = vmatprep.mubr.msk.bf16.mxu1 %vm6770_vm0, %v6768_v20 }
 0x70a   : > { %v1352_v23 = vpop.f32.mrf.mxu0 }
 0x70c   : > { %v6032_v26 = vpop.f32.mrf.mxu0 }
 0x70e   : > { %v1355_v27 = vpop.f32.mrf.mxu0  ;;  %v1401_v28 = vpop.f32.mrf.mxu1 }
 0x70f   : > { %v1407_v31 = vpack.c.bf16 %v1401_v28, %v1352_v23 }
 0x710   : > { %v6033_v32 = vpop.f32.mrf.mxu0  ;;  %v6038_v34 = vpop.f32.mrf.mxu1 }
 0x711   : > { %6045 = vmatmul.mubr.msk.bf16.vlgmr.msra.gmra.mxu0 %vm961_vm1, %v1407_v31 }
 0x712   : > { %6057 = vmatpush3.bf16.xpose.msra.mxu0 %v1528_v36  ;;  %v1404_v38 = vpop.f32.mrf.mxu1  ;;  %6058 = vmatprep.mubr.msk.bf16.mxu0 %vm6770_vm0, %v6768_v20  ;;  %v6375_v36 = vld [vmem:[%s8242_s5 + $0x28] sm:$0xff]  }
 0x713   : > { %6068 = vmatprep.subr.bf16.mxu0 %v6768_v20  ;;  %v6376_v38 = vld [vmem:[%s8242_s5 + $0x20] sm:$0xff]  }
 0x714   : > { %v6039_v39 = vpop.f32.mrf.mxu1 }
 0x716   : > { %v7210_v40 = vpop.f32.mrf.mxu1 }
 0x718   : > { %v6054_v44 = vpop.f32.mrf.mxu1 }
 0x719   : > { %6059 = vmatmul.mubr.msk.bf16.vlgmr.msra.gmra.mxu0 %vm961_vm1, %v1521_v42 }
 0x71a   : > { %v7213_v45 = vpop.f32.mrf.mxu1  ;;  %6070 = vmatprep.mubr.msk.bf16.mxu0 %vm6770_vm0, %v6768_v20 }
 0x71c   : > { %v6055_v46 = vpop.f32.mrf.mxu1 }
 0x71e   : > { %v1614_v47 = vpop.f32.mrf.mxu1 }
 0x71f   : > { %v1621_v48 = vmul.f32 0.17677669, %v1614_v47 }
 0x720   : > { %v6066_v49 = vpop.f32.mrf.mxu1 }
 0x721   : > { %v1623_v50 = vadd.f32 %v1621_v48, %v7112_v41 }
 0x722   : > { %v1617_v51 = vpop.f32.mrf.mxu1 }
 0x723   : > { %v1627_v52 = vsel %vm1058_vm4, %v1623_v50, -inf }
 0x724   : > { %1628 = vmax.xlane.f32.xlu1 %v1627_v52  ;;  %v6067_v53 = vpop.f32.mrf.mxu1 }
 0x735   : > { %1696 = vrot.lane.b32.xlu1 %v7093_v35, %s8264_s22 }
 0x739   : > { %1805 = vrot.lane.b32.xlu1 %v7079_v22, %s8262_s23 }
 0x73d   : > { %1855 = vrot.lane.b32.xlu1 %v7083_v29, %s8262_s23 }
 0x741   : > { %1853 = vrot.lane.b32.xlu1 %v7101_v37, %s8262_s23 }
 0x7ad   : > { %v1629_v54 = vpop.xlane.xlu1 %1628 }
 0x7ae   : > { %v1631_v57 = vsub.f32 %v1623_v50, %v1629_v54 }
 0x7b0   : > { %v1634_v58 = vmul.f32 1.442695, %v1631_v57 }
 0x7b1   : > { %v1697_v55 = vpop.permute.xlu1 %1696 }
 0x7b2   : > { %v1702_v56 = vsel %vm1086_vm2, %v1697_v55, 0  ;;  %6599 = vpow2.f32 %v1634_v58 }
 0x7b3   : > { %6075 = vmatpush3.bf16.msra.mxu1 %v1702_v56 }
 0x7b4   : > { %6088 = vmatprep.subr.bf16.mxu1 %v6768_v20 }
 0x7b5   : > { %v1806_v17 = vpop.permute.xlu1 %1805 }
 0x7b6   : > { %v1811_v19 = vsel %vm961_vm1, %v1806_v17, 0 }
 0x7b9   : > { %v1856_v50 = vpop.permute.xlu1 %1855 }
 0x7ba   : > { %v1861_v54 = vsel %vm961_vm1, %v1856_v50, 0 }
 0x7bd   : > { %v1854_v57 = vpop.permute.xlu1 %1853 }
 0x7bf   : > { %v6600_v2 = vpop.eup %6599 }
 0x7c0   : > { %v1639_v4 = vsel %vm1058_vm4, %v6600_v2, 0.0 }
 0x7d1   : > { %v7229_v59 = vpop.f32.mrf.mxu0 }
 0x7d3   : > { %v6046_v60 = vpop.f32.mrf.mxu0 }
 0x7d5   : > { %v7231_v22 = vpop.f32.mrf.mxu0 }
 0x7d7   : > { %v6047_v61 = vpop.f32.mrf.mxu0 }
 0x7d9   : > { %v1564_v29 = vpop.f32.mrf.mxu0 }
 0x7da   : > { %v1620_v62 = vmul.f32 0.17677669, %v1564_v29 }
 0x7db   : > { %v6060_v63 = vpop.f32.mrf.mxu0 }
 0x7dc   : > { %v1622_v37 = vadd.f32 %v1620_v62, %v7112_v41  ;;  %v1514_v63 = vadd.f32 %v7210_v40, %v7229_v59 }
 0x7dd   : > { %v1567_v0 = vpop.f32.mrf.mxu0 }
 0x7de   : > { %v1624_v1 = vsel %vm1058_vm4, %v1622_v37, -inf }
 0x7df   : > { %1625 = vmax.xlane.f32.xlu0 %v1624_v1  ;;  %v6061_v3 = vpop.f32.mrf.mxu0 }
 0x7e3   : > { %1640 = vadd.xlane.f32.xlu0 %v1639_v4 }
 0x868   : > { %v1626_v5 = vpop.xlane.xlu0 %1625 }
 0x869   : > { %v1630_v8 = vsub.f32 %v1622_v37, %v1626_v5 }
 0x86b   : > { %v1632_v10 = vmul.f32 1.442695, %v1630_v8 }
 0x86c   : > { %v1641_v11 = vpop.xlane.xlu0 %1640 }
 0x86d   : > { %6601 = vpow2.f32 %v1632_v10 }
 0x86e   : > { %6603 = vrcp.f32 %v1641_v11 }
 0x87a   : > { %v6602_v12 = vpop.eup %6601 }
 0x87b   : > { %v6604_v14 = vpop.eup %6603  ;;  %v1636_v15 = vsel %vm1058_vm4, %v6602_v12, 0.0 }
 0x87c   : > { %1637 = vadd.xlane.f32.xlu0 %v1636_v15  ;;  %v1645_v16 = vmul.f32 %v6604_v14, %v6600_v2  ;;  %v1517_v2 = vadd.f32 %v7213_v45, %v7231_v22 }
 0x87e   : > { %v1647_v18 = vpack.c.bf16 %v1645_v16, %v1645_v16 }
 0x880   : > { %6077 = vmatmul.mubr.msk.bf16.vlgmr.msra.gmra.mxu1 %vm1058_vm4, %v1647_v18 }
 0x881   : > { %6089 = vmatpush3.bf16.xpose.msra.mxu1 %v1811_v19  ;;  %6090 = vmatprep.mubr.msk.bf16.mxu1 %vm6770_vm0, %v6768_v20 }
 0x882   : > { %6100 = vmatprep.subr.bf16.mxu1 %v6768_v20 }
 0x892   : > { %1648 = vrot.lane.b32.xlu0 %v7086_v30, %s8264_s22 }
 0x896   : > { %1803 = vrot.lane.b32.xlu0 %v7090_v33, %s8262_s23 }
 0x905   : > { %v1638_v21 = vpop.xlane.xlu0 %1637 }
 0x906   : > { %6605 = vrcp.f32 %v1638_v21 }
 0x909   : > { %v1649_v24 = vpop.permute.xlu0 %1648 }
 0x90a   : > { %v1654_v25 = vsel %vm1086_vm2, %v1649_v24, 0 }
 0x90b   : > { %6069 = vmatpush3.bf16.msra.mxu0 %v1654_v25 }
 0x90c   : > { %6080 = vmatprep.subr.bf16.mxu0 %v6768_v20 }
 0x90d   : > { %v1804_v23 = vpop.permute.xlu0 %1803 }
 0x90e   : > { %6091 = vmatmul.mubr.msk.bf16.vlgmr.msra.gmra.mxu1 %vm961_vm1, %v1804_v23 }
 0x90f   : > { %6102 = vmatprep.mubr.msk.bf16.mxu1 %vm6770_vm0, %v6768_v20 }
 0x913   : > { %v6606_v26 = vpop.eup %6605 }
 0x914   : > { %v1644_v27 = vmul.f32 %v6606_v26, %v6602_v12 }
 0x916   : > { %v1646_v28 = vpack.c.bf16 %v1644_v27, %v1644_v27 }
 0x918   : > { %6071 = vmatmul.mubr.msk.bf16.vlgmr.msra.gmra.mxu0 %vm1058_vm4, %v1646_v28 }
 0x919   : > { %6084 = vmatprep.mubr.msk.bf16.mxu0 %vm6770_vm0, %v6768_v20  ;;  %6081 = vmatpush3.bf16.msra.mxu0 %v6375_v36 }
 0x91a   : > { %6082 = vmatprep.subr.bf16.mxu0 %v6768_v20 }
 0x91d   : > { %6083 = vmatpush3.bf16.msra.mxu0 %v6376_v38 }
 0x91e   : > { %6094 = vmatprep.subr.bf16.mxu0 %v6768_v20 }
 0x940   : > { %v1738_v33 = vpop.f32.mrf.mxu1 }
 0x942   : > { %v6078_v31 = vpop.f32.mrf.mxu1 }
 0x943   : > { %v6377_v31 = vld [vmem:[%s8242_s5 + $0x38] sm:$0xff]  }
 0x944   : > { %v1741_v32 = vpop.f32.mrf.mxu1 }
 0x945   : > { %v6378_v32 = vld [vmem:[%s8242_s5 + $0x30] sm:$0xff]  }
 0x946   : > { %v6079_v34 = vpop.f32.mrf.mxu1 }
 0x9ce   : > { %v1847_v39 = vpop.f32.mrf.mxu1 }
 0x9cf   : > { %v1903_v42 = vmul.f32 0.17677669, %v1847_v39 }
 0x9d0   : > { %v6092_v44 = vpop.f32.mrf.mxu1 }
 0x9d1   : > { %v1905_v46 = vadd.f32 %v1903_v42, %v7112_v41 }
 0x9d2   : > { %v1850_v47 = vpop.f32.mrf.mxu1 }
 0x9d3   : > { %v1907_v48 = vsel %vm1058_vm4, %v1905_v46, -inf }
 0x9d4   : > { %1908 = vmax.xlane.f32.xlu0 %v1907_v48  ;;  %v6093_v49 = vpop.f32.mrf.mxu1 }
 0x9d8   : > { %v1690_v51 = vpop.f32.mrf.mxu0 }
 0x9d9   : > { %v1744_v52 = vpack.c.bf16 %v1738_v33, %v1690_v51 }
 0x9da   : > { %v6072_v53 = vpop.f32.mrf.mxu0 }
 0x9db   : > { %6085 = vmatmul.mubr.msk.bf16.vlgmr.msra.gmra.mxu0 %vm961_vm1, %v1744_v52  ;;  %v5403_v52 = vld [vmem:[%s8243_s6] ss:$0 sm:$0xff] }
 0x9dc   : > { %6095 = vmatpush3.bf16.xpose.msra.mxu0 %v1861_v54  ;;  %v1693_v55 = vpop.f32.mrf.mxu0  ;;  %6096 = vmatprep.mubr.msk.bf16.mxu0 %vm6770_vm0, %v6768_v20  ;;  %v6695_v53 = vld [vmem:[%s8283_s15] sm:$0xff] }
 0x9dd   : > { %6106 = vmatprep.subr.bf16.mxu0 %v6768_v20 }
 0x9de   : > { %v6073_v56 = vpop.f32.mrf.mxu0 }
 0x9e3   : > { %6097 = vmatmul.mubr.msk.bf16.vlgmr.msra.gmra.mxu0 %vm961_vm1, %v1854_v57 }
 0x9e4   : > { %6108 = vmatprep.mubr.msk.bf16.mxu0 %vm6770_vm0, %v6768_v20 }
 0xa5d   : > { %v1909_v58 = vpop.xlane.xlu0 %1908 }
 0xa5e   : > { %v1913_v60 = vsub.f32 %v1905_v46, %v1909_v58 }
 0xa60   : > { %v1915_v61 = vmul.f32 1.442695, %v1913_v60  ;;  %v6696_v60 = vld [vmem:[%s8283_s15 + $0x8] sm:$0xff] }
 0xa62   : > { %6607 = vpow2.f32 %v1915_v61 }
 0xa6f   : > { %v6608_v29 = vpop.eup %6607 }
 0xa70   : > { %v1919_v62 = vsel %vm1058_vm4, %v6608_v29, 0.0 }
 0xa71   : > { %1920 = vadd.xlane.f32.xlu0 %v1919_v62  ;;  %v6379_v62 = vld [vmem:[%s8246_s9 + $0xe0] ss:$16 sps:$4 sm:$0xff]  }
 0xa9b   : > { %v1794_v37 = vpop.f32.mrf.mxu0 }
 0xa9c   : > { %v1801_v0 = vadd.f32 %v1794_v37, %v1514_v63  ;;  %v6381_v63 = vld [vmem:[%s8246_s9 + $0xe4] ss:$16 sps:$4 sm:$0xff]   ;;  %v6382_v37 = vld [vmem:[%s8246_s9 + $0xe8] ss:$16 sps:$4 sm:$0xff]  }
 0xa9d   : > { %v6086_v1 = vpop.f32.mrf.mxu0 }
 0xa9f   : > { %v1797_v3 = vpop.f32.mrf.mxu0 }
 0xaa0   : > { %v7277_v4 = vadd.f32 %v1797_v3, %v1517_v2 }
 0xaa1   : > { %v6087_v5 = vpop.f32.mrf.mxu0 }
 0xaa3   : > { %v1897_v8 = vpop.f32.mrf.mxu0 }
 0xaa4   : > { %v1904_v10 = vmul.f32 0.17677669, %v1897_v8 }
 0xaa5   : > { %v6098_v11 = vpop.f32.mrf.mxu0 }
 0xaa6   : > { %v1906_v12 = vadd.f32 %v1904_v10, %v7112_v41 }
 0xaa7   : > { %v1900_v14 = vpop.f32.mrf.mxu0 }
 0xaa8   : > { %v1910_v15 = vsel %vm1058_vm4, %v1906_v12, -inf  ;;  %v6390_v14 = vld [vmem:[%s8246_s9 + $0xcc] ss:$16 sps:$4 sm:$0xff]  }
 0xaa9   : > { %1911 = vmax.xlane.f32.xlu1 %v1910_v15  ;;  %v6099_v40 = vpop.f32.mrf.mxu0  ;;  %v6385_v15 = vld [vmem:[%s8246_s9 + $0xc0] ss:$16 sps:$4 sm:$0xff]  }
 0xaaa   : > { %v6388_v40 = vld [vmem:[%s8246_s9 + $0xc8] ss:$16 sps:$4 sm:$0xff]  }
 0xaba   : > { %1979 = vrot.lane.b32.xlu1 %v7093_v35, %s8262_s23 }
 0xafa   : > { %v1921_v21 = vpop.xlane.xlu0 %1920 }
 0xb32   : > { %v1912_v59 = vpop.xlane.xlu1 %1911 }
 0xb33   : > { %v1914_v16 = vsub.f32 %v1906_v12, %v1912_v59  ;;  %v6387_v12 = vld [vmem:[%s8246_s9 + $0xc4] ss:$16 sps:$4 sm:$0xff]  }
 0xb34   : > { %v6393_v59 = vld [vmem:[%s8246_s9 + $0xa4] ss:$16 sps:$4 sm:$0xff]  }
 0xb35   : > { %v1917_v45 = vmul.f32 1.442695, %v1914_v16  ;;  %v6396_v16 = vld [vmem:[%s8246_s9 + $0xac] ss:$16 sps:$4 sm:$0xff]  }
 0xb36   : > { %v1980_v22 = vpop.permute.xlu1 %1979 }
 0xb37   : > { %6609 = vpow2.f32 %v1917_v45  ;;  %v1985_v17 = vsel %vm1086_vm2, %v1980_v22, 0  ;;  %v6391_v45 = vld [vmem:[%s8246_s9 + $0xa0] ss:$16 sps:$4 sm:$0xff]   ;;  %v6394_v22 = vld [vmem:[%s8246_s9 + $0xa8] ss:$16 sps:$4 sm:$0xff]  }
 0xb38   : > { %6107 = vmatpush3.bf16.msra.mxu0 %v1985_v17  ;;  %6611 = vrcp.f32 %v1921_v21  ;;  %v6399_v17 = vld [vmem:[%s8246_s9 + $0x84] ss:$16 sps:$4 sm:$0xff]   ;;  %v6402_v21 = vld [vmem:[%s8246_s9 + $0x8c] ss:$16 sps:$4 sm:$0xff]  }
 0xb39   : > { %2352 = vmatprep.subr.bf16.mxu0 %v6381_v63 }
 0xb44   : > { %v6610_v18 = vpop.eup %6609 }
 0xb45   : > { %v1922_v19 = vsel %vm1058_vm4, %v6610_v18, 0.0  ;;  %v6612_v24 = vpop.eup %6611 }
 0xb46   : > { %1923 = vadd.xlane.f32.xlu0 %v1922_v19  ;;  %v1927_v35 = vmul.f32 %v6612_v24, %v6608_v29  ;;  %v6400_v19 = vld [vmem:[%s8246_s9 + $0x88] ss:$16 sps:$4 sm:$0xff]   ;;  %v6405_v24 = vld [vmem:[%s8246_s9 + $0x64] ss:$16 sps:$4 sm:$0xff]  }
 0xb48   : > { %v1929_v27 = vpack.c.bf16 %v1927_v35, %v1927_v35  ;;  %v6403_v35 = vld [vmem:[%s8246_s9 + $0x60] ss:$16 sps:$4 sm:$0xff]  }
 0xb5c   : > { %1931 = vrot.lane.b32.xlu0 %v7086_v30, %s8262_s23 }
 0xbcf   : > { %v1924_v25 = vpop.xlane.xlu0 %1923 }
 0xbd0   : > { %6613 = vrcp.f32 %v1924_v25  ;;  %v6408_v25 = vld [vmem:[%s8246_s9 + $0x6c] ss:$16 sps:$4 sm:$0xff]  }
 0xbd3   : > { %v1932_v23 = vpop.permute.xlu0 %1931 }
 0xbd4   : > { %v1937_v26 = vsel %vm1086_vm2, %v1932_v23, 0  ;;  %v6406_v23 = vld [vmem:[%s8246_s9 + $0x68] ss:$16 sps:$4 sm:$0xff]  }
 0xbd5   : > { %6101 = vmatpush3.bf16.msra.mxu1 %v1937_v26  ;;  %v6411_v26 = vld [vmem:[%s8246_s9 + $0x44] ss:$16 sps:$4 sm:$0xff]  }
 0xbd6   : > { %6112 = vmatprep.subr.bf16.mxu1 %v6768_v20 }
 0xbd8   : > { %6103 = vmatmul.mubr.msk.bf16.vlgmr.msra.gmra.mxu1 %vm1058_vm4, %v1929_v27  ;;  %v6414_v27 = vld [vmem:[%s8246_s9 + $0x4c] ss:$16 sps:$4 sm:$0xff]  }
 0xbd9   : > { %6116 = vmatprep.mubr.msk.bf16.mxu1 %vm6770_vm0, %v6768_v20  ;;  %6113 = vmatpush3.bf16.msra.mxu1 %v6377_v31  ;;  %v6420_v31 = vld [vmem:[%s8246_s9 + $0x2c] ss:$16 sps:$4 sm:$0xff]  }
 0xbda   : > { %6114 = vmatprep.subr.bf16.mxu1 %v6768_v20 }
 0xbdd   : > { %v6614_v28 = vpop.eup %6613  ;;  %6115 = vmatpush3.bf16.msra.mxu1 %v6378_v32  ;;  %v6415_v32 = vld [vmem:[%s8246_s9 + $0x20] ss:$16 sps:$4 sm:$0xff]  }
 0xbde   : > { %v1928_v30 = vmul.f32 %v6614_v28, %v6610_v18  ;;  %v6397_v18 = vld [vmem:[%s8246_s9 + $0x80] ss:$16 sps:$4 sm:$0xff]  }
 0xbdf   : > { %v6409_v28 = vld [vmem:[%s8246_s9 + $0x40] ss:$16 sps:$4 sm:$0xff]  }
 0xbe0   : > { %v1930_v33 = vpack.c.bf16 %v1928_v30, %v1928_v30  ;;  %v6412_v30 = vld [vmem:[%s8246_s9 + $0x48] ss:$16 sps:$4 sm:$0xff]  }
 0xbe2   : > { %6109 = vmatmul.mubr.msk.bf16.vlgmr.msra.gmra.mxu0 %vm1058_vm4, %v1930_v33  ;;  %v6417_v33 = vld [vmem:[%s8246_s9 + $0x24] ss:$16 sps:$4 sm:$0xff]  }
 0xbe3   : > { %2384 = vmatprep.mubr.bf16.mxu0 %v6769_v43  ;;  %2353 = vmatpush1.bf16.msra.mxu0 %v6379_v62 }
 0xbe4   : > { %2354 = vmatprep.subr.bf16.mxu0 %v6387_v12  ;;  %v6437_v12 = vld [vmem:[%s8248_s11 + $0x28] sm:$0xff]  }
 0xbe7   : > { %2355 = vmatpush1.bf16.msra.mxu0 %v6385_v15  ;;  %v6439_v15 = vld [vmem:[%s8248_s11 + $0x60] sm:$0xff]  }
 0xbe8   : > { %2356 = vmatprep.subr.bf16.mxu0 %v6393_v59  ;;  %v6441_v59 = vld [vmem:[%s8248_s11 + $0x20] sm:$0xff]  }
 0xbeb   : > { %2357 = vmatpush1.bf16.msra.mxu0 %v6391_v45  ;;  %v6443_v45 = vld [vmem:[%s8248_s11 + $0x58] sm:$0xff]  }
 0xbec   : > { %2358 = vmatprep.subr.bf16.mxu0 %v6399_v17  ;;  %v6445_v17 = vld [vmem:[%s8248_s11 + $0x18] sm:$0xff]  }
 0xbef   : > { %2359 = vmatpush1.bf16.msra.mxu0 %v6397_v18  ;;  %v6446_v18 = vld [vmem:[%s8248_s11 + $0x98] sm:$0xff]  }
 0xbf0   : > { %2360 = vmatprep.subr.bf16.mxu0 %v6405_v24  ;;  %v6449_v24 = vld [vmem:[%s8248_s11 + $0x10] sm:$0xff]  }
 0xbf3   : > { %2361 = vmatpush1.bf16.msra.mxu0 %v6403_v35  ;;  %v6451_v35 = vld [vmem:[%s8248_s11 + $0x48] sm:$0xff]  }
 0xbf4   : > { %2362 = vmatprep.subr.bf16.mxu0 %v6411_v26  ;;  %v6453_v26 = vld [vmem:[%s8248_s11 + $0x8] sm:$0xff]  }
 0xbf7   : > { %2363 = vmatpush1.bf16.msra.mxu0 %v6409_v28  ;;  %v6455_v28 = vld [vmem:[%s8248_s11 + $0x40] sm:$0xff]  }
 0xbf8   : > { %2364 = vmatprep.subr.bf16.mxu0 %v6417_v33  ;;  %v6457_v33 = vld [vmem:[%s8248_s11] sm:$0xff]  }
 0xbfb   : > { %2365 = vmatpush1.bf16.msra.mxu0 %v6415_v32  ;;  %v2170_v32 = vld [vmem:[%s8247_s10] sm:$0xf] }
 0xc98   : > { %v1973_v34 = vpop.f32.mrf.mxu1 }
 0xc9a   : > { %v6104_v36 = vpop.f32.mrf.mxu1 }
 0xc9b   : > { %v6423_v36 = vld [vmem:[%s8246_s9 + $0x4] ss:$16 sps:$4 sm:$0xff]  }
 0xc9c   : > { %v1976_v38 = vpop.f32.mrf.mxu1  ;;  %2366 = vmatprep.subr.bf16.mxu0 %v6423_v36  ;;  %v2175_v36 = vrot.slane %v2170_v32, %v7075_v13 }
 0xc9d   : > { %v6426_v38 = vld [vmem:[%s8246_s9 + $0xc] ss:$16 sps:$4 sm:$0xff]  }
 0xc9e   : > { %v6105_v39 = vpop.f32.mrf.mxu1 }
 0xc9f   : > { %v6421_v39 = vld [vmem:[%s8246_s9] ss:$16 sps:$4 sm:$0xff]  }
 0xca0   : > { %2367 = vmatpush1.bf16.msra.mxu0 %v6421_v39  ;;  %v2179_v39 = vrot.slane %v2170_v32, %v7065_v7 }
 0xca2   : > { %v2021_v42 = vpop.f32.mrf.mxu0 }
 0xca3   : > { %v2027_v44 = vpack.c.bf16 %v2021_v42, %v1973_v34  ;;  %v6418_v34 = vld [vmem:[%s8246_s9 + $0x28] ss:$16 sps:$4 sm:$0xff]  }
 0xca4   : > { %v6110_v46 = vpop.f32.mrf.mxu0  ;;  %v6424_v42 = vld [vmem:[%s8246_s9 + $0x8] ss:$16 sps:$4 sm:$0xff]  }
 0xca5   : > { %6117 = vmatmul.mubr.msk.bf16.vlgmr.msra.gmra.mxu1 %vm961_vm1, %v2027_v44 }
 0xca6   : > { %v2024_v47 = vpop.f32.mrf.mxu0  ;;  %2427 = vmatprep.mubr.bf16.mxu1 %v6769_v43 }
 0xca8   : > { %v6111_v48 = vpop.f32.mrf.mxu0 }
 0xd65   : > { %v2077_v49 = vpop.f32.mrf.mxu1 }
 0xd66   : > { %v2084_v50 = vadd.f32 %v2077_v49, %v1801_v0  ;;  %v6384_v0 = vld [vmem:[%s8246_s9 + $0xec] ss:$16 sps:$4 sm:$0xff]  }
 0xd67   : > { %v6118_v51 = vpop.f32.mrf.mxu1  ;;  %2395 = vmatprep.subr.bf16.mxu1 %v6384_v0  ;;  %v6428_v0 = vld [vmem:[%s8248_s11 + $0xf8] sm:$0xff]  }
 0xd68   : > { %v2086_v54 = vadd.f32 %v6695_v53, %v2084_v50  ;;  %2396 = vmatpush1.bf16.msra.mxu1 %v6382_v37  ;;  %v5404_v53 = vld [vmem:[%s8244_s7] ss:$0 sm:$0xff]  ;;  %v6427_v37 = vld [vmem:[%s8248_s11 + $0x78] sm:$0xff]  }
 0xd69   : > { %v2080_v55 = vpop.f32.mrf.mxu1  ;;  %2397 = vmatprep.subr.bf16.mxu1 %v6390_v14  ;;  %5822 = vmatprep.subr.bf16.mxu0 %v6427_v37  ;;  %v6438_v14 = vld [vmem:[%s8248_s11 + $0xa8] sm:$0xff]  }
 0xd6a   : > { %v2085_v56 = vadd.f32 %v2080_v55, %v7277_v4  ;;  %v7310_v57 = vadd.f32 %v5403_v52, %v2086_v54 }
 0xd6b   : > { %v6119_v58 = vpop.f32.mrf.mxu1 }
 0xd6c   : > { %v2087_v61 = vadd.f32 %v6696_v60, %v2085_v56  ;;  %2099 = vadd.xlane.f32.xlu1 %v7310_v57  ;;  %2398 = vmatpush1.bf16.msra.mxu1 %v6388_v40  ;;  %v5405_v58 = vld [vmem:[%s8245_s8] ss:$0 sm:$0xff] }
 0xd6d   : > { %2399 = vmatprep.subr.bf16.mxu1 %v6396_v16  ;;  %v6440_v40 = vld [vmem:[%s8248_s11 + $0xe0] sm:$0xff]  }
 0xd6e   : > { %v7316_v29 = vadd.f32 %v5403_v52, %v2087_v61  ;;  %v6442_v16 = vld [vmem:[%s8248_s11 + $0xa0] sm:$0xff]  }
 0xd70   : > { %2101 = vadd.xlane.f32.xlu0 %v7316_v29  ;;  %2400 = vmatpush1.bf16.msra.mxu1 %v6394_v22  ;;  %v6444_v22 = vld [vmem:[%s8248_s11 + $0xd8] sm:$0xff]  }
 0xd71   : > { %2401 = vmatprep.subr.bf16.mxu1 %v6402_v21  ;;  %v6448_v21 = vld [vmem:[%s8248_s11 + $0xd0] sm:$0xff]  }
 0xd74   : > { %2402 = vmatpush1.bf16.msra.mxu1 %v6400_v19  ;;  %v6447_v19 = vld [vmem:[%s8248_s11 + $0x50] sm:$0xff]  }
 0xd75   : > { %2403 = vmatprep.subr.bf16.mxu1 %v6408_v25  ;;  %v6450_v25 = vld [vmem:[%s8248_s11 + $0x90] sm:$0xff]  }
 0xd78   : > { %2404 = vmatpush1.bf16.msra.mxu1 %v6406_v23  ;;  %v6452_v23 = vld [vmem:[%s8248_s11 + $0xc8] sm:$0xff]  }
 0xd79   : > { %2405 = vmatprep.subr.bf16.mxu1 %v6414_v27  ;;  %v6454_v27 = vld [vmem:[%s8248_s11 + $0x88] sm:$0xff]  }
 0xd7c   : > { %2406 = vmatpush1.bf16.msra.mxu1 %v6412_v30  ;;  %v6456_v30 = vld [vmem:[%s8248_s11 + $0xc0] sm:$0xff]  }
 0xd7d   : > { %2407 = vmatprep.subr.bf16.mxu1 %v6420_v31  ;;  %v6458_v31 = vld [vmem:[%s8248_s11 + $0x80] sm:$0xff]  }
 0xd80   : > { %2408 = vmatpush1.bf16.msra.mxu1 %v6418_v34  ;;  %v2186_v34 = vsub.s32 3, %v7062_v6 }
 0xd81   : > { %2409 = vmatprep.subr.bf16.mxu1 %v6426_v38  ;;  %v2183_v38 = vrot.slane %v2170_v32, %v7071_v9 }
 0xd84   : > { %2410 = vmatpush1.bf16.msra.mxu1 %v6424_v42  ;;  %v2187_v42 = vrot.slane %v2170_v32, %v2186_v34 }
 0xd85   : > { %5844 = vmatprep.subr.bf16.mxu1 %v6428_v0 }
 0xdf5   : > { %v2100_v1 = vpop.xlane.xlu1 %2099 }
 0xdf6   : > { %v2103_v2 = vmul.f32 0.0078125, %v2100_v1  ;;  %v6429_v1 = vld [vmem:[%s8248_s11 + $0x38] sm:$0xff]  }
 0xdf8   : > { %v7332_v3 = vsub.f32 %v7310_v57, %v2103_v2  ;;  %v6430_v2 = vld [vmem:[%s8248_s11 + $0xb8] sm:$0xff]  }
 0xdf9   : > { %v2102_v4 = vpop.xlane.xlu0 %2101 }
 0xdfa   : > { %v2104_v5 = vmul.f32 0.0078125, %v2102_v4  ;;  %v2107_v8 = vmul.f32 %v7332_v3, %v7332_v3  ;;  %v6432_v4 = vld [vmem:[%s8248_s11 + $0xf0] sm:$0xff]  }
 0xdfc   : > { %v7337_v10 = vsub.f32 %v7316_v29, %v2104_v5  ;;  %2109 = vadd.xlane.f32.xlu0 %v2107_v8  ;;  %v6433_v5 = vld [vmem:[%s8248_s11 + $0x30] sm:$0xff]  }
 0xdfd   : > { %v6434_v8 = vld [vmem:[%s8248_s11 + $0xb0] sm:$0xff]  }
 0xdfe   : > { %v2108_v11 = vmul.f32 %v7337_v10, %v7337_v10 }
 0xe00   : > { %2111 = vadd.xlane.f32.xlu1 %v2108_v11  ;;  %v6436_v11 = vld [vmem:[%s8248_s11 + $0xe8] sm:$0xff]  }
 0xe85   : > { %v2110_v44 = vpop.xlane.xlu0 %2109 }
 0xe86   : > { %v2113_v46 = vmul.f32 0.0078125, %v2110_v44 }
 0xe88   : > { %v2115_v47 = vadd.f32 1e-05, %v2113_v46 }
 0xe89   : > { %v2112_v48 = vpop.xlane.xlu1 %2111 }
 0xe8a   : > { %6615 = vrsqrt.f32 %v2115_v47  ;;  %v2114_v49 = vmul.f32 0.0078125, %v2112_v48 }
 0xe8c   : > { %v2116_v50 = vadd.f32 1e-05, %v2114_v49 }
 0xe8e   : > { %6617 = vrsqrt.f32 %v2116_v50 }
 0xe97   : > { %v6616_v51 = vpop.eup %6615 }
 0xe98   : > { %v2119_v52 = vmul.f32 %v6616_v51, %v7332_v3  ;;  %v6431_v3 = vld [vmem:[%s8248_s11 + $0x70] sm:$0xff]  }
 0xe9a   : > { %v2127_v56 = vmul.f32 %v5404_v53, %v2119_v52 }
 0xe9b   : > { %v6618_v54 = vpop.eup %6617 }
 0xe9c   : > { %v2120_v55 = vmul.f32 %v6618_v54, %v7337_v10  ;;  %v2135_v61 = vadd.f32 %v5405_v58, %v2127_v56  ;;  %v6435_v10 = vld [vmem:[%s8248_s11 + $0x68] sm:$0xff]  }
 0xe9e   : > { %v2128_v60 = vmul.f32 %v5404_v53, %v2120_v55 }
 0xea0   : > { %v2136_v62 = vadd.f32 %v5405_v58, %v2128_v60 }
 0xea2   : > { %v2137_v63 = vpack.c.bf16 %v2136_v62, %v2135_v61 }
 0xea4   : > { %2385 = vmatmul.mubr.bf16.vlgmr.msra.gmra.mxu0 %v2137_v63  ;;  %2428 = vmatmul.mubr.bf16.vlgmr.msra.gmra.mxu1 %v2137_v63 }
 0xea5   : > { %5823 = vmatpush3.bf16.msra.mxu0 %v6429_v1  ;;  %5845 = vmatpush3.bf16.msra.mxu1 %v6430_v2 }
 0xea6   : > { %5824 = vmatprep.subr.bf16.mxu0 %v6431_v3  ;;  %5846 = vmatprep.subr.bf16.mxu1 %v6432_v4 }
 0xea9   : > { %5825 = vmatpush3.bf16.msra.mxu0 %v6433_v5  ;;  %5847 = vmatpush3.bf16.msra.mxu1 %v6434_v8 }
 0xeaa   : > { %5826 = vmatprep.subr.bf16.mxu0 %v6435_v10  ;;  %5848 = vmatprep.subr.bf16.mxu1 %v6436_v11 }
 0xead   : > { %5827 = vmatpush3.bf16.msra.mxu0 %v6437_v12  ;;  %5849 = vmatpush3.bf16.msra.mxu1 %v6438_v14 }
 0xeae   : > { %5828 = vmatprep.subr.bf16.mxu0 %v6439_v15  ;;  %5850 = vmatprep.subr.bf16.mxu1 %v6440_v40 }
 0xeb1   : > { %5829 = vmatpush3.bf16.msra.mxu0 %v6441_v59  ;;  %5851 = vmatpush3.bf16.msra.mxu1 %v6442_v16 }
 0xeb2   : > { %5830 = vmatprep.subr.bf16.mxu0 %v6443_v45  ;;  %5852 = vmatprep.subr.bf16.mxu1 %v6444_v22 }
 0xeb5   : > { %5831 = vmatpush3.bf16.msra.mxu0 %v6445_v17  ;;  %5853 = vmatpush3.bf16.msra.mxu1 %v6446_v18 }
 0xeb6   : > { %5832 = vmatprep.subr.bf16.mxu0 %v6447_v19  ;;  %5854 = vmatprep.subr.bf16.mxu1 %v6448_v21 }
 0xeb9   : > { %5833 = vmatpush3.bf16.msra.mxu0 %v6449_v24  ;;  %5855 = vmatpush3.bf16.msra.mxu1 %v6450_v25 }
 0xeba   : > { %5834 = vmatprep.subr.bf16.mxu0 %v6451_v35  ;;  %5856 = vmatprep.subr.bf16.mxu1 %v6452_v23 }
 0xebd   : > { %5835 = vmatpush3.bf16.msra.mxu0 %v6453_v26  ;;  %5857 = vmatpush3.bf16.msra.mxu1 %v6454_v27 }
 0xebe   : > { %5836 = vmatprep.subr.bf16.mxu0 %v6455_v28  ;;  %5858 = vmatprep.subr.bf16.mxu1 %v6456_v30 }
 0xec1   : > { %5837 = vmatpush3.bf16.msra.mxu0 %v6457_v33  ;;  %5859 = vmatpush3.bf16.msra.mxu1 %v6458_v31 }
 0xec2   : > { %6120 = vmatprep.subr.bf16.mxu1 %v6768_v20 }
 0xf64   : > { %v2386_v44 = vpop.f32.mrf.mxu0  ;;  %v2429_v46 = vpop.f32.mrf.mxu1 }
 0xf65   : > { %v7539_v47 = vadd.f32 %v2386_v44, %v2175_v36  ;;  %v7541_v48 = vadd.f32 %v2429_v46, %v2183_v38 }
 0xf66   : > { %v2388_v49 = vpop.f32.mrf.mxu0  ;;  %v2431_v50 = vpop.f32.mrf.mxu1 }
 0xf67   : > { %v2446_v51 = vmul.f32 0.044715, %v7539_v47  ;;  %v2448_v52 = vmul.f32 0.044715, %v7541_v48  ;;  %v2389_v53 = vadd.f32 %v2388_v49, %v2179_v39  ;;  %v7545_v54 = vadd.f32 %v2431_v50, %v2187_v42 }
 0xf68   : > { %v2390_v55 = vpop.f32.mrf.mxu0  ;;  %v2433_v56 = vpop.f32.mrf.mxu1 }
 0xf69   : > { %v2454_v58 = vmul.f32 %v2446_v51, %v7539_v47  ;;  %v2456_v60 = vmul.f32 %v2448_v52, %v7541_v48  ;;  %v2447_v61 = vmul.f32 0.044715, %v2389_v53  ;;  %v2449_v62 = vmul.f32 0.044715, %v7545_v54 }
 0xf6a   : > { %v2391_v63 = vadd.f32 %v2390_v55, %v2175_v36  ;;  %v7550_v37 = vadd.f32 %v2433_v56, %v2183_v38  ;;  %v2392_v0 = vpop.f32.mrf.mxu0  ;;  %v2435_v1 = vpop.f32.mrf.mxu1 }
 0xf6b   : > { %v2462_v2 = vmul.f32 %v2454_v58, %v7539_v47  ;;  %v2464_v3 = vmul.f32 %v2456_v60, %v7541_v48  ;;  %v2455_v4 = vmul.f32 %v2447_v61, %v2389_v53  ;;  %v2457_v5 = vmul.f32 %v2449_v62, %v7545_v54 }
 0xf6c   : > { %v2450_v8 = vmul.f32 0.044715, %v2391_v63  ;;  %v2452_v10 = vmul.f32 0.044715, %v7550_v37  ;;  %v2393_v11 = vadd.f32 %v2392_v0, %v2179_v39  ;;  %v2436_v12 = vadd.f32 %v2435_v1, %v2187_v42 }
 0xf6d   : > { %v2470_v14 = vadd.f32 %v2462_v2, %v7539_v47  ;;  %v2472_v15 = vadd.f32 %v2464_v3, %v7541_v48  ;;  %v2463_v40 = vmul.f32 %v2455_v4, %v2389_v53  ;;  %v2465_v59 = vmul.f32 %v2457_v5, %v7545_v54 }
 0xf6e   : > { %v2458_v16 = vmul.f32 %v2450_v8, %v2391_v63  ;;  %v2460_v45 = vmul.f32 %v2452_v10, %v7550_v37  ;;  %v2451_v22 = vmul.f32 0.044715, %v2393_v11  ;;  %v2453_v17 = vmul.f32 0.044715, %v2436_v12 }
 0xf6f   : > { %v2478_v18 = vmul.f32 0.7978846, %v2470_v14  ;;  %v2480_v19 = vmul.f32 0.7978846, %v2472_v15  ;;  %v2471_v21 = vadd.f32 %v2463_v40, %v2389_v53  ;;  %v2473_v27 = vadd.f32 %v2465_v59, %v7545_v54 }
 0xf70   : > { %v2466_v24 = vmul.f32 %v2458_v16, %v2391_v63  ;;  %v2468_v25 = vmul.f32 %v2460_v45, %v7550_v37  ;;  %v2459_v35 = vmul.f32 %v2451_v22, %v2393_v11  ;;  %v2461_v23 = vmul.f32 %v2453_v17, %v2436_v12 }
 0xf71   : > { %v2479_v26 = vmul.f32 0.7978846, %v2471_v21  ;;  %6619 = vtanh.f32 %v2478_v18  ;;  %v2481_v32 = vmul.f32 0.7978846, %v2473_v27  ;;  %v2439_v58 = vmul.f32 0.5, %v2389_v53 }
 0xf72   : > { %v2474_v28 = vadd.f32 %v2466_v24, %v2391_v63  ;;  %v2476_v30 = vadd.f32 %v2468_v25, %v7550_v37  ;;  %v2467_v33 = vmul.f32 %v2459_v35, %v2393_v11  ;;  %6621 = vtanh.f32 %v2480_v19 }
 0xf73   : > { %v2469_v31 = vmul.f32 %v2461_v23, %v2436_v12  ;;  %6623 = vtanh.f32 %v2479_v26  ;;  %v2438_v61 = vmul.f32 0.5, %v7539_v47  ;;  %v2442_v2 = vmul.f32 0.5, %v2391_v63 }
 0xf74   : > { %v2482_v36 = vmul.f32 0.7978846, %v2474_v28  ;;  %v2484_v38 = vmul.f32 0.7978846, %v2476_v30  ;;  %v2475_v39 = vadd.f32 %v2467_v33, %v2393_v11  ;;  %6625 = vtanh.f32 %v2481_v32 }
 0xf75   : > { %v2477_v42 = vadd.f32 %v2469_v31, %v2436_v12  ;;  %v2443_v8 = vmul.f32 0.5, %v2393_v11  ;;  %v2444_v14 = vmul.f32 0.5, %v7550_v37  ;;  %v2441_v40 = vmul.f32 0.5, %v7545_v54 }
 0xf76   : > { %6627 = vtanh.f32 %v2482_v36  ;;  %v2483_v44 = vmul.f32 0.7978846, %v2475_v39  ;;  %v2445_v59 = vmul.f32 0.5, %v2436_v12  ;;  %v2440_v47 = vmul.f32 0.5, %v7541_v48  ;;  %v5438_v12 = vld [vmem:[%s8249_s12] ss:$0 sm:$0xff] }
 0xf77   : > { %6629 = vtanh.f32 %v2484_v38  ;;  %v2485_v46 = vmul.f32 0.7978846, %v2477_v42 }
 0xf78   : > { %6631 = vtanh.f32 %v2483_v44 }
 0xf79   : > { %6633 = vtanh.f32 %v2485_v46 }
 0xf7e   : > { %v6620_v49 = vpop.eup %6619 }
 0xf7f   : > { %v6622_v50 = vpop.eup %6621  ;;  %v2494_v3 = vadd.f32 1.0, %v6620_v49 }
 0xf80   : > { %v6624_v51 = vpop.eup %6623  ;;  %v2496_v15 = vadd.f32 1.0, %v6622_v50  ;;  %v6459_v50 = vld [vmem:[%s8240_s3 + $0x168] ss:$12 sps:$4 sm:$0xff]  }
 0xf81   : > { %v6626_v52 = vpop.eup %6625  ;;  %v2495_v60 = vadd.f32 1.0, %v6624_v51  ;;  %v2502_v19 = vmul.f32 %v2494_v3, %v2438_v61  ;;  %v6461_v51 = vld [vmem:[%s8240_s3 + $0x16c] ss:$12 sps:$4 sm:$0xff]  }
 0xf82   : > { %v2497_v1 = vadd.f32 1.0, %v6626_v52  ;;  %v2504_v24 = vmul.f32 %v2496_v15, %v2440_v47  ;;  %3083 = vmatprep.subr.bf16.mxu0 %v6461_v51  ;;  %v6467_v3 = vld [vmem:[%s8240_s3 + $0x138] ss:$12 sps:$4 sm:$0xff]   ;;  %v6486_v47 = vld [vmem:[%s8240_s3 + $0xe0] ss:$12 sps:$4 sm:$0xff]  }
 0xf83   : > { %v6628_v55 = vpop.eup %6627  ;;  %v2503_v45 = vmul.f32 %v2495_v60, %v2439_v58  ;;  %v6477_v15 = vld [vmem:[%s8240_s3 + $0x10c] ss:$12 sps:$4 sm:$0xff]  }
 0xf84   : > { %v6630_v56 = vpop.eup %6629  ;;  %v2498_v62 = vadd.f32 1.0, %v6628_v55  ;;  %v2505_v18 = vmul.f32 %v2497_v1, %v2441_v40  ;;  %v6465_v1 = vld [vmem:[%s8240_s3 + $0x154] ss:$12 sps:$4 sm:$0xff]   ;;  %v6478_v40 = vld [vmem:[%s8240_s3 + $0x110] ss:$12 sps:$4 sm:$0xff]  }
 0xf85   : > { %v6632_v0 = vpop.eup %6631  ;;  %v2500_v4 = vadd.f32 1.0, %v6630_v56 }
 0xf86   : > { %v6634_v5 = vpop.eup %6633  ;;  %v2499_v10 = vadd.f32 1.0, %v6632_v0  ;;  %v2506_v53 = vmul.f32 %v2498_v62, %v2442_v2  ;;  %v6463_v0 = vld [vmem:[%s8240_s3 + $0x150] ss:$12 sps:$4 sm:$0xff]   ;;  %v6466_v2 = vld [vmem:[%s8240_s3 + $0x158] ss:$12 sps:$4 sm:$0xff]  }
 0xf87   : > { %v2501_v16 = vadd.f32 1.0, %v6634_v5  ;;  %v2508_v17 = vmul.f32 %v2500_v4, %v2444_v14  ;;  %v6469_v4 = vld [vmem:[%s8240_s3 + $0x13c] ss:$12 sps:$4 sm:$0xff]   ;;  %v6470_v5 = vld [vmem:[%s8240_s3 + $0x140] ss:$12 sps:$4 sm:$0xff]  }
 0xf88   : > { %v2507_v22 = vmul.f32 %v2499_v10, %v2443_v8  ;;  %v2510_v25 = vpack.c.bf16 %v2506_v53, %v2502_v19  ;;  %v6473_v8 = vld [vmem:[%s8240_s3 + $0x124] ss:$12 sps:$4 sm:$0xff]   ;;  %v6474_v10 = vld [vmem:[%s8240_s3 + $0x128] ss:$12 sps:$4 sm:$0xff]   ;;  %v6471_v14 = vld [vmem:[%s8240_s3 + $0x120] ss:$12 sps:$4 sm:$0xff]  }
 0xf89   : > { %v2509_v63 = vmul.f32 %v2501_v16, %v2445_v59  ;;  %v2512_v37 = vpack.c.bf16 %v2508_v17, %v2504_v24  ;;  %v6475_v59 = vld [vmem:[%s8240_s3 + $0x108] ss:$12 sps:$4 sm:$0xff]   ;;  %v6482_v53 = vld [vmem:[%s8240_s3 + $0xf8] ss:$12 sps:$4 sm:$0xff]   ;;  %v6487_v19 = vld [vmem:[%s8240_s3 + $0xc0] ss:$12 sps:$4 sm:$0xff]  }
 0xf8a   : > { %v2511_v21 = vpack.c.bf16 %v2507_v22, %v2503_v45  ;;  %v6481_v16 = vld [vmem:[%s8240_s3 + $0xf4] ss:$12 sps:$4 sm:$0xff]   ;;  %v6479_v45 = vld [vmem:[%s8240_s3 + $0xf0] ss:$12 sps:$4 sm:$0xff]   ;;  %v6483_v17 = vld [vmem:[%s8240_s3 + $0xd8] ss:$12 sps:$4 sm:$0xff]  }
 0xf8b   : > { %v2513_v11 = vpack.c.bf16 %v2509_v63, %v2505_v18  ;;  %v6485_v22 = vld [vmem:[%s8240_s3 + $0xdc] ss:$12 sps:$4 sm:$0xff]   ;;  %v6489_v18 = vld [vmem:[%s8240_s3 + $0xc4] ss:$12 sps:$4 sm:$0xff]  }
 0xf8c   : > { %2809 = vmatprep.mubr.bf16.mxu0 %v2511_v21  ;;  %v6490_v63 = vld [vmem:[%s8240_s3 + $0xc8] ss:$12 sps:$4 sm:$0xff]  }
 0xf8d   : > { %2850 = vmatprep.mubr.bf16.mxu1 %v2513_v11  ;;  %2810 = vmatmul.mubr.bf16.vlgmr.msra.gmra.mxu0 %v2510_v25 }
 0xf8e   : > { %2851 = vmatmul.mubr.bf16.vlgmr.msra.gmra.mxu1 %v2512_v37  ;;  %3115 = vmatprep.mubr.bf16.mxu0 %v6769_v43 }
 0xf8f   : > { %6136 = vmatprep.mubr.msk.bf16.mxu1 %vm6770_vm0, %v6768_v20  ;;  %3084 = vmatpush1.bf16.msra.mxu0 %v6459_v50 }
 0xf90   : > { %3085 = vmatprep.subr.bf16.mxu0 %v6465_v1 }
 0xf93   : > { %3086 = vmatpush1.bf16.msra.mxu0 %v6463_v0 }
 0xf94   : > { %3087 = vmatprep.subr.bf16.mxu0 %v6469_v4 }
 0xf97   : > { %3088 = vmatpush1.bf16.msra.mxu0 %v6467_v3 }
 0xf98   : > { %3089 = vmatprep.subr.bf16.mxu0 %v6473_v8 }
 0xf9b   : > { %3090 = vmatpush1.bf16.msra.mxu0 %v6471_v14 }
 0xf9c   : > { %3091 = vmatprep.subr.bf16.mxu0 %v6477_v15 }
 0xf9f   : > { %3092 = vmatpush1.bf16.msra.mxu0 %v6475_v59 }
 0xfa0   : > { %3093 = vmatprep.subr.bf16.mxu0 %v6481_v16 }
 0xfa3   : > { %3094 = vmatpush1.bf16.msra.mxu0 %v6479_v45 }
 0xfa4   : > { %3095 = vmatprep.subr.bf16.mxu0 %v6485_v22 }
 0xfa7   : > { %3096 = vmatpush1.bf16.msra.mxu0 %v6483_v17 }
 0xfa8   : > { %3097 = vmatprep.subr.bf16.mxu0 %v6489_v18 }
 0xfab   : > { %3098 = vmatpush1.bf16.msra.mxu0 %v6487_v19 }
 0xfac   : > { %6140 = vmatprep.subr.bf16.mxu0 %v6768_v20 }
0x104d   : > { %v5838_v54 = vpop.f32.mrf.mxu0 }
0x104e   : > { %v5860_v48 = vpop.f32.mrf.mxu1 }
0x104f   : > { %v5839_v35 = vpop.f32.mrf.mxu0 }
0x1050   : > { %v5840_v23 = vadd.f32 %v5839_v35, %v5838_v54  ;;  %v5861_v26 = vpop.f32.mrf.mxu1  ;;  %v5473_v35 = vld [vmem:[%s8238_s1 + $0x1] ss:$0 sm:$0xff] }
0x1051   : > { %v5841_v27 = vpop.f32.mrf.mxu0  ;;  %v5862_v30 = vadd.f32 %v5861_v26, %v5860_v48 }
0x1052   : > { %v2812_v28 = vadd.f32 %v5840_v23, %v5438_v12  ;;  %v5863_v33 = vpop.f32.mrf.mxu1 }
0x1053   : > { %v5842_v31 = vpop.f32.mrf.mxu0 }
0x1054   : > { %v2853_v32 = vadd.f32 %v5862_v30, %v2812_v28  ;;  %v5843_v36 = vadd.f32 %v5842_v31, %v5841_v27  ;;  %v5864_v38 = vpop.f32.mrf.mxu1  ;;  %v5474_v28 = vld [vmem:[%s8239_s2 + $0x1] ss:$0 sm:$0xff] }
0x1055   : > { %v5865_v42 = vadd.f32 %v5864_v38, %v5863_v33 }
0x1056   : > { %v2815_v39 = vadd.f32 %v5843_v36, %v5438_v12  ;;  %v7574_v44 = vadd.f32 %v2853_v32, %v7310_v57  ;;  %v6462_v57 = vld [vmem:[%s8240_s3 + $0x170] ss:$12 sps:$4 sm:$0xff]   ;;  %v5507_v36 = vld [vmem:[%s8241_s4 + $0x3] sm:$0x7] }
0x1057   : > { %6121 = vmatpush3.bf16.msra.mxu1 %v6462_v57  ;;  %v2947_v38 = vrot.slane %v5507_v36, %v7065_v7  ;;  %v2951_v51 = vrot.slane %v5507_v36, %v7071_v9 }
0x1058   : > { %v2856_v46 = vadd.f32 %v5865_v42, %v2815_v39  ;;  %2865 = vadd.xlane.f32.xlu0 %v7574_v44  ;;  %6122 = vmatprep.subr.bf16.mxu1 %v6768_v20 }
0x105a   : > { %v7578_v49 = vadd.f32 %v2856_v46, %v7316_v29 }
0x105b   : > { %6123 = vmatpush3.bf16.msra.mxu1 %v6466_v2 }
0x105c   : > { %2867 = vadd.xlane.f32.xlu1 %v7578_v49  ;;  %6124 = vmatprep.subr.bf16.mxu1 %v6768_v20 }
0x105f   : > { %6125 = vmatpush3.bf16.msra.mxu1 %v6470_v5 }
0x1060   : > { %6126 = vmatprep.subr.bf16.mxu1 %v6768_v20 }
0x1063   : > { %6127 = vmatpush3.bf16.msra.mxu1 %v6474_v10 }
0x1064   : > { %6128 = vmatprep.subr.bf16.mxu1 %v6768_v20 }
0x1067   : > { %6129 = vmatpush3.bf16.msra.mxu1 %v6478_v40 }
0x1068   : > { %6130 = vmatprep.subr.bf16.mxu1 %v6768_v20 }
0x106b   : > { %6131 = vmatpush3.bf16.msra.mxu1 %v6482_v53 }
0x106c   : > { %6132 = vmatprep.subr.bf16.mxu1 %v6768_v20 }
0x106f   : > { %6133 = vmatpush3.bf16.msra.mxu1 %v6486_v47 }
0x1070   : > { %6134 = vmatprep.subr.bf16.mxu1 %v6768_v20 }
0x1073   : > { %6135 = vmatpush3.bf16.msra.mxu1 %v6490_v63 }
0x1074   : > { %6146 = vmatprep.subr.bf16.mxu1 %v6768_v20 }
0x10e1   : > { %v2866_v29 = vpop.xlane.xlu0 %2865 }
0x10e2   : > { %v2869_v52 = vmul.f32 0.0078125, %v2866_v29 }
0x10e4   : > { %v7592_v55 = vsub.f32 %v7574_v44, %v2869_v52 }
0x10e5   : > { %v2868_v56 = vpop.xlane.xlu1 %2867 }
0x10e6   : > { %v2870_v58 = vmul.f32 0.0078125, %v2868_v56  ;;  %v2873_v60 = vmul.f32 %v7592_v55, %v7592_v55 }
0x10e8   : > { %v7597_v61 = vsub.f32 %v7578_v49, %v2870_v58  ;;  %2875 = vadd.xlane.f32.xlu0 %v2873_v60 }
0x10ea   : > { %v2874_v62 = vmul.f32 %v7597_v61, %v7597_v61 }
0x10ec   : > { %2877 = vadd.xlane.f32.xlu1 %v2874_v62 }
0x1171   : > { %v2876_v21 = vpop.xlane.xlu0 %2875 }
0x1172   : > { %v2879_v24 = vmul.f32 0.0078125, %v2876_v21 }
0x1174   : > { %v2881_v11 = vadd.f32 1e-05, %v2879_v24 }
0x1175   : > { %v2878_v25 = vpop.xlane.xlu1 %2877 }
0x1176   : > { %6635 = vrsqrt.f32 %v2881_v11  ;;  %v2880_v37 = vmul.f32 0.0078125, %v2878_v25 }
0x1178   : > { %v2882_v54 = vadd.f32 1e-05, %v2880_v37 }
0x117a   : > { %6637 = vrsqrt.f32 %v2882_v54 }
0x1183   : > { %v6636_v48 = vpop.eup %6635 }
0x1184   : > { %v2885_v12 = vmul.f32 %v6636_v48, %v7592_v55  ;;  %v2943_v55 = vrot.slane %v5507_v36, %v7075_v13 }
0x1186   : > { %v2893_v27 = vmul.f32 %v5473_v35, %v2885_v12 }
0x1187   : > { %v6638_v23 = vpop.eup %6637 }
0x1188   : > { %v2886_v26 = vmul.f32 %v6638_v23, %v7597_v61  ;;  %v2901_v33 = vadd.f32 %v5474_v28, %v2893_v27 }
0x118a   : > { %v2894_v30 = vmul.f32 %v5473_v35, %v2886_v26 }
0x118c   : > { %v2902_v31 = vadd.f32 %v5474_v28, %v2894_v30 }
0x118e   : > { %v2903_v32 = vpack.c.bf16 %v2902_v31, %v2901_v33 }
0x1190   : > { %3116 = vmatmul.mubr.bf16.vlgmr.msra.gmra.mxu0 %v2903_v32  ;;  %6137 = vmatmul.mubr.bf16.vlgmr.msra.gmra.mxu1 %v2903_v32 }
0x1191   : > { %6142 = vmatprep.mubr.msk.bf16.mxu0 %vm6770_vm0, %v6768_v20  ;;  %6148 = vmatprep.mubr.msk.bf16.mxu1 %vm6770_vm0, %v6768_v20 }
0x1250   : > { %v3117_v39 = vpop.f32.mrf.mxu0  ;;  %v3160_v42 = vpop.f32.mrf.mxu1 }
0x1251   : > { %v3161_v61 = vadd.f32 %v3160_v42, %v2951_v51  ;;  %v3118_v1 = vadd.f32 %v3117_v39, %v2943_v55 }
0x1252   : > { %v3119_v46 = vpop.f32.mrf.mxu0  ;;  %v6138_v50 = vpop.f32.mrf.mxu1 }
0x1253   : > { %v3120_v57 = vadd.f32 %v3119_v46, %v2947_v38  ;;  %v7697_v3 = vpack.c.bf16 %v3161_v61, %v3161_v61  ;;  %v7701_v8 = vpack.c.bf16 %v3118_v1, %v3118_v1 }
0x1254   : > { %v3121_v29 = vpop.f32.mrf.mxu0  ;;  %v3163_v52 = vpop.f32.mrf.mxu1 }
0x1255   : > { %v7690_v56 = vpack.c.bf16 %v3120_v57, %v3120_v57  ;;  %v3164_v4 = vadd.f32 %v3163_v52, %v2951_v51  ;;  %v3122_v10 = vadd.f32 %v3121_v29, %v2943_v55  ;;  %v3314_v15 = vsel %vm1086_vm2, %v7697_v3, 0 }
0x1256   : > { %v3123_v58 = vpop.f32.mrf.mxu0  ;;  %v6139_v60 = vpop.f32.mrf.mxu1 }
0x1257   : > { %v3124_v62 = vadd.f32 %v3123_v58, %v2947_v38  ;;  %v3194_v0 = vsel %vm961_vm1, %v7690_v56, 0  ;;  %v7704_v14 = vpack.c.bf16 %v3164_v4, %v3164_v4  ;;  %v7712_v40 = vpack.c.bf16 %v3122_v10, %v3122_v10 }
0x1258   : > { %6141 = vmatpush3.bf16.xpose.msra.mxu0 %v3194_v0 }
0x1259   : > { %v7694_v2 = vpack.c.bf16 %v3124_v62, %v3124_v62  ;;  %6152 = vmatprep.subr.bf16.mxu0 %v6768_v20  ;;  %v3360_v59 = vsel %vm1086_vm2, %v7704_v14, 0 }
0x125b   : > { %v3240_v5 = vsel %vm961_vm1, %v7694_v2, 0 }
0x125c   : > { %6147 = vmatpush3.bf16.xpose.msra.mxu1 %v3240_v5 }
0x125d   : > { %6158 = vmatprep.subr.bf16.mxu1 %v6768_v20 }
0x125f   : > { %6143 = vmatmul.mubr.msk.bf16.vlgmr.msra.gmra.mxu0 %vm961_vm1, %v7701_v8 }
0x1260   : > { %6153 = vmatpush3.bf16.msra.mxu0 %v3314_v15  ;;  %6154 = vmatprep.mubr.msk.bf16.mxu0 %vm6770_vm0, %v6768_v20 }
0x1261   : > { %6164 = vmatprep.subr.bf16.mxu0 %v6768_v20 }
0x1263   : > { %6149 = vmatmul.mubr.msk.bf16.vlgmr.msra.gmra.mxu1 %vm961_vm1, %v7712_v40 }
0x1264   : > { %6159 = vmatpush3.bf16.msra.mxu1 %v3360_v59  ;;  %6160 = vmatprep.mubr.msk.bf16.mxu1 %vm6770_vm0, %v6768_v20 }
0x1265   : > { %6170 = vmatprep.subr.bf16.mxu1 %v6768_v20 }
0x131f   : > { %v3230_v16 = vpop.f32.mrf.mxu0 }
0x1320   : > { %v3282_v53 = vmul.f32 0.17677669, %v3230_v16 }
0x1321   : > { %v6144_v45 = vpop.f32.mrf.mxu0 }
0x1322   : > { %v3284_v22 = vadd.f32 %v3282_v53, %v7112_v41 }
0x1323   : > { %v3233_v47 = vpop.f32.mrf.mxu0  ;;  %v3276_v17 = vpop.f32.mrf.mxu1 }
0x1324   : > { %v3283_v18 = vmul.f32 0.17677669, %v3276_v17  ;;  %v3286_v63 = vsel %vm1058_vm4, %v3284_v22, -inf }
0x1325   : > { %v6150_v19 = vpop.f32.mrf.mxu1  ;;  %3287 = vmax.xlane.f32.xlu0 %v3286_v63  ;;  %v6145_v21 = vpop.f32.mrf.mxu0 }
0x1326   : > { %v3285_v24 = vadd.f32 %v3283_v18, %v7112_v41 }
0x1327   : > { %v3279_v11 = vpop.f32.mrf.mxu1 }
0x1328   : > { %v3289_v25 = vsel %vm1058_vm4, %v3285_v24, -inf }
0x1329   : > { %3290 = vmax.xlane.f32.xlu1 %v3289_v25  ;;  %v6151_v37 = vpop.f32.mrf.mxu1 }
0x133a   : > { %3459 = vrot.lane.b32.xlu1 %v7694_v2, %s8284_s20 }
0x13ae   : > { %v3288_v54 = vpop.xlane.xlu0 %3287 }
0x13af   : > { %v3292_v48 = vsub.f32 %v3284_v22, %v3288_v54 }
0x13b1   : > { %v3294_v12 = vmul.f32 1.442695, %v3292_v48 }
0x13b2   : > { %v3291_v35 = vpop.xlane.xlu1 %3290 }
0x13b3   : > { %6639 = vpow2.f32 %v3294_v12  ;;  %v3293_v23 = vsub.f32 %v3285_v24, %v3291_v35 }
0x13b5   : > { %v3296_v26 = vmul.f32 1.442695, %v3293_v23 }
0x13b6   : > { %v3460_v31 = vpop.permute.xlu1 %3459 }
0x13b7   : > { %6641 = vpow2.f32 %v3296_v26  ;;  %v3465_v52 = vsel %vm961_vm1, %v3460_v31, 0 }
0x13c0   : > { %v6640_v27 = vpop.eup %6639 }
0x13c1   : > { %v3298_v28 = vsel %vm1058_vm4, %v6640_v27, 0.0 }
0x13c2   : > { %3299 = vadd.xlane.f32.xlu0 %v3298_v28 }
0x13c4   : > { %v6642_v30 = vpop.eup %6641 }
0x13c5   : > { %v3301_v33 = vsel %vm1058_vm4, %v6642_v30, 0.0 }
0x13c6   : > { %3302 = vadd.xlane.f32.xlu1 %v3301_v33 }
0x13d7   : > { %3404 = vrot.lane.b32.xlu1 %v7701_v8, %s8284_s20 }
0x13d8   : > { %3407 = vrot.lane.b32.xlu0 %v7690_v56, %s8284_s20 }
0x13db   : > { %3456 = vrot.lane.b32.xlu1 %v7712_v40, %s8284_s20 }
0x144b   : > { %v3300_v32 = vpop.xlane.xlu0 %3299 }
0x144c   : > { %6643 = vrcp.f32 %v3300_v32 }
0x144f   : > { %v3303_v36 = vpop.xlane.xlu1 %3302  ;;  %v3408_v42 = vpop.permute.xlu0 %3407 }
0x1450   : > { %6645 = vrcp.f32 %v3303_v36  ;;  %v3413_v51 = vsel %vm961_vm1, %v3408_v42, 0 }
0x1453   : > { %v3405_v55 = vpop.permute.xlu1 %3404 }
0x1457   : > { %v3457_v58 = vpop.permute.xlu1 %3456 }
0x1459   : > { %v6644_v38 = vpop.eup %6643 }
0x145a   : > { %v3306_v39 = vmul.f32 %v6644_v38, %v6640_v27 }
0x145c   : > { %v3308_v46 = vpack.c.bf16 %v3306_v39, %v3306_v39 }
0x145d   : > { %v6646_v50 = vpop.eup %6645 }
0x145e   : > { %6155 = vmatmul.mubr.msk.bf16.vlgmr.msra.gmra.mxu0 %vm1058_vm4, %v3308_v46  ;;  %v3307_v57 = vmul.f32 %v6646_v50, %v6642_v30  ;;  %v6493_v50 = vld [vmem:[%s8242_s5 + $0x58] sm:$0xff]  }
0x145f   : > { %6165 = vmatpush3.bf16.xpose.msra.mxu0 %v3413_v51  ;;  %6166 = vmatprep.mubr.msk.bf16.mxu0 %vm6770_vm0, %v6768_v20 }
0x1460   : > { %v3309_v29 = vpack.c.bf16 %v3307_v57, %v3307_v57  ;;  %6176 = vmatprep.subr.bf16.mxu0 %v6768_v20 }
0x1462   : > { %6161 = vmatmul.mubr.msk.bf16.vlgmr.msra.gmra.mxu1 %vm1058_vm4, %v3309_v29 }
0x1463   : > { %6171 = vmatpush3.bf16.xpose.msra.mxu1 %v3465_v52  ;;  %6172 = vmatprep.mubr.msk.bf16.mxu1 %vm6770_vm0, %v6768_v20  ;;  %v6491_v52 = vld [vmem:[%s8242_s5 + $0x48] sm:$0xff]  }
0x1464   : > { %6182 = vmatprep.subr.bf16.mxu1 %v6768_v20 }
0x1466   : > { %6167 = vmatmul.mubr.msk.bf16.vlgmr.msra.gmra.mxu0 %vm961_vm1, %v3405_v55 }
0x1467   : > { %6178 = vmatprep.mubr.msk.bf16.mxu0 %vm6770_vm0, %v6768_v20 }
0x146a   : > { %6173 = vmatmul.mubr.msk.bf16.vlgmr.msra.gmra.mxu1 %vm961_vm1, %v3457_v58 }
0x146b   : > { %6184 = vmatprep.mubr.msk.bf16.mxu1 %vm6770_vm0, %v6768_v20 }
0x151e   : > { %v7752_v60 = vpop.f32.mrf.mxu0 }
0x1520   : > { %v6156_v61 = vpop.f32.mrf.mxu0 }
0x1521   : > { %v6492_v61 = vld [vmem:[%s8242_s5 + $0x40] sm:$0xff]  }
0x1522   : > { %v3353_v62 = vpop.f32.mrf.mxu0  ;;  %v7754_v0 = vpop.f32.mrf.mxu1 }
0x1523   : > { %v3402_v1 = vpack.c.bf16 %v7754_v0, %v7752_v60 }
0x1524   : > { %v6157_v4 = vpop.f32.mrf.mxu0  ;;  %v6162_v5 = vpop.f32.mrf.mxu1 }
0x1526   : > { %v3399_v10 = vpop.f32.mrf.mxu1  ;;  %v3449_v15 = vpop.f32.mrf.mxu0 }
0x1527   : > { %v3507_v59 = vmul.f32 0.17677669, %v3449_v15  ;;  %v6494_v10 = vld [vmem:[%s8242_s5 + $0x50] sm:$0xff]  }
0x1528   : > { %v6163_v16 = vpop.f32.mrf.mxu1  ;;  %v6168_v53 = vpop.f32.mrf.mxu0 }
0x1529   : > { %v3509_v45 = vadd.f32 %v3507_v59, %v7112_v41 }
0x152a   : > { %v3452_v22 = vpop.f32.mrf.mxu0  ;;  %v3501_v47 = vpop.f32.mrf.mxu1 }
0x152b   : > { %v3508_v17 = vmul.f32 0.17677669, %v3501_v47  ;;  %v3511_v18 = vsel %vm1058_vm4, %v3509_v45, -inf }
0x152c   : > { %v6174_v63 = vpop.f32.mrf.mxu1  ;;  %3512 = vmax.xlane.f32.xlu0 %v3511_v18  ;;  %v6169_v19 = vpop.f32.mrf.mxu0 }
0x152d   : > { %v3510_v21 = vadd.f32 %v3508_v17, %v7112_v41 }
0x152e   : > { %v3504_v24 = vpop.f32.mrf.mxu1 }
0x152f   : > { %v3514_v11 = vsel %vm1058_vm4, %v3510_v21, -inf }
0x1530   : > { %3515 = vmax.xlane.f32.xlu1 %v3514_v11  ;;  %v6175_v25 = vpop.f32.mrf.mxu1 }
0x1541   : > { %3585 = vrot.lane.b32.xlu1 %v7704_v14, %s8284_s20 }
0x1545   : > { %3748 = vrot.lane.b32.xlu1 %v7690_v56, %s8285_s29 }
0x1549   : > { %3798 = vrot.lane.b32.xlu1 %v7694_v2, %s8285_s29 }
0x154d   : > { %3796 = vrot.lane.b32.xlu1 %v7712_v40, %s8285_s29 }
0x15b5   : > { %v3513_v37 = vpop.xlane.xlu0 %3512 }
0x15b6   : > { %v3517_v54 = vsub.f32 %v3509_v45, %v3513_v37 }
0x15b8   : > { %v3519_v48 = vmul.f32 1.442695, %v3517_v54 }
0x15b9   : > { %v3516_v12 = vpop.xlane.xlu1 %3515 }
0x15ba   : > { %6647 = vpow2.f32 %v3519_v48  ;;  %v3518_v35 = vsub.f32 %v3510_v21, %v3516_v12 }
0x15bc   : > { %v3521_v23 = vmul.f32 1.442695, %v3518_v35 }
0x15bd   : > { %v3586_v26 = vpop.permute.xlu1 %3585 }
0x15be   : > { %6649 = vpow2.f32 %v3521_v23  ;;  %v3591_v27 = vsel %vm1086_vm2, %v3586_v26, 0 }
0x15bf   : > { %6183 = vmatpush3.bf16.msra.mxu1 %v3591_v27 }
0x15c0   : > { %6196 = vmatprep.subr.bf16.mxu1 %v6768_v20 }
0x15c1   : > { %v3749_v58 = vpop.permute.xlu1 %3748 }
0x15c2   : > { %v3754_v45 = vsel %vm961_vm1, %v3749_v58, 0 }
0x15c5   : > { %v3799_v62 = vpop.permute.xlu1 %3798 }
0x15c6   : > { %v3804_v4 = vsel %vm961_vm1, %v3799_v62, 0 }
0x15c7   : > { %v6648_v28 = vpop.eup %6647 }
0x15c8   : > { %v3523_v30 = vsel %vm1058_vm4, %v6648_v28, 0.0 }
0x15c9   : > { %3524 = vadd.xlane.f32.xlu0 %v3523_v30  ;;  %v3797_v5 = vpop.permute.xlu1 %3796 }
0x15cb   : > { %v6650_v33 = vpop.eup %6649 }
0x15cc   : > { %v3526_v31 = vsel %vm1058_vm4, %v6650_v33, 0.0 }
0x15cd   : > { %3527 = vadd.xlane.f32.xlu0 %v3526_v31 }
0x15e3   : > { %3536 = vrot.lane.b32.xlu0 %v7697_v3, %s8284_s20 }
0x15e7   : > { %3746 = vrot.lane.b32.xlu0 %v7701_v8, %s8285_s29 }
0x1652   : > { %v3525_v32 = vpop.xlane.xlu0 %3524 }
0x1653   : > { %6651 = vrcp.f32 %v3525_v32 }
0x1656   : > { %v3528_v36 = vpop.xlane.xlu0 %3527 }
0x1657   : > { %6653 = vrcp.f32 %v3528_v36 }
0x165a   : > { %v3537_v38 = vpop.permute.xlu0 %3536 }
0x165b   : > { %v3542_v39 = vsel %vm1086_vm2, %v3537_v38, 0 }
0x165c   : > { %6177 = vmatpush3.bf16.msra.mxu0 %v3542_v39 }
0x165d   : > { %6188 = vmatprep.subr.bf16.mxu0 %v6768_v20 }
0x165e   : > { %v3747_v18 = vpop.permute.xlu0 %3746 }
0x1660   : > { %v6652_v42 = vpop.eup %6651 }
0x1661   : > { %v3531_v46 = vmul.f32 %v6652_v42, %v6648_v28 }
0x1663   : > { %v3533_v51 = vpack.c.bf16 %v3531_v46, %v3531_v46 }
0x1664   : > { %v6654_v57 = vpop.eup %6653 }
0x1665   : > { %6179 = vmatmul.mubr.msk.bf16.vlgmr.msra.gmra.mxu0 %vm1058_vm4, %v3533_v51  ;;  %v3532_v29 = vmul.f32 %v6654_v57, %v6650_v33 }
0x1666   : > { %6189 = vmatpush3.bf16.msra.mxu0 %v6493_v50  ;;  %6192 = vmatprep.mubr.msk.bf16.mxu0 %vm6770_vm0, %v6768_v20 }
0x1667   : > { %v3534_v55 = vpack.c.bf16 %v3532_v29, %v3532_v29  ;;  %6190 = vmatprep.subr.bf16.mxu0 %v6768_v20 }
0x1669   : > { %6185 = vmatmul.mubr.msk.bf16.vlgmr.msra.gmra.mxu1 %vm1058_vm4, %v3534_v55 }
0x166a   : > { %6197 = vmatpush3.bf16.msra.mxu1 %v6491_v52  ;;  %6200 = vmatprep.mubr.msk.bf16.mxu1 %vm6770_vm0, %v6768_v20 }
0x166b   : > { %6198 = vmatprep.subr.bf16.mxu1 %v6768_v20  ;;  %6191 = vmatpush3.bf16.msra.mxu0 %v6494_v10 }
0x166c   : > { %6204 = vmatprep.subr.bf16.mxu0 %v6768_v20 }
0x166e   : > { %6199 = vmatpush3.bf16.msra.mxu1 %v6492_v61 }
0x166f   : > { %6210 = vmatprep.subr.bf16.mxu1 %v6768_v20 }
0x1671   : > { %6201 = vmatmul.mubr.msk.bf16.vlgmr.msra.gmra.mxu1 %vm961_vm1, %v3402_v1 }
0x1672   : > { %6211 = vmatpush3.bf16.xpose.msra.mxu1 %v3804_v4  ;;  %6212 = vmatprep.mubr.msk.bf16.mxu1 %vm6770_vm0, %v6768_v20 }
0x1673   : > { %6222 = vmatprep.subr.bf16.mxu1 %v6768_v20 }
0x1679   : > { %6213 = vmatmul.mubr.msk.bf16.vlgmr.msra.gmra.mxu1 %vm961_vm1, %v3797_v5 }
0x167a   : > { %6224 = vmatprep.mubr.msk.bf16.mxu1 %vm6770_vm0, %v6768_v20 }
0x1725   : > { %v3578_v60 = vpop.f32.mrf.mxu0 }
0x1727   : > { %v6180_v0 = vpop.f32.mrf.mxu0 }
0x1729   : > { %v3581_v1 = vpop.f32.mrf.mxu0  ;;  %v3627_v15 = vpop.f32.mrf.mxu1 }
0x172a   : > { %v3633_v59 = vpack.c.bf16 %v3627_v15, %v3578_v60 }
0x172b   : > { %v6181_v16 = vpop.f32.mrf.mxu0  ;;  %v6186_v53 = vpop.f32.mrf.mxu1 }
0x172c   : > { %6193 = vmatmul.mubr.msk.bf16.vlgmr.msra.gmra.mxu0 %vm961_vm1, %v3633_v59 }
0x172d   : > { %6205 = vmatpush3.bf16.xpose.msra.mxu0 %v3754_v45  ;;  %v3630_v22 = vpop.f32.mrf.mxu1  ;;  %6206 = vmatprep.mubr.msk.bf16.mxu0 %vm6770_vm0, %v6768_v20 }
0x172e   : > { %6216 = vmatprep.subr.bf16.mxu0 %v6768_v20 }
0x172f   : > { %v6187_v47 = vpop.f32.mrf.mxu1 }
0x1731   : > { %v7818_v17 = vpop.f32.mrf.mxu1 }
0x1733   : > { %v6202_v63 = vpop.f32.mrf.mxu1 }
0x1734   : > { %6207 = vmatmul.mubr.msk.bf16.vlgmr.msra.gmra.mxu0 %vm961_vm1, %v3747_v18  ;;  %v6495_v18 = vld [vmem:[%s8242_s5 + $0x68] sm:$0xff]   ;;  %v6496_v63 = vld [vmem:[%s8242_s5 + $0x60] sm:$0xff]  }
0x1735   : > { %v7821_v19 = vpop.f32.mrf.mxu1  ;;  %6218 = vmatprep.mubr.msk.bf16.mxu0 %vm6770_vm0, %v6768_v20 }
0x1737   : > { %v6203_v21 = vpop.f32.mrf.mxu1 }
0x1739   : > { %v3840_v24 = vpop.f32.mrf.mxu1 }
0x173a   : > { %v3847_v11 = vmul.f32 0.17677669, %v3840_v24 }
0x173b   : > { %v6214_v25 = vpop.f32.mrf.mxu1 }
0x173c   : > { %v3849_v37 = vadd.f32 %v3847_v11, %v7112_v41 }
0x173d   : > { %v3843_v54 = vpop.f32.mrf.mxu1 }
0x173e   : > { %v3853_v48 = vsel %vm1058_vm4, %v3849_v37, -inf }
0x173f   : > { %3854 = vmax.xlane.f32.xlu1 %v3853_v48  ;;  %v6215_v12 = vpop.f32.mrf.mxu1 }
0x1750   : > { %3922 = vrot.lane.b32.xlu1 %v7704_v14, %s8285_s29 }
0x1754   : > { %4031 = vrot.lane.b32.xlu1 %v7690_v56, %s8286_s26 }
0x1758   : > { %4081 = vrot.lane.b32.xlu1 %v7694_v2, %s8286_s26 }
0x175c   : > { %4079 = vrot.lane.b32.xlu1 %v7712_v40, %s8286_s26 }
0x17c8   : > { %v3855_v35 = vpop.xlane.xlu1 %3854 }
0x17c9   : > { %v3857_v27 = vsub.f32 %v3849_v37, %v3855_v35 }
0x17cb   : > { %v3860_v28 = vmul.f32 1.442695, %v3857_v27 }
0x17cc   : > { %v3923_v23 = vpop.permute.xlu1 %3922 }
0x17cd   : > { %v3928_v26 = vsel %vm1086_vm2, %v3923_v23, 0  ;;  %6655 = vpow2.f32 %v3860_v28 }
0x17ce   : > { %6223 = vmatpush3.bf16.msra.mxu1 %v3928_v26 }
0x17cf   : > { %6236 = vmatprep.subr.bf16.mxu1 %v6768_v20 }
0x17d0   : > { %v4032_v4 = vpop.permute.xlu1 %4031 }
0x17d1   : > { %v4037_v10 = vsel %vm961_vm1, %v4032_v4, 0 }
0x17d4   : > { %v4082_v12 = vpop.permute.xlu1 %4081 }
0x17d5   : > { %v4087_v27 = vsel %vm961_vm1, %v4082_v12, 0 }
0x17da   : > { %v6656_v42 = vpop.eup %6655 }
0x17db   : > { %v3865_v50 = vsel %vm1058_vm4, %v6656_v42, 0.0 }
0x17ec   : > { %v7837_v30 = vpop.f32.mrf.mxu0 }
0x17ee   : > { %v6194_v33 = vpop.f32.mrf.mxu0 }
0x17f0   : > { %v7839_v56 = vpop.f32.mrf.mxu0 }
0x17f2   : > { %v6195_v31 = vpop.f32.mrf.mxu0 }
0x17f3   : > { %v4080_v31 = vpop.permute.xlu1 %4079 }
0x17f4   : > { %v3790_v2 = vpop.f32.mrf.mxu0 }
0x17f5   : > { %v3846_v32 = vmul.f32 0.17677669, %v3790_v2 }
0x17f6   : > { %v6208_v36 = vpop.f32.mrf.mxu0 }
0x17f7   : > { %v3848_v40 = vadd.f32 %v3846_v32, %v7112_v41 }
0x17f8   : > { %v3793_v38 = vpop.f32.mrf.mxu0 }
0x17f9   : > { %v3850_v39 = vsel %vm1058_vm4, %v3848_v40, -inf }
0x17fa   : > { %3851 = vmax.xlane.f32.xlu0 %v3850_v39  ;;  %v6209_v46 = vpop.f32.mrf.mxu0  ;;  %v3740_v39 = vadd.f32 %v7818_v17, %v7837_v30 }
0x17fe   : > { %3866 = vadd.xlane.f32.xlu0 %v3865_v50 }
0x1883   : > { %v3852_v51 = vpop.xlane.xlu0 %3851 }
0x1884   : > { %v3856_v57 = vsub.f32 %v3848_v40, %v3852_v51  ;;  %v3743_v51 = vadd.f32 %v7821_v19, %v7839_v56 }
0x1886   : > { %v3858_v29 = vmul.f32 1.442695, %v3856_v57 }
0x1887   : > { %v3867_v52 = vpop.xlane.xlu0 %3866 }
0x1888   : > { %6657 = vpow2.f32 %v3858_v29 }
0x1889   : > { %6659 = vrcp.f32 %v3867_v52 }
0x1895   : > { %v6658_v55 = vpop.eup %6657 }
0x1896   : > { %v6660_v58 = vpop.eup %6659  ;;  %v3862_v61 = vsel %vm1058_vm4, %v6658_v55, 0.0 }
0x1897   : > { %3863 = vadd.xlane.f32.xlu0 %v3862_v61  ;;  %v3871_v62 = vmul.f32 %v6660_v58, %v6656_v42 }
0x1899   : > { %v3873_v5 = vpack.c.bf16 %v3871_v62, %v3871_v62 }
0x189b   : > { %6225 = vmatmul.mubr.msk.bf16.vlgmr.msra.gmra.mxu1 %vm1058_vm4, %v3873_v5 }
0x189c   : > { %6237 = vmatpush3.bf16.xpose.msra.mxu1 %v4037_v10  ;;  %6238 = vmatprep.mubr.msk.bf16.mxu1 %vm6770_vm0, %v6768_v20 }
0x189d   : > { %6248 = vmatprep.subr.bf16.mxu1 %v6768_v20 }
0x18ad   : > { %3874 = vrot.lane.b32.xlu0 %v7697_v3, %s8285_s29 }
0x18b1   : > { %4029 = vrot.lane.b32.xlu0 %v7701_v8, %s8286_s26 }
0x1920   : > { %v3864_v60 = vpop.xlane.xlu0 %3863 }
0x1921   : > { %6661 = vrcp.f32 %v3864_v60 }
0x1924   : > { %v3875_v0 = vpop.permute.xlu0 %3874 }
0x1925   : > { %v3880_v1 = vsel %vm1086_vm2, %v3875_v0, 0 }
0x1926   : > { %6217 = vmatpush3.bf16.msra.mxu0 %v3880_v1 }
0x1927   : > { %6228 = vmatprep.subr.bf16.mxu0 %v6768_v20 }
0x1928   : > { %v4030_v15 = vpop.permute.xlu0 %4029 }
0x1929   : > { %6239 = vmatmul.mubr.msk.bf16.vlgmr.msra.gmra.mxu1 %vm961_vm1, %v4030_v15 }
0x192a   : > { %6250 = vmatprep.mubr.msk.bf16.mxu1 %vm6770_vm0, %v6768_v20 }
0x192e   : > { %v6662_v59 = vpop.eup %6661 }
0x192f   : > { %v3870_v16 = vmul.f32 %v6662_v59, %v6658_v55 }
0x1931   : > { %v3872_v53 = vpack.c.bf16 %v3870_v16, %v3870_v16 }
0x1933   : > { %6219 = vmatmul.mubr.msk.bf16.vlgmr.msra.gmra.mxu0 %vm1058_vm4, %v3872_v53 }
0x1934   : > { %6232 = vmatprep.mubr.msk.bf16.mxu0 %vm6770_vm0, %v6768_v20  ;;  %6229 = vmatpush3.bf16.msra.mxu0 %v6495_v18  ;;  %v6498_v18 = vld [vmem:[%s8242_s5 + $0x70] sm:$0xff]  }
0x1935   : > { %6230 = vmatprep.subr.bf16.mxu0 %v6768_v20 }
0x1938   : > { %6231 = vmatpush3.bf16.msra.mxu0 %v6496_v63 }
0x1939   : > { %6242 = vmatprep.subr.bf16.mxu0 %v6768_v20 }
0x195b   : > { %v3964_v8 = vpop.f32.mrf.mxu1 }
0x195d   : > { %v6226_v45 = vpop.f32.mrf.mxu1 }
0x195f   : > { %v3967_v22 = vpop.f32.mrf.mxu1 }
0x1961   : > { %v6227_v47 = vpop.f32.mrf.mxu1 }
0x1962   : > { %v6497_v47 = vld [vmem:[%s8242_s5 + $0x78] sm:$0xff]  }
0x19e9   : > { %v4073_v21 = vpop.f32.mrf.mxu1 }
0x19ea   : > { %v4129_v24 = vmul.f32 0.17677669, %v4073_v21 }
0x19eb   : > { %v6240_v11 = vpop.f32.mrf.mxu1 }
0x19ec   : > { %v4131_v25 = vadd.f32 %v4129_v24, %v7112_v41 }
0x19ed   : > { %v4076_v37 = vpop.f32.mrf.mxu1 }
0x19ee   : > { %v4133_v54 = vsel %vm1058_vm4, %v4131_v25, -inf }
0x19ef   : > { %4134 = vmax.xlane.f32.xlu0 %v4133_v54  ;;  %v6241_v48 = vpop.f32.mrf.mxu1 }
0x19f3   : > { %v3916_v35 = vpop.f32.mrf.mxu0 }
0x19f4   : > { %v3970_v23 = vpack.c.bf16 %v3964_v8, %v3916_v35 }
0x19f5   : > { %v6220_v26 = vpop.f32.mrf.mxu0 }
0x19f6   : > { %6233 = vmatmul.mubr.msk.bf16.vlgmr.msra.gmra.mxu0 %vm961_vm1, %v3970_v23  ;;  %v5577_v26 = vld [vmem:[%s8243_s6 + $0x1] ss:$0 sm:$0xff] }
0x19f7   : > { %6243 = vmatpush3.bf16.xpose.msra.mxu0 %v4087_v27  ;;  %v3919_v28 = vpop.f32.mrf.mxu0  ;;  %6244 = vmatprep.mubr.msk.bf16.mxu0 %vm6770_vm0, %v6768_v20 }
0x19f8   : > { %6254 = vmatprep.subr.bf16.mxu0 %v6768_v20 }
0x19f9   : > { %v6221_v33 = vpop.f32.mrf.mxu0 }
0x19fe   : > { %6245 = vmatmul.mubr.msk.bf16.vlgmr.msra.gmra.mxu0 %vm961_vm1, %v4080_v31 }
0x19ff   : > { %6256 = vmatprep.mubr.msk.bf16.mxu0 %vm6770_vm0, %v6768_v20 }
0x1a78   : > { %v4135_v2 = vpop.xlane.xlu0 %4134 }
0x1a79   : > { %v4139_v32 = vsub.f32 %v4131_v25, %v4135_v2 }
0x1a7b   : > { %v4141_v36 = vmul.f32 1.442695, %v4139_v32 }
0x1a7d   : > { %6663 = vpow2.f32 %v4141_v36  ;;  %v6499_v36 = vld [vmem:[%s8246_s9 + $0x1e0] ss:$16 sps:$4 sm:$0xff]  }
0x1a8a   : > { %v6664_v40 = vpop.eup %6663 }
0x1a8b   : > { %v4145_v38 = vsel %vm1058_vm4, %v6664_v40, 0.0 }
0x1a8c   : > { %4146 = vadd.xlane.f32.xlu0 %v4145_v38 }
0x1ab6   : > { %v4020_v42 = vpop.f32.mrf.mxu0 }
0x1ab7   : > { %v4027_v46 = vadd.f32 %v4020_v42, %v3740_v39 }
0x1ab8   : > { %v6234_v50 = vpop.f32.mrf.mxu0 }
0x1aba   : > { %v4023_v57 = vpop.f32.mrf.mxu0 }
0x1abb   : > { %v4028_v29 = vadd.f32 %v4023_v57, %v3743_v51 }
0x1abc   : > { %v6235_v52 = vpop.f32.mrf.mxu0 }
0x1abd   : > { %v6505_v52 = vld [vmem:[%s8246_s9 + $0x1c0] ss:$16 sps:$4 sm:$0xff]  }
0x1abe   : > { %v4123_v55 = vpop.f32.mrf.mxu0 }
0x1abf   : > { %v4130_v58 = vmul.f32 0.17677669, %v4123_v55  ;;  %v6507_v55 = vld [vmem:[%s8246_s9 + $0x1c4] ss:$16 sps:$4 sm:$0xff]  }
0x1ac0   : > { %v6246_v61 = vpop.f32.mrf.mxu0 }
0x1ac1   : > { %v4132_v62 = vadd.f32 %v4130_v58, %v7112_v41  ;;  %v6508_v58 = vld [vmem:[%s8246_s9 + $0x1c8] ss:$16 sps:$4 sm:$0xff]   ;;  %v6510_v61 = vld [vmem:[%s8246_s9 + $0x1cc] ss:$16 sps:$4 sm:$0xff]  }
0x1ac2   : > { %v4126_v4 = vpop.f32.mrf.mxu0 }
0x1ac3   : > { %v4136_v5 = vsel %vm1058_vm4, %v4132_v62, -inf  ;;  %v6513_v4 = vld [vmem:[%s8246_s9 + $0x1a4] ss:$16 sps:$4 sm:$0xff]  }
0x1ac4   : > { %4137 = vmax.xlane.f32.xlu1 %v4136_v5  ;;  %v6247_v10 = vpop.f32.mrf.mxu0  ;;  %v6514_v5 = vld [vmem:[%s8246_s9 + $0x1a8] ss:$16 sps:$4 sm:$0xff]  }
0x1ac5   : > { %v6516_v10 = vld [vmem:[%s8246_s9 + $0x1ac] ss:$16 sps:$4 sm:$0xff]  }
0x1ad5   : > { %4205 = vrot.lane.b32.xlu1 %v7704_v14, %s8286_s26 }
0x1b15   : > { %v4147_v41 = vpop.xlane.xlu0 %4146 }
0x1b4d   : > { %v4138_v17 = vpop.xlane.xlu1 %4137 }
0x1b4e   : > { %v4140_v30 = vsub.f32 %v4132_v62, %v4138_v17  ;;  %v6511_v62 = vld [vmem:[%s8246_s9 + $0x1a0] ss:$16 sps:$4 sm:$0xff]   ;;  %v6519_v17 = vld [vmem:[%s8246_s9 + $0x184] ss:$16 sps:$4 sm:$0xff]  }
0x1b50   : > { %v4143_v60 = vmul.f32 1.442695, %v4140_v30  ;;  %v6522_v30 = vld [vmem:[%s8246_s9 + $0x18c] ss:$16 sps:$4 sm:$0xff]  }
0x1b51   : > { %v4206_v19 = vpop.permute.xlu1 %4205 }
0x1b52   : > { %6665 = vpow2.f32 %v4143_v60  ;;  %v4211_v56 = vsel %vm1086_vm2, %v4206_v19, 0  ;;  %v6517_v60 = vld [vmem:[%s8246_s9 + $0x180] ss:$16 sps:$4 sm:$0xff]   ;;  %v6520_v19 = vld [vmem:[%s8246_s9 + $0x188] ss:$16 sps:$4 sm:$0xff]  }
0x1b53   : > { %6255 = vmatpush3.bf16.msra.mxu0 %v4211_v56  ;;  %6667 = vrcp.f32 %v4147_v41  ;;  %v6525_v56 = vld [vmem:[%s8246_s9 + $0x164] ss:$16 sps:$4 sm:$0xff]   ;;  %v6526_v41 = vld [vmem:[%s8246_s9 + $0x168] ss:$16 sps:$4 sm:$0xff]  }
0x1b5f   : > { %v6666_v0 = vpop.eup %6665 }
0x1b60   : > { %v4148_v1 = vsel %vm1058_vm4, %v6666_v0, 0.0  ;;  %v6668_v15 = vpop.eup %6667 }
0x1b61   : > { %4149 = vadd.xlane.f32.xlu0 %v4148_v1  ;;  %v4153_v14 = vmul.f32 %v6668_v15, %v6664_v40  ;;  %v6502_v40 = vld [vmem:[%s8246_s9 + $0x1e8] ss:$16 sps:$4 sm:$0xff]   ;;  %v6523_v1 = vld [vmem:[%s8246_s9 + $0x160] ss:$16 sps:$4 sm:$0xff]   ;;  %v6531_v15 = vld [vmem:[%s8246_s9 + $0x144] ss:$16 sps:$4 sm:$0xff]  }
0x1b63   : > { %v4155_v8 = vpack.c.bf16 %v4153_v14, %v4153_v14  ;;  %v6529_v14 = vld [vmem:[%s8246_s9 + $0x140] ss:$16 sps:$4 sm:$0xff]  }
0x1b77   : > { %4157 = vrot.lane.b32.xlu0 %v7697_v3, %s8286_s26 }
0x1bea   : > { %v4150_v59 = vpop.xlane.xlu0 %4149 }
0x1beb   : > { %6669 = vrcp.f32 %v4150_v59  ;;  %v6534_v59 = vld [vmem:[%s8246_s9 + $0x14c] ss:$16 sps:$4 sm:$0xff]  }
0x1bee   : > { %v4158_v16 = vpop.permute.xlu0 %4157 }
0x1bef   : > { %v4163_v53 = vsel %vm1086_vm2, %v4158_v16, 0  ;;  %v6532_v16 = vld [vmem:[%s8246_s9 + $0x148] ss:$16 sps:$4 sm:$0xff]  }
0x1bf0   : > { %6249 = vmatpush3.bf16.msra.mxu1 %v4163_v53  ;;  %v6537_v53 = vld [vmem:[%s8246_s9 + $0x124] ss:$16 sps:$4 sm:$0xff]  }
0x1bf1   : > { %6260 = vmatprep.subr.bf16.mxu1 %v6768_v20 }
0x1bf3   : > { %6251 = vmatmul.mubr.msk.bf16.vlgmr.msra.gmra.mxu1 %vm1058_vm4, %v4155_v8  ;;  %v6540_v8 = vld [vmem:[%s8246_s9 + $0x12c] ss:$16 sps:$4 sm:$0xff]  }
0x1bf4   : > { %6264 = vmatprep.mubr.msk.bf16.mxu1 %vm6770_vm0, %v6768_v20  ;;  %6261 = vmatpush3.bf16.msra.mxu1 %v6497_v47  ;;  %v6546_v47 = vld [vmem:[%s8246_s9 + $0x10c] ss:$16 sps:$4 sm:$0xff]  }
0x1bf5   : > { %6262 = vmatprep.subr.bf16.mxu1 %v6768_v20 }
0x1bf8   : > { %v6670_v45 = vpop.eup %6669  ;;  %6263 = vmatpush3.bf16.msra.mxu1 %v6498_v18  ;;  %v6541_v18 = vld [vmem:[%s8246_s9 + $0x100] ss:$16 sps:$4 sm:$0xff]  }
0x1bf9   : > { %v4154_v3 = vmul.f32 %v6670_v45, %v6666_v0  ;;  %v6528_v0 = vld [vmem:[%s8246_s9 + $0x16c] ss:$16 sps:$4 sm:$0xff]   ;;  %v6535_v45 = vld [vmem:[%s8246_s9 + $0x120] ss:$16 sps:$4 sm:$0xff]  }
0x1bfb   : > { %v4156_v22 = vpack.c.bf16 %v4154_v3, %v4154_v3  ;;  %v6538_v3 = vld [vmem:[%s8246_s9 + $0x128] ss:$16 sps:$4 sm:$0xff]  }
0x1bfd   : > { %6257 = vmatmul.mubr.msk.bf16.vlgmr.msra.gmra.mxu0 %vm1058_vm4, %v4156_v22  ;;  %v6543_v22 = vld [vmem:[%s8246_s9 + $0x104] ss:$16 sps:$4 sm:$0xff]  }
0x1bfe   : > { %4615 = vmatprep.mubr.bf16.mxu0 %v6769_v43 }
0x1cb3   : > { %v4199_v63 = vpop.f32.mrf.mxu1 }
0x1cb5   : > { %v6252_v21 = vpop.f32.mrf.mxu1 }
0x1cb7   : > { %v4202_v24 = vpop.f32.mrf.mxu1 }
0x1cb9   : > { %v6253_v11 = vpop.f32.mrf.mxu1 }
0x1cbd   : > { %v4247_v25 = vpop.f32.mrf.mxu0 }
0x1cbe   : > { %v4253_v37 = vpack.c.bf16 %v4247_v25, %v4199_v63  ;;  %v6544_v63 = vld [vmem:[%s8246_s9 + $0x108] ss:$16 sps:$4 sm:$0xff]  }
0x1cbf   : > { %v6258_v54 = vpop.f32.mrf.mxu0 }
0x1cc0   : > { %6265 = vmatmul.mubr.msk.bf16.vlgmr.msra.gmra.mxu1 %vm961_vm1, %v4253_v37 }
0x1cc1   : > { %v4250_v48 = vpop.f32.mrf.mxu0  ;;  %4658 = vmatprep.mubr.bf16.mxu1 %v6769_v43 }
0x1cc3   : > { %v6259_v12 = vpop.f32.mrf.mxu0 }
0x1d80   : > { %v4303_v35 = vpop.f32.mrf.mxu1 }
0x1d81   : > { %v4310_v20 = vadd.f32 %v4303_v35, %v4027_v46  ;;  %v5580_v35 = vld [vmem:[%s8244_s7 + $0x1] ss:$0 sm:$0xff] }
0x1d82   : > { %v6266_v23 = vpop.f32.mrf.mxu1 }
0x1d83   : > { %v4312_v27 = vadd.f32 %v4310_v20, %v7574_v44  ;;  %v6501_v44 = vld [vmem:[%s8246_s9 + $0x1e4] ss:$16 sps:$4 sm:$0xff]  }
0x1d84   : > { %v4306_v28 = vpop.f32.mrf.mxu1  ;;  %4583 = vmatprep.subr.bf16.mxu0 %v6501_v44  ;;  %v6548_v44 = vld [vmem:[%s8248_s11 + $0x1f8] sm:$0xff]  }
0x1d85   : > { %v4311_v33 = vadd.f32 %v4306_v28, %v4028_v29  ;;  %v7913_v31 = vadd.f32 %v5577_v26, %v4312_v27  ;;  %4584 = vmatpush1.bf16.msra.mxu0 %v6499_v36  ;;  %v5581_v27 = vld [vmem:[%s8245_s8 + $0x1] ss:$0 sm:$0xff]  ;;  %v6547_v36 = vld [vmem:[%s8248_s11 + $0x178] sm:$0xff]  }
0x1d86   : > { %v6267_v2 = vpop.f32.mrf.mxu1  ;;  %4585 = vmatprep.subr.bf16.mxu0 %v6507_v55  ;;  %v6560_v55 = vld [vmem:[%s8248_s11 + $0x1e0] sm:$0xff]  }
0x1d87   : > { %v4313_v32 = vadd.f32 %v4311_v33, %v7578_v49  ;;  %4328 = vadd.xlane.f32.xlu1 %v7913_v31  ;;  %v6504_v49 = vld [vmem:[%s8246_s9 + $0x1ec] ss:$16 sps:$4 sm:$0xff]  }
0x1d88   : > { %4626 = vmatprep.subr.bf16.mxu1 %v6504_v49  ;;  %v6550_v49 = vld [vmem:[%s8248_s11 + $0x1b8] sm:$0xff]  }
0x1d89   : > { %v7917_v43 = vadd.f32 %v5577_v26, %v4313_v32  ;;  %4627 = vmatpush1.bf16.msra.mxu1 %v6502_v40  ;;  %4586 = vmatpush1.bf16.msra.mxu0 %v6505_v52  ;;  %v6549_v40 = vld [vmem:[%s8248_s11 + $0x138] sm:$0xff]   ;;  %v6559_v52 = vld [vmem:[%s8248_s11 + $0x160] sm:$0xff]  }
0x1d8a   : > { %4628 = vmatprep.subr.bf16.mxu1 %v6510_v61  ;;  %4587 = vmatprep.subr.bf16.mxu0 %v6513_v4  ;;  %v6562_v61 = vld [vmem:[%s8248_s11 + $0x1a0] sm:$0xff]   ;;  %v6564_v4 = vld [vmem:[%s8248_s11 + $0x1d8] sm:$0xff]  }
0x1d8b   : > { %4330 = vadd.xlane.f32.xlu0 %v7917_v43 }
0x1d8d   : > { %4629 = vmatpush1.bf16.msra.mxu1 %v6508_v58  ;;  %4588 = vmatpush1.bf16.msra.mxu0 %v6511_v62  ;;  %v6561_v58 = vld [vmem:[%s8248_s11 + $0x120] sm:$0xff]   ;;  %v6563_v62 = vld [vmem:[%s8248_s11 + $0x158] sm:$0xff]  }
0x1d8e   : > { %4630 = vmatprep.subr.bf16.mxu1 %v6516_v10  ;;  %4589 = vmatprep.subr.bf16.mxu0 %v6519_v17  ;;  %v6566_v10 = vld [vmem:[%s8248_s11 + $0x198] sm:$0xff]   ;;  %v6567_v17 = vld [vmem:[%s8248_s11 + $0x150] sm:$0xff]  }
0x1d91   : > { %4631 = vmatpush1.bf16.msra.mxu1 %v6514_v5  ;;  %4590 = vmatpush1.bf16.msra.mxu0 %v6517_v60  ;;  %v6565_v5 = vld [vmem:[%s8248_s11 + $0x118] sm:$0xff]   ;;  %v6569_v60 = vld [vmem:[%s8248_s11 + $0x110] sm:$0xff]  }
0x1d92   : > { %4632 = vmatprep.subr.bf16.mxu1 %v6522_v30  ;;  %4591 = vmatprep.subr.bf16.mxu0 %v6525_v56  ;;  %v6568_v30 = vld [vmem:[%s8248_s11 + $0x1d0] sm:$0xff]   ;;  %v6571_v56 = vld [vmem:[%s8248_s11 + $0x148] sm:$0xff]  }
0x1d95   : > { %4633 = vmatpush1.bf16.msra.mxu1 %v6520_v19  ;;  %4592 = vmatpush1.bf16.msra.mxu0 %v6523_v1  ;;  %v6570_v19 = vld [vmem:[%s8248_s11 + $0x190] sm:$0xff]   ;;  %v6573_v1 = vld [vmem:[%s8248_s11 + $0x108] sm:$0xff]  }
0x1d96   : > { %4634 = vmatprep.subr.bf16.mxu1 %v6528_v0  ;;  %4593 = vmatprep.subr.bf16.mxu0 %v6531_v15  ;;  %v6572_v0 = vld [vmem:[%s8248_s11 + $0x1c8] sm:$0xff]   ;;  %v6575_v15 = vld [vmem:[%s8248_s11 + $0x140] sm:$0xff]  }
0x1d99   : > { %4635 = vmatpush1.bf16.msra.mxu1 %v6526_v41  ;;  %4594 = vmatpush1.bf16.msra.mxu0 %v6529_v14  ;;  %v6574_v41 = vld [vmem:[%s8248_s11 + $0x188] sm:$0xff]   ;;  %v6577_v14 = vld [vmem:[%s8248_s11 + $0x100] sm:$0xff]  }
0x1d9a   : > { %4636 = vmatprep.subr.bf16.mxu1 %v6534_v59  ;;  %4595 = vmatprep.subr.bf16.mxu0 %v6537_v53  ;;  %v6576_v59 = vld [vmem:[%s8248_s11 + $0x1c0] sm:$0xff]  }
0x1d9b   : > { %v5614_v53 = vld [vmem:[%s8247_s10 + $0x4] sm:$0xf] }
0x1d9d   : > { %4637 = vmatpush1.bf16.msra.mxu1 %v6532_v16  ;;  %4596 = vmatpush1.bf16.msra.mxu0 %v6535_v45  ;;  %v6578_v16 = vld [vmem:[%s8248_s11 + $0x180] sm:$0xff]   ;;  %v4414_v45 = vrot.slane %v5614_v53, %v7071_v9 }
0x1d9e   : > { %4638 = vmatprep.subr.bf16.mxu1 %v6540_v8  ;;  %4597 = vmatprep.subr.bf16.mxu0 %v6543_v22  ;;  %v4406_v8 = vrot.slane %v5614_v53, %v7075_v13  ;;  %v4418_v22 = vrot.slane %v5614_v53, %v2186_v34 }
0x1da1   : > { %4639 = vmatpush1.bf16.msra.mxu1 %v6538_v3  ;;  %4598 = vmatpush1.bf16.msra.mxu0 %v6541_v18  ;;  %v4410_v3 = vrot.slane %v5614_v53, %v7065_v7 }
0x1da2   : > { %4640 = vmatprep.subr.bf16.mxu1 %v6546_v47  ;;  %5919 = vmatprep.subr.bf16.mxu0 %v6547_v36 }
0x1da5   : > { %4641 = vmatpush1.bf16.msra.mxu1 %v6544_v63 }
0x1da6   : > { %5941 = vmatprep.subr.bf16.mxu1 %v6548_v44 }
0x1e10   : > { %v4329_v38 = vpop.xlane.xlu1 %4328 }
0x1e11   : > { %v4332_v39 = vmul.f32 0.0078125, %v4329_v38  ;;  %v6551_v38 = vld [vmem:[%s8248_s11 + $0x170] sm:$0xff]  }
0x1e13   : > { %v7933_v42 = vsub.f32 %v7913_v31, %v4332_v39  ;;  %v6552_v39 = vld [vmem:[%s8248_s11 + $0x1f0] sm:$0xff]  }
0x1e14   : > { %v4331_v46 = vpop.xlane.xlu0 %4330 }
0x1e15   : > { %v4333_v50 = vmul.f32 0.0078125, %v4331_v46  ;;  %v4336_v51 = vmul.f32 %v7933_v42, %v7933_v42  ;;  %v6554_v46 = vld [vmem:[%s8248_s11 + $0x1b0] sm:$0xff]  }
0x1e17   : > { %v7938_v57 = vsub.f32 %v7917_v43, %v4333_v50  ;;  %4338 = vadd.xlane.f32.xlu0 %v4336_v51  ;;  %v6555_v50 = vld [vmem:[%s8248_s11 + $0x168] sm:$0xff]  }
0x1e18   : > { %v6556_v51 = vld [vmem:[%s8248_s11 + $0x1e8] sm:$0xff]  }
0x1e19   : > { %v4337_v29 = vmul.f32 %v7938_v57, %v7938_v57 }
0x1e1b   : > { %4340 = vadd.xlane.f32.xlu1 %v4337_v29  ;;  %v6558_v29 = vld [vmem:[%s8248_s11 + $0x1a8] sm:$0xff]  }
0x1ea0   : > { %v4339_v21 = vpop.xlane.xlu0 %4338 }
0x1ea1   : > { %v4342_v24 = vmul.f32 0.0078125, %v4339_v21 }
0x1ea3   : > { %v4344_v11 = vadd.f32 1e-05, %v4342_v24 }
0x1ea4   : > { %v4341_v25 = vpop.xlane.xlu1 %4340 }
0x1ea5   : > { %6671 = vrsqrt.f32 %v4344_v11  ;;  %v4343_v37 = vmul.f32 0.0078125, %v4341_v25 }
0x1ea7   : > { %v4345_v54 = vadd.f32 1e-05, %v4343_v37 }
0x1ea9   : > { %6673 = vrsqrt.f32 %v4345_v54 }
0x1eb2   : > { %v6672_v48 = vpop.eup %6671 }
0x1eb3   : > { %v4348_v12 = vmul.f32 %v6672_v48, %v7933_v42  ;;  %v6553_v42 = vld [vmem:[%s8248_s11 + $0x130] sm:$0xff]  }
0x1eb5   : > { %v4356_v26 = vmul.f32 %v5580_v35, %v4348_v12 }
0x1eb6   : > { %v6674_v20 = vpop.eup %6673 }
0x1eb7   : > { %v4349_v23 = vmul.f32 %v6674_v20, %v7938_v57  ;;  %v4364_v33 = vadd.f32 %v5581_v27, %v4356_v26  ;;  %v6557_v57 = vld [vmem:[%s8248_s11 + $0x128] sm:$0xff]  }
0x1eb9   : > { %v4357_v28 = vmul.f32 %v5580_v35, %v4349_v23 }
0x1ebb   : > { %v4365_v2 = vadd.f32 %v5581_v27, %v4357_v28 }
0x1ebd   : > { %v4366_v32 = vpack.c.bf16 %v4365_v2, %v4364_v33 }
0x1ebf   : > { %4616 = vmatmul.mubr.bf16.vlgmr.msra.gmra.mxu0 %v4366_v32  ;;  %4659 = vmatmul.mubr.bf16.vlgmr.msra.gmra.mxu1 %v4366_v32 }
0x1ec0   : > { %5920 = vmatpush3.bf16.msra.mxu0 %v6549_v40  ;;  %5942 = vmatpush3.bf16.msra.mxu1 %v6550_v49 }
0x1ec1   : > { %5921 = vmatprep.subr.bf16.mxu0 %v6551_v38  ;;  %5943 = vmatprep.subr.bf16.mxu1 %v6552_v39 }
0x1ec4   : > { %5922 = vmatpush3.bf16.msra.mxu0 %v6553_v42  ;;  %5944 = vmatpush3.bf16.msra.mxu1 %v6554_v46 }
0x1ec5   : > { %5923 = vmatprep.subr.bf16.mxu0 %v6555_v50  ;;  %5945 = vmatprep.subr.bf16.mxu1 %v6556_v51 }
0x1ec8   : > { %5924 = vmatpush3.bf16.msra.mxu0 %v6557_v57  ;;  %5946 = vmatpush3.bf16.msra.mxu1 %v6558_v29 }
0x1ec9   : > { %5925 = vmatprep.subr.bf16.mxu0 %v6559_v52  ;;  %5947 = vmatprep.subr.bf16.mxu1 %v6560_v55 }
0x1ecc   : > { %5926 = vmatpush3.bf16.msra.mxu0 %v6561_v58  ;;  %5948 = vmatpush3.bf16.msra.mxu1 %v6562_v61 }
0x1ecd   : > { %5927 = vmatprep.subr.bf16.mxu0 %v6563_v62  ;;  %5949 = vmatprep.subr.bf16.mxu1 %v6564_v4 }
0x1ed0   : > { %5928 = vmatpush3.bf16.msra.mxu0 %v6565_v5  ;;  %5950 = vmatpush3.bf16.msra.mxu1 %v6566_v10 }
0x1ed1   : > { %5929 = vmatprep.subr.bf16.mxu0 %v6567_v17  ;;  %5951 = vmatprep.subr.bf16.mxu1 %v6568_v30 }
0x1ed4   : > { %5930 = vmatpush3.bf16.msra.mxu0 %v6569_v60  ;;  %5952 = vmatpush3.bf16.msra.mxu1 %v6570_v19 }
0x1ed5   : > { %5931 = vmatprep.subr.bf16.mxu0 %v6571_v56  ;;  %5953 = vmatprep.subr.bf16.mxu1 %v6572_v0 }
0x1ed8   : > { %5932 = vmatpush3.bf16.msra.mxu0 %v6573_v1  ;;  %5954 = vmatpush3.bf16.msra.mxu1 %v6574_v41 }
0x1ed9   : > { %5933 = vmatprep.subr.bf16.mxu0 %v6575_v15  ;;  %5955 = vmatprep.subr.bf16.mxu1 %v6576_v59 }
0x1edc   : > { %5934 = vmatpush3.bf16.msra.mxu0 %v6577_v14  ;;  %5956 = vmatpush3.bf16.msra.mxu1 %v6578_v16 }
0x1f7f   : > { %v4617_v47 = vpop.f32.mrf.mxu0  ;;  %v4660_v18 = vpop.f32.mrf.mxu1 }
0x1f80   : > { %v8138_v63 = vadd.f32 %v4617_v47, %v4406_v8  ;;  %v8140_v21 = vadd.f32 %v4660_v18, %v4414_v45 }
0x1f81   : > { %v4619_v24 = vpop.f32.mrf.mxu0  ;;  %v4662_v11 = vpop.f32.mrf.mxu1 }
0x1f82   : > { %v4677_v25 = vmul.f32 0.044715, %v8138_v63  ;;  %v4679_v37 = vmul.f32 0.044715, %v8140_v21  ;;  %v4620_v13 = vadd.f32 %v4619_v24, %v4410_v3  ;;  %v8144_v54 = vadd.f32 %v4662_v11, %v4418_v22 }
0x1f83   : > { %v4621_v9 = vpop.f32.mrf.mxu0  ;;  %v4664_v7 = vpop.f32.mrf.mxu1  ;;  %v4669_v24 = vmul.f32 0.5, %v8138_v63 }
0x1f84   : > { %v4685_v6 = vmul.f32 %v4677_v25, %v8138_v63  ;;  %v4687_v34 = vmul.f32 %v4679_v37, %v8140_v21  ;;  %v4678_v48 = vmul.f32 0.044715, %v4620_v13  ;;  %v4680_v12 = vmul.f32 0.044715, %v8144_v54 }
0x1f85   : > { %v4622_v35 = vadd.f32 %v4621_v9, %v4406_v8  ;;  %v8149_v20 = vadd.f32 %v4664_v7, %v4414_v45  ;;  %v4623_v23 = vpop.f32.mrf.mxu0  ;;  %v4666_v26 = vpop.f32.mrf.mxu1  ;;  %v4670_v47 = vmul.f32 0.5, %v4620_v13 }
0x1f86   : > { %v4693_v27 = vmul.f32 %v4685_v6, %v8138_v63  ;;  %v4695_v28 = vmul.f32 %v4687_v34, %v8140_v21  ;;  %v4686_v33 = vmul.f32 %v4678_v48, %v4620_v13  ;;  %v4688_v2 = vmul.f32 %v4680_v12, %v8144_v54 }
0x1f87   : > { %v4681_v32 = vmul.f32 0.044715, %v4622_v35  ;;  %v4683_v36 = vmul.f32 0.044715, %v8149_v20  ;;  %v4624_v44 = vadd.f32 %v4623_v23, %v4410_v3  ;;  %v4667_v40 = vadd.f32 %v4666_v26, %v4418_v22 }
0x1f88   : > { %v4701_v49 = vadd.f32 %v4693_v27, %v8138_v63  ;;  %v4703_v38 = vadd.f32 %v4695_v28, %v8140_v21  ;;  %v4694_v39 = vmul.f32 %v4686_v33, %v4620_v13  ;;  %v4696_v42 = vmul.f32 %v4688_v2, %v8144_v54 }
0x1f89   : > { %v4689_v46 = vmul.f32 %v4681_v32, %v4622_v35  ;;  %v4691_v50 = vmul.f32 %v4683_v36, %v8149_v20  ;;  %v4682_v51 = vmul.f32 0.044715, %v4624_v44  ;;  %v4684_v57 = vmul.f32 0.044715, %v4667_v40 }
0x1f8a   : > { %v4709_v29 = vmul.f32 0.7978846, %v4701_v49  ;;  %v4711_v52 = vmul.f32 0.7978846, %v4703_v38  ;;  %v4702_v55 = vadd.f32 %v4694_v39, %v4620_v13  ;;  %v4704_v10 = vadd.f32 %v4696_v42, %v8144_v54 }
0x1f8b   : > { %v4697_v58 = vmul.f32 %v4689_v46, %v4622_v35  ;;  %v4699_v61 = vmul.f32 %v4691_v50, %v8149_v20  ;;  %v4690_v62 = vmul.f32 %v4682_v51, %v4624_v44  ;;  %v4692_v4 = vmul.f32 %v4684_v57, %v4667_v40  ;;  %v5712_v50 = vld [vmem:[%s8249_s12 + $0x1] ss:$0 sm:$0xff] }
0x1f8c   : > { %v4710_v5 = vmul.f32 0.7978846, %v4702_v55  ;;  %6675 = vtanh.f32 %v4709_v29  ;;  %v4712_v56 = vmul.f32 0.7978846, %v4704_v10  ;;  %v4673_v9 = vmul.f32 0.5, %v4622_v35 }
0x1f8d   : > { %v4705_v17 = vadd.f32 %v4697_v58, %v4622_v35  ;;  %v4707_v30 = vadd.f32 %v4699_v61, %v8149_v20  ;;  %v4698_v60 = vmul.f32 %v4690_v62, %v4624_v44  ;;  %6677 = vtanh.f32 %v4711_v52 }
0x1f8e   : > { %v4700_v19 = vmul.f32 %v4692_v4, %v4667_v40  ;;  %6679 = vtanh.f32 %v4710_v5  ;;  %v4674_v48 = vmul.f32 0.5, %v4624_v44  ;;  %v4675_v23 = vmul.f32 0.5, %v8149_v20 }
0x1f8f   : > { %v4713_v0 = vmul.f32 0.7978846, %v4705_v17  ;;  %v4715_v1 = vmul.f32 0.7978846, %v4707_v30  ;;  %v4706_v41 = vadd.f32 %v4698_v60, %v4624_v44  ;;  %6681 = vtanh.f32 %v4712_v56 }
0x1f90   : > { %v4708_v15 = vadd.f32 %v4700_v19, %v4667_v40  ;;  %v4672_v27 = vmul.f32 0.5, %v8144_v54  ;;  %v4676_v28 = vmul.f32 0.5, %v4667_v40  ;;  %v4671_v63 = vmul.f32 0.5, %v8140_v21 }
0x1f91   : > { %6683 = vtanh.f32 %v4713_v0  ;;  %v4714_v59 = vmul.f32 0.7978846, %v4706_v41 }
0x1f92   : > { %6685 = vtanh.f32 %v4715_v1  ;;  %v4716_v14 = vmul.f32 0.7978846, %v4708_v15 }
0x1f93   : > { %6687 = vtanh.f32 %v4714_v59 }
0x1f94   : > { %6689 = vtanh.f32 %v4716_v14 }
0x1f99   : > { %v6676_v16 = vpop.eup %6675 }
0x1f9a   : > { %v6678_v53 = vpop.eup %6677  ;;  %v4725_v7 = vadd.f32 1.0, %v6676_v16 }
0x1f9b   : > { %v6680_v8 = vpop.eup %6679  ;;  %v4727_v26 = vadd.f32 1.0, %v6678_v53 }
0x1f9c   : > { %v6682_v45 = vpop.eup %6681  ;;  %v4726_v18 = vadd.f32 1.0, %v6680_v8  ;;  %v4733_v38 = vmul.f32 %v4725_v7, %v4669_v24 }
0x1f9d   : > { %v4728_v37 = vadd.f32 1.0, %v6682_v45  ;;  %v4735_v42 = vmul.f32 %v4727_v26, %v4671_v63 }
0x1f9e   : > { %v6684_v3 = vpop.eup %6683  ;;  %v4734_v2 = vmul.f32 %v4726_v18, %v4670_v47  ;;  %v5745_v18 = vld [vmem:[%s8250_s13] ss:$0 sm:$0xff] }
0x1f9f   : > { %v6686_v22 = vpop.eup %6685  ;;  %v4729_v11 = vadd.f32 1.0, %v6684_v3  ;;  %v4736_v49 = vmul.f32 %v4728_v37, %v4672_v27  ;;  %v5746_v37 = vld [vmem:[%s8251_s14] ss:$0 sm:$0xff] }
0x1fa0   : > { %v6688_v25 = vpop.eup %6687  ;;  %v4731_v6 = vadd.f32 1.0, %v6686_v22 }
0x1fa1   : > { %v6690_v34 = vpop.eup %6689  ;;  %v4730_v12 = vadd.f32 1.0, %v6688_v25  ;;  %v4737_v13 = vmul.f32 %v4729_v11, %v4673_v9 }
0x1fa2   : > { %v4732_v33 = vadd.f32 1.0, %v6690_v34  ;;  %v4739_v36 = vmul.f32 %v4731_v6, %v4675_v23 }
0x1fa3   : > { %v4738_v32 = vmul.f32 %v4730_v12, %v4674_v48  ;;  %v4741_v46 = vpack.c.bf16 %v4737_v13, %v4733_v38 }
0x1fa4   : > { %v4740_v35 = vmul.f32 %v4732_v33, %v4676_v28  ;;  %v4743_v20 = vpack.c.bf16 %v4739_v36, %v4735_v42 }
0x1fa5   : > { %v4742_v39 = vpack.c.bf16 %v4738_v32, %v4734_v2 }
0x1fa6   : > { %v4744_v44 = vpack.c.bf16 %v4740_v35, %v4736_v49 }
0x1fa7   : > { %5042 = vmatprep.mubr.bf16.mxu0 %v4742_v39 }
0x1fa8   : > { %5083 = vmatprep.mubr.bf16.mxu1 %v4744_v44  ;;  %5043 = vmatmul.mubr.bf16.vlgmr.msra.gmra.mxu0 %v4741_v46 }
0x1fa9   : > { %5084 = vmatmul.mubr.bf16.vlgmr.msra.gmra.mxu1 %v4743_v20 }
0x2068   : > { %v5935_v54 = vpop.f32.mrf.mxu0 }
0x2069   : > { %v5957_v40 = vpop.f32.mrf.mxu1 }
0x206a   : > { %v5936_v21 = vpop.f32.mrf.mxu0 }
0x206b   : > { %v5937_v51 = vadd.f32 %v5936_v21, %v5935_v54  ;;  %v5958_v57 = vpop.f32.mrf.mxu1 }
0x206c   : > { %v5938_v29 = vpop.f32.mrf.mxu0  ;;  %v5959_v55 = vadd.f32 %v5958_v57, %v5957_v40 }
0x206d   : > { %v5045_v52 = vadd.f32 %v5937_v51, %v5712_v50  ;;  %v5960_v58 = vpop.f32.mrf.mxu1 }
0x206e   : > { %v5939_v61 = vpop.f32.mrf.mxu0 }
0x206f   : > { %v5086_v62 = vadd.f32 %v5959_v55, %v5045_v52  ;;  %v5940_v4 = vadd.f32 %v5939_v61, %v5938_v29  ;;  %v5961_v5 = vpop.f32.mrf.mxu1 }
0x2070   : > { %v5962_v17 = vadd.f32 %v5961_v5, %v5960_v58 }
0x2071   : > { %v5048_v10 = vadd.f32 %v5940_v4, %v5712_v50  ;;  %v5092_v30 = vadd.f32 %v5086_v62, %v7913_v31 }
0x2073   : > { %v5089_v60 = vadd.f32 %v5962_v17, %v5048_v10  ;;  %5096 = vadd.xlane.f32.xlu0 %v5092_v30 }
0x2075   : > { %v5093_v19 = vadd.f32 %v5089_v60, %v7917_v43 }
0x2077   : > { %5098 = vadd.xlane.f32.xlu1 %v5093_v19 }
0x20fc   : > { %v5097_v56 = vpop.xlane.xlu0 %5096 }
0x20fd   : > { %v5100_v0 = vmul.f32 0.0078125, %v5097_v56 }
0x20ff   : > { %v5102_v1 = vsub.f32 %v5092_v30, %v5100_v0 }
0x2100   : > { %v5099_v41 = vpop.xlane.xlu1 %5098 }
0x2101   : > { %v5101_v15 = vmul.f32 0.0078125, %v5099_v41  ;;  %v5104_v59 = vmul.f32 %v5102_v1, %v5102_v1 }
0x2103   : > { %v5103_v14 = vsub.f32 %v5093_v19, %v5101_v15  ;;  %5106 = vadd.xlane.f32.xlu0 %v5104_v59 }
0x2105   : > { %v5105_v16 = vmul.f32 %v5103_v14, %v5103_v14 }
0x2107   : > { %5108 = vadd.xlane.f32.xlu1 %v5105_v16 }
0x218c   : > { %v5107_v53 = vpop.xlane.xlu0 %5106 }
0x218d   : > { %v5110_v8 = vmul.f32 0.0078125, %v5107_v53 }
0x218f   : > { %v5112_v45 = vadd.f32 1e-05, %v5110_v8 }
0x2190   : > { %v5109_v3 = vpop.xlane.xlu1 %5108 }
0x2191   : > { %6691 = vrsqrt.f32 %v5112_v45  ;;  %v5111_v31 = vmul.f32 0.0078125, %v5109_v3 }
0x2193   : > { %v5113_v22 = vadd.f32 1e-05, %v5111_v31 }
0x2195   : > { %6693 = vrsqrt.f32 %v5113_v22 }
0x219e   : > { %v6692_v43 = vpop.eup %6691 }
0x219f   : > { %v5116_v47 = vmul.f32 %v6692_v43, %v5102_v1 }
0x21a1   : > { %v5124_v11 = vmul.f32 %v5745_v18, %v5116_v47 }
0x21a2   : > { %v6694_v24 = vpop.eup %6693 }
0x21a3   : > { %v5117_v25 = vmul.f32 %v6694_v24, %v5103_v14  ;;  %v5132_v7 = vadd.f32 %v5746_v37, %v5124_v11 }
0x21a5   : > { %v5125_v9 = vmul.f32 %v5745_v18, %v5117_v25 }
0x21a7   : > { %v5133_v6 = vadd.f32 %v5746_v37, %v5125_v9 }
0x21a9   : > { %v5767_v34 = vpack.c.bf16 %v5133_v6, %v5132_v7 }
0x21ab   : > { %5768 = vst [vmem:[#allocation2] sm:$0xff] %v5767_v34  }
0x21ac PF: > { %v6697_v48 = vld [vmem:[%s6946_s28 + $0x38] sm:$0xff]   ;;  %v6775_v12 = vmov 0.0   ;;  %v6698_v23 = vld [vmem:[%s6946_s28 + $0x30] sm:$0xff]   ;;  %vm6776_vm5 = vmmov 0   ;;  %v6699_v26 = vld [vmem:[%s6946_s28 + $0x28] sm:$0xff]   ;;  %s5759_s16 = sshll.u32 %s6887_s25, 7 }
0x21ad   : > { %6268 = vmatprep.subr.bf16.mxu0 %v6775_v12  ;;  %6284 = vmatprep.mubr.msk.bf16.mxu0 %vm6776_vm5, %v6775_v12  ;;  %v6700_v27 = vld [vmem:[%s6946_s28 + $0x20] sm:$0xff]   ;;  %v6701_v28 = vld [vmem:[%s6946_s28 + $0x18] sm:$0xff]   ;;  %v6702_v33 = vld [vmem:[%s6946_s28 + $0x10] sm:$0xff]   ;;  %s5272_s23 = sshll.u32 %s6948_s30, 4  ;;  %s8287_s17 = sld [smem:[#allocation16_spill]]  ;;  %s8193_s23 = int_to_ptr.vmem [resolvable:$true] %s5272_s23 }
0x21ae   : > { %6269 = vmatpush3.bf16.msra.mxu0 %v6697_v48  ;;  %v6703_v13 = vld [vmem:[%s6946_s28 + $0x8] sm:$0xff]   ;;  %v6704_v2 = vld [vmem:[%s6946_s28] sm:$0xff]   ;;  %s5260_s28 = scalar_lea.sflag [#allocation5], %s6942_s18  ;;  %s6706_s19 = scalar_lea.vmem %s8193_s23, 256 }
0x21af   : > { %6270 = vmatprep.subr.bf16.mxu0 %v6775_v12  ;;  %p6707_p0 = scmp.ne.s32.totalorder %s8193_s23, %s6706_s19  ;;  %s6777_s25 = smov [#allocation4]  }
0x21b0   : > { %s6710_s20 = sshll.u32 %s6777_s25, 4  ;;  %s6711_s20 = int_to_ptr.vmem [resolvable:$false] %s6710_s20 }
0x21b1   : > { %p6708_p1 = pnand %p6707_p0, %p6905_p6  ;;  %s6712_s29 = scalar_lea.vmem %s6711_s20, 512 }
0x21b2   : > { %6271 = vmatpush3.bf16.msra.mxu0 %v6698_v23  ;;  %v6705_v32 = vld [vmem:[#allocation2] sm:$0xff]   ;;  %p6713_p3 = scmp.lt.s32.totalorder %s8193_s23, %s6711_s20  ;;  %p6714_p4 = scmp.lt.s32.totalorder %s6712_s29, %s6706_s19 }
0x21b3   : > { %6272 = vmatprep.subr.bf16.mxu0 %v6775_v12  ;;  %s8191_s26 = scalar_lea.hbm %s8287_s17, %s5759_s16  ;;  %p6709_p2 = pneg %p6708_p1 }
0x21b4   : > { %p6715_p5 = por %p6714_p4, %p6713_p3 }
0x21b6   : > { %6273 = vmatpush3.bf16.msra.mxu0 %v6699_v26  ;;  %p6716_p7 = pnand %p6715_p5, %p6709_p2 }
0x21b7   : > { %6274 = vmatprep.subr.bf16.mxu0 %v6775_v12 }
0x21ba   : > { %6275 = vmatpush3.bf16.msra.mxu0 %v6700_v27 }
0x21bb   : > { %6276 = vmatprep.subr.bf16.mxu0 %v6775_v12 }
0x21be   : > { %6277 = vmatpush3.bf16.msra.mxu0 %v6701_v28 }
0x21bf   : > { %6278 = vmatprep.subr.bf16.mxu0 %v6775_v12 }
0x21c2   : > { %6279 = vmatpush3.bf16.msra.mxu0 %v6702_v33 }
0x21c3   : > { %6280 = vmatprep.subr.bf16.mxu0 %v6775_v12 }
0x21c6   : > { %6281 = vmatpush3.bf16.msra.mxu0 %v6703_v13 }
0x21c7   : > { %6282 = vmatprep.subr.bf16.mxu0 %v6775_v12 }
0x21ca   : > { %6283 = vmatpush3.bf16.msra.mxu0 %v6704_v2 }
0x21cd   : > { %6285 = vmatmul.mubr.bf16.vlgmr.msra.gmra.mxu0 %v6705_v32 }
0x228d   : > { %v5250_v63 = vpop.f32.mrf.mxu0 }
0x228e   : > { %5257 = vst [vmem:[%s6948_s30] sm:$0xff] %v5250_v63 }
0x228f   : > { %v6286_v36 = vpop.f32.mrf.mxu0 }
0x2291   : > { %v5253_v49 = vpop.f32.mrf.mxu0 }
0x2292   : > { %5258 = vst [vmem:[%s6948_s30 + $0x8] sm:$0xff] %v5253_v49 }
0x2293   : > { %v6287_v35 = vpop.f32.mrf.mxu0 }
0x2294   : > { %6719 = shalt.err (!%p6716_p7)
}
0x2295   : > { %s6720_s30 = scalar_lea.hbm %s8191_s26, 256  ;;  %s6724_s15 = scalar_lea.hbm %s8287_s17, 512 }
0x2296   : > { %p6721_p10 = scmp.ne.s32.totalorder %s8191_s26, %s6720_s30  ;;  %p6725_p13 = scmp.lt.s32.totalorder %s8191_s26, %s8287_s17 }
0x2297   : > { %p6726_p0 = scmp.lt.s32.totalorder %s6724_s15, %s6720_s30 }
0x2298   : > { %p6722_p11 = pnand %p6721_p10, %p6905_p6 }
0x2299   : > { %p6727_p1 = por %p6726_p0, %p6725_p13 }
0x229a   : > { %p6723_p12 = pneg %p6722_p11 }
0x229c   : > { %p6728_p2 = pnand %p6727_p1, %p6723_p12 }
0x229e   : > { %6731 = shalt.err (!%p6728_p2)
}
0x229f   : > { %s6778_s27 = smov 128   ;;  %s6779_s19 = smov 256  }
0x22a0   : > { %s6780_s25 = smov 8  }
0x22a1   : > { %6288 = dma.vmem_to_hbm [thread:$0]  (%p6905_p6), %s8193_s23, 256, %s8191_s26, %s5260_s28, %s6778_s27, %s6779_s19, %s6780_s25  }
0x22a2 PF: > { %s8288_s20 = sld [smem:[#allocation7_spill]]  ;;  %p6291_p3 = pnand %p5342_p9, %p6909_p8 }
0x22a4   : > { %p6292_p4 = pneg %p6291_p3 }
0x22a8   : > { %s5287_s22 = sand.u32 1, %s8288_s20  }
0x22a9   : > { %s5288_s30 = scalar_lea.sflag [#allocation5], %s5287_s22 }
0x22aa   : > { %6749 = dma.done.wait (%p6292_p4), %s5288_s30, 256  }
0x22ab   : > { %6751 = vsyncadd (%p6292_p4), %s5288_s30, 4294967040  ;;  %s8291_s24 = sld [smem:[#allocation11_spill]] }
0x22ac   : > { %s8292_s21 = sld [smem:[#allocation8_spill]] }
0x22ad   : > { %s8293_s22 = sld [smem:[#allocation9_spill]] }
0x22ae   : > { %s8294_s23 = sld [smem:[#allocation12_spill]] }
0x22b1   : > { %p26_p5 = scmp.ge.s32.totalorder %s8291_s24, 4  }
0x22b3   :  { %28 = sbr.rel (!%p26_p5) target bundleno = 7 (0x7), region = 181 }
0x22b8   :  { %5293 = vsyncpa [#allocation5], 1 }
0x22b9   :  { %5295 = vsyncpa [#allocation5 + $0x1], 1 }

</bundles_post_ra>
